<compile_context>
chip_gen: v6e
topology: v6e:2x2x1
jax: 0.10.0
libtpu: 0.0.40
codegen_flags: <defaults>
</compile_context>

<pallas_src>
import functools

import jax
import jax.numpy as jnp
from jax.experimental import pallas as pl
from jax.experimental.pallas import tpu as pltpu

EMBED_DIM = 32     # self.embedding_dim
HIDDEN_DIM = 64    # self.hidden_dim
SUBLANE = 8        # f32 sublane tile


def _discriminator_kernel(num_layers,
                          x_ref, lab_ref, mask_ref,
                          wih_ref, whh_ref, bias_ref,
                          attn_w_ref, attn_b_ref, ctx_w_ref,
                          lin_w_ref, lin_b_ref,
                          out_ref,
                          buf):
    TB, E = x_ref.shape            # T * Bp rows; row = t*Bp + b (time-major, batch padded)
    Bp = lab_ref.shape[0]          # padded batch (multiple of 8)
    T = TB // Bp
    H = HIDDEN_DIM
    G = 4 * H

    # Hoist the mask lane-broadcast out of every loop (JAX does not CSE broadcasts).
    mask_h = mask_ref[...] * jnp.ones((1, H), jnp.float32)       # (T*Bp, H)
    inv_mask_h = 1.0 - mask_h

    def run_layer(gates_x, whh):
        """Serial LSTM recurrence; gates_x already holds x @ W_ih + bias (+ label term)."""
        h = jnp.zeros((Bp, H), jnp.float32)
        c = jnp.zeros((Bp, H), jnp.float32)
        # Fully unrolled: T is static & small -> full LLO scheduler visibility.
        # TODO(synk): hold whh resident in the MXU across steps (matmul_push_rhs /
        # matmul_acc_lhs / matmul_pop) to avoid re-pushing the (H, 4H) RHS each step.
        for t in range(T):
            r0 = t * Bp                                           # multiple of 8 -> aligned tiles
            g_all = gates_x[r0:r0 + Bp, :] + jnp.dot(
                h, whh, preferred_element_type=jnp.float32)       # (Bp, 4H)
            # Gate columns (i, f, o, g): lo = (i|f), hi = (o|g), each one 128-lane tile.
            lo = g_all[:, :2 * H]
            hi = g_all[:, 2 * H:]
            lo_s = jax.nn.sigmoid(lo)                             # sigmoid(i) | sigmoid(f)
            i_g = lo_s[:, :H]
            f_g = pltpu.roll(lo_s, H, axis=1)[:, :H]              # half-tile rotation (XLU slot)
            o_g = jax.nn.sigmoid(hi[:, :H])
            g_g = jnp.tanh(pltpu.roll(hi, H, axis=1)[:, :H])
            c_new = f_g * c + i_g * g_g
            h_new = o_g * jnp.tanh(c_new)
            m = mask_h[r0:r0 + Bp, :]
            im = inv_mask_h[r0:r0 + Bp, :]
            mh = m * h_new
            h = mh + im * h                     # freeze state past length (packed LSTM)
            c = m * c_new + im * c
            buf[pl.ds(r0, Bp), :] = mh          # zeros past length; full 8-row unmasked store

    # ---- layer 0: split input projection (sequence half; label half + bias folded once) ----
    wih0 = wih_ref[0]                                             # (2E, 4H); rows [0,E)=seq, [E,2E)=label
    gl = jnp.dot(lab_ref[...], wih0[E:, :],
                 preferred_element_type=jnp.float32) + bias_ref[0]            # (Bp, 4H)
    gx = jnp.dot(x_ref[...], wih0[:E, :],
                 preferred_element_type=jnp.float32)                          # (T*Bp, 4H)
    gx = (gx.reshape(T, Bp, G) + gl[None, :, :]).reshape(TB, G)   # fold off the serial chain
    run_layer(gx, whh_ref[0])

    # ---- layers 1..L-1: one big input projection per layer, off the serial chain ----
    for layer in range(1, num_layers):
        gx = jnp.dot(buf[...], wih_ref[layer],
                     preferred_element_type=jnp.float32) + bias_ref[layer]    # (T*Bp, 4H)
        run_layer(gx, whh_ref[layer])

    final = buf[...]                                              # (T*Bp, H) time-major

    # ---- Attention: ctx(tanh(attn(out))) -> softmax over time -> weighted sum ----
    act = jnp.tanh(jnp.dot(final, attn_w_ref[...],
                           preferred_element_type=jnp.float32) + attn_b_ref[...])   # (T*Bp, H)
    scores = jnp.dot(act, ctx_w_ref[...], preferred_element_type=jnp.float32)       # (T*Bp, 1) on MXU
    scores3 = scores.reshape(T, Bp, 1)
    s_max = jnp.max(scores3, axis=0, keepdims=True)               # (1, Bp, 1)
    e = jnp.exp(scores3 - s_max)
    w = e / jnp.sum(e, axis=0, keepdims=True)                     # softmax over time
    weighted = jnp.sum(final.reshape(T, Bp, H) * w, axis=0)       # (Bp, H)

    # ---- final Linear(hidden_dim, 1) ----
    out_ref[...] = (jnp.dot(weighted, lin_w_ref[...],
                            preferred_element_type=jnp.float32) + lin_b_ref[...])


def discriminator_forward(params, seq, labels, lengths, num_layers):
    """seq: (B, T) int32 tokens; labels: (B,) int32; lengths: (B,) int32, max(lengths) == T."""
    B, T = seq.shape
    E, H = EMBED_DIM, HIDDEN_DIM
    Bp = ((B + SUBLANE - 1) // SUBLANE) * SUBLANE      # pad batch to a full sublane tile

    # Glue: embedding gathers arranged time-major with padded batch (row = t*Bp + b).
    # Transpose the tiny int token array (not the float embeddings), no concat/broadcast.
    seq_emb_tm = params["seq_emb"][seq.T]                               # (T, B, E)
    x_tm = jnp.pad(seq_emb_tm, ((0, 0), (0, Bp - B), (0, 0))).reshape(T * Bp, E)
    lab = jnp.pad(params["label_emb"][labels], ((0, Bp - B), (0, 0)))   # (Bp, E)
    lengths_p = jnp.pad(lengths, (0, Bp - B))                           # padded rows -> length 0
    mask_tm = (jnp.arange(T)[:, None] < lengths_p[None, :]
               ).astype(jnp.float32).reshape(T * Bp, 1)                 # (T*Bp, 1)

    # Advisory cost estimate (the kernel is latency-bound; helps XLA overlap neighbours).
    G = 4 * H
    flops = int(num_layers * (2 * T * Bp * H * G + 2 * T * Bp * H * G)
                + 2 * T * Bp * H * H + 2 * T * Bp * H + 2 * Bp * H)
    transcendentals = int(num_layers * T * Bp * 5 * H + T * Bp * H + T * Bp)
    weight_bytes = sum(int(params[k].size) * 4 for k in
                       ("wih", "whh", "bias", "attn_w", "attn_b", "ctx_w", "lin_w", "lin_b"))
    bytes_accessed = int((x_tm.size + lab.size + mask_tm.size + Bp) * 4 + weight_bytes)

    kernel = functools.partial(_discriminator_kernel, num_layers)
    vmem = pl.BlockSpec(memory_space=pltpu.MemorySpace.VMEM)
    # Note: on v7x (2 TensorCores) with larger B (>= ~16), add a batch grid axis
    # (blocks a multiple of 8 rows) with dimension_semantics=("parallel",) to split
    # independent sequences across cores; at this size one core suffices and the
    # whole working set is a few hundred KiB of VMEM on every generation.
    out = pl.pallas_call(
        kernel,
        out_shape=jax.ShapeDtypeStruct((Bp, 1), jnp.float32),
        in_specs=[vmem] * 11,
        out_specs=vmem,
        scratch_shapes=[pltpu.VMEM((T * Bp, H), jnp.float32)],   # time-major layer output buffer
        cost_estimate=pl.CostEstimate(flops=flops,
                                      transcendentals=transcendentals,
                                      bytes_accessed=bytes_accessed),
    )(x_tm, lab, mask_tm,
      params["wih"], params["whh"], params["bias"],
      params["attn_w"], params["attn_b"], params["ctx_w"],
      params["lin_w"], params["lin_b"])
    return out[:B]


def init_params(key, vocab_size, num_classes, num_layers):
    """Deterministic synthetic parameters matching the PyTorch module's shapes."""
    E, H = EMBED_DIM, HIDDEN_DIM
    assert 2 * E == H  # layer-0 input dim == hidden dim, so LSTM weights stack cleanly
    ks = jax.random.split(key, 10)
    s = 0.1
    return {
        "label_emb": jax.random.normal(ks[0], (num_classes, E), jnp.float32) * s,
        "seq_emb":   jax.random.normal(ks[1], (vocab_size, E), jnp.float32) * s,
        # LSTM weights stored transposed (in_dim, 4H); gate order (i, f, o, g); bias = b_ih + b_hh.
        "wih":  jax.random.normal(ks[2], (num_layers, 2 * E, 4 * H), jnp.float32) * s,
        "whh":  jax.random.normal(ks[3], (num_layers, H, 4 * H), jnp.float32) * s,
        "bias": jax.random.normal(ks[4], (num_layers, 1, 4 * H), jnp.float32) * s,
        "attn_w": jax.random.normal(ks[5], (H, H), jnp.float32) * s,   # Attention.attn (transposed)
        "attn_b": jax.random.normal(ks[6], (1, H), jnp.float32) * s,
        "ctx_w":  jax.random.normal(ks[7], (H, 1), jnp.float32) * s,   # Attention.context_vector (transposed, no bias)
        "lin_w":  jax.random.normal(ks[8], (H, 1), jnp.float32) * s,   # final Linear (transposed)
        "lin_b":  jax.random.normal(ks[9], (1, 1), jnp.float32) * s,
    }


def reference_forward(params, seq, labels, lengths, num_layers):
    """Pure-JAX reference with identical semantics (for correctness check)."""
    E, H = EMBED_DIM, HIDDEN_DIM
    B, T = seq.shape
    x = jnp.concatenate([params["seq_emb"][seq],
                         jnp.broadcast_to(params["label_emb"][labels][:, None, :], (B, T, E))], -1)
    mask = (jnp.arange(T)[None, :] < lengths[:, None]).astype(jnp.float32)
    layer_in = x
    for l in range(num_layers):
        h = jnp.zeros((B, H)); c = jnp.zeros((B, H)); outs = []
        for t in range(T):
            g = layer_in[:, t, :] @ params["wih"][l] + h @ params["whh"][l] + params["bias"][l]
            # gate order (i, f, o, g) — matches the kernel's weight convention
            i = jax.nn.sigmoid(g[:, :H]); f = jax.nn.sigmoid(g[:, H:2 * H])
            o = jax.nn.sigmoid(g[:, 2 * H:3 * H]); gg = jnp.tanh(g[:, 3 * H:])
            c_new = f * c + i * gg; h_new = o * jnp.tanh(c_new)
            m = mask[:, t:t + 1]
            h = m * h_new + (1 - m) * h; c = m * c_new + (1 - m) * c
            outs.append(m * h_new)
        layer_in = jnp.stack(outs, axis=1)
    final = layer_in
    act = jnp.tanh(final @ params["attn_w"] + params["attn_b"])
    scores = (act @ params["ctx_w"])[..., 0]                  # (B, T)
    w = jax.nn.softmax(scores, axis=1)
    weighted = jnp.sum(final * w[:, :, None], axis=1)
    return weighted @ params["lin_w"] + params["lin_b"]


if __name__ == "__main__":
    vocab_size, num_classes, num_layers = 10, 4, 2
    B, T = 2, 8
    key = jax.random.PRNGKey(0)
    pk, sk, lk = jax.random.split(key, 3)

    params = init_params(pk, vocab_size, num_classes, num_layers)
    seq = jax.random.randint(sk, (B, T), 0, vocab_size, dtype=jnp.int32)
    labels = jax.random.randint(lk, (B,), 0, num_classes, dtype=jnp.int32)
    # pad_packed_sequence returns T_out = max(lengths); choose lengths with max == T.
    lengths = jnp.array([T, T - 3], dtype=jnp.int32)

    out = discriminator_forward(params, seq, labels, lengths, num_layers)
    out = jax.block_until_ready(out)

    ref = reference_forward(params, seq, labels, lengths, num_layers)
    assert out.shape == (B, 1)
    assert jnp.allclose(out, ref, rtol=1e-4, atol=1e-4), (out, ref)
    # TODO(synk): inter-layer LSTM dropout is train-only; inference (eval) semantics implemented.
    print("KERNEL_OK")
</pallas_src>

<mosaic_0001>
module attributes {stable_mosaic.version = 11 : i64} {
  func.func @_discriminator_kernel(%arg0: memref<64x32xf32, #tpu.memory_space<vmem>>, %arg1: memref<8x32xf32, #tpu.memory_space<vmem>>, %arg2: memref<64x1xf32, #tpu.memory_space<vmem>>, %arg3: memref<2x64x256xf32, #tpu.memory_space<vmem>>, %arg4: memref<2x64x256xf32, #tpu.memory_space<vmem>>, %arg5: memref<2x1x256xf32, #tpu.memory_space<vmem>>, %arg6: memref<64x64xf32, #tpu.memory_space<vmem>>, %arg7: memref<1x64xf32, #tpu.memory_space<vmem>>, %arg8: memref<64x1xf32, #tpu.memory_space<vmem>>, %arg9: memref<64x1xf32, #tpu.memory_space<vmem>>, %arg10: memref<1x1xf32, #tpu.memory_space<vmem>>, %arg11: memref<8x1xf32, #tpu.memory_space<vmem>>, %arg12: memref<64x64xf32, #tpu.memory_space<vmem>>) attributes {dimension_semantics = [], scalar_prefetch = 0 : i64, scratch_operands = 1 : i64, tpu.core_type = #tpu.core_type<tc>} {
    %c0 = arith.constant 0 : index
    %c0_0 = arith.constant 0 : index
    %0 = vector.load %arg2[%c0, %c0_0] : memref<64x1xf32, #tpu.memory_space<vmem>>, vector<64x1xf32>
    %cst = arith.constant 1.000000e+00 : f32
    %1 = vector.broadcast %cst : f32 to vector<1x64xf32>
    %2 = vector.broadcast %0 : vector<64x1xf32> to vector<64x64xf32>
    %3 = vector.broadcast %1 : vector<1x64xf32> to vector<64x64xf32>
    %4 = arith.mulf %2, %3 : vector<64x64xf32>
    %cst_1 = arith.constant 1.000000e+00 : f32
    %5 = vector.broadcast %cst_1 : f32 to vector<64x64xf32>
    %6 = arith.subf %5, %4 : vector<64x64xf32>
    %c0_2 = arith.constant 0 : index
    %c0_3 = arith.constant 0 : index
    %c0_4 = arith.constant 0 : index
    %7 = vector.load %arg3[%c0_2, %c0_3, %c0_4] : memref<2x64x256xf32, #tpu.memory_space<vmem>>, vector<1x64x256xf32>
    %8 = vector.shape_cast %7 : vector<1x64x256xf32> to vector<64x256xf32>
    %c0_5 = arith.constant 0 : index
    %c0_6 = arith.constant 0 : index
    %9 = vector.load %arg1[%c0_5, %c0_6] : memref<8x32xf32, #tpu.memory_space<vmem>>, vector<8x32xf32>
    %10 = vector.extract_strided_slice %8 {offsets = [32, 0], sizes = [32, 256], strides = [1, 1]} : vector<64x256xf32> to vector<32x256xf32>
    %cst_7 = arith.constant dense<0.000000e+00> : vector<8x256xf32>
    %11 = tpu.matmul %9, %10, %cst_7 {dimension_numbers = #tpu.dot_dimension_numbers<[1], [0], [0], [1], [0, 0, 1, 1], [], []>} : vector<8x32xf32>, vector<32x256xf32>, vector<8x256xf32> -> vector<8x256xf32>
    %c0_8 = arith.constant 0 : index
    %c0_9 = arith.constant 0 : index
    %c0_10 = arith.constant 0 : index
    %12 = vector.load %arg5[%c0_8, %c0_9, %c0_10] : memref<2x1x256xf32, #tpu.memory_space<vmem>>, vector<1x1x256xf32>
    %13 = vector.shape_cast %12 : vector<1x1x256xf32> to vector<1x256xf32>
    %14 = vector.broadcast %13 : vector<1x256xf32> to vector<8x256xf32>
    %15 = arith.addf %11, %14 : vector<8x256xf32>
    %c0_11 = arith.constant 0 : index
    %c0_12 = arith.constant 0 : index
    %16 = vector.load %arg0[%c0_11, %c0_12] : memref<64x32xf32, #tpu.memory_space<vmem>>, vector<64x32xf32>
    %17 = vector.extract_strided_slice %8 {offsets = [0, 0], sizes = [32, 256], strides = [1, 1]} : vector<64x256xf32> to vector<32x256xf32>
    %cst_13 = arith.constant dense<0.000000e+00> : vector<64x256xf32>
    %18 = tpu.matmul %16, %17, %cst_13 {dimension_numbers = #tpu.dot_dimension_numbers<[1], [0], [0], [1], [0, 0, 1, 1], [], []>} : vector<64x32xf32>, vector<32x256xf32>, vector<64x256xf32> -> vector<64x256xf32>
    %19 = vector.shape_cast %18 : vector<64x256xf32> to vector<8x8x256xf32>
    %20 = vector.shape_cast %15 : vector<8x256xf32> to vector<1x8x256xf32>
    %21 = vector.broadcast %20 : vector<1x8x256xf32> to vector<8x8x256xf32>
    %22 = arith.addf %19, %21 : vector<8x8x256xf32>
    %23 = vector.shape_cast %22 : vector<8x8x256xf32> to vector<64x256xf32>
    %c0_14 = arith.constant 0 : index
    %c0_15 = arith.constant 0 : index
    %c0_16 = arith.constant 0 : index
    %24 = vector.load %arg4[%c0_14, %c0_15, %c0_16] : memref<2x64x256xf32, #tpu.memory_space<vmem>>, vector<1x64x256xf32>
    %25 = vector.shape_cast %24 : vector<1x64x256xf32> to vector<64x256xf32>
    %cst_17 = arith.constant 0.000000e+00 : f32
    %26 = vector.broadcast %cst_17 : f32 to vector<8x64xf32>
    %cst_18 = arith.constant 0.000000e+00 : f32
    %27 = vector.broadcast %cst_18 : f32 to vector<8x64xf32>
    %28 = vector.extract_strided_slice %23 {offsets = [0, 0], sizes = [8, 256], strides = [1, 1]} : vector<64x256xf32> to vector<8x256xf32>
    %cst_19 = arith.constant dense<0.000000e+00> : vector<8x256xf32>
    %29 = tpu.matmul %26, %25, %cst_19 {dimension_numbers = #tpu.dot_dimension_numbers<[1], [0], [0], [1], [0, 0, 1, 1], [], []>} : vector<8x64xf32>, vector<64x256xf32>, vector<8x256xf32> -> vector<8x256xf32>
    %30 = arith.addf %28, %29 : vector<8x256xf32>
    %31 = vector.extract_strided_slice %30 {offsets = [0, 0], sizes = [8, 128], strides = [1, 1]} : vector<8x256xf32> to vector<8x128xf32>
    %32 = vector.extract_strided_slice %30 {offsets = [0, 128], sizes = [8, 128], strides = [1, 1]} : vector<8x256xf32> to vector<8x128xf32>
    %33 = arith.negf %31 : vector<8x128xf32>
    %34 = math.exp %33 : vector<8x128xf32>
    %cst_20 = arith.constant 1.000000e+00 : f32
    %35 = vector.broadcast %cst_20 : f32 to vector<8x128xf32>
    %36 = arith.addf %35, %34 : vector<8x128xf32>
    %37 = arith.divf %35, %36 : vector<8x128xf32>
    %38 = vector.extract_strided_slice %37 {offsets = [0, 0], sizes = [8, 64], strides = [1, 1]} : vector<8x128xf32> to vector<8x64xf32>
    %c64_i32 = arith.constant 64 : i32
    %39 = tpu.dynamic_rotate %37 by %c64_i32 dim 1 : vector<8x128xf32>, i32 -> vector<8x128xf32>
    %40 = vector.extract_strided_slice %39 {offsets = [0, 0], sizes = [8, 64], strides = [1, 1]} : vector<8x128xf32> to vector<8x64xf32>
    %41 = vector.extract_strided_slice %32 {offsets = [0, 0], sizes = [8, 64], strides = [1, 1]} : vector<8x128xf32> to vector<8x64xf32>
    %42 = arith.negf %41 : vector<8x64xf32>
    %43 = math.exp %42 : vector<8x64xf32>
    %cst_21 = arith.constant 1.000000e+00 : f32
    %44 = vector.broadcast %cst_21 : f32 to vector<8x64xf32>
    %45 = arith.addf %44, %43 : vector<8x64xf32>
    %46 = arith.divf %44, %45 : vector<8x64xf32>
    %c64_i32_22 = arith.constant 64 : i32
    %47 = tpu.dynamic_rotate %32 by %c64_i32_22 dim 1 : vector<8x128xf32>, i32 -> vector<8x128xf32>
    %48 = vector.extract_strided_slice %47 {offsets = [0, 0], sizes = [8, 64], strides = [1, 1]} : vector<8x128xf32> to vector<8x64xf32>
    %49 = math.tanh %48 : vector<8x64xf32>
    %50 = arith.mulf %40, %27 : vector<8x64xf32>
    %51 = arith.mulf %38, %49 : vector<8x64xf32>
    %52 = arith.addf %50, %51 : vector<8x64xf32>
    %53 = math.tanh %52 : vector<8x64xf32>
    %54 = arith.mulf %46, %53 : vector<8x64xf32>
    %55 = vector.extract_strided_slice %4 {offsets = [0, 0], sizes = [8, 64], strides = [1, 1]} : vector<64x64xf32> to vector<8x64xf32>
    %56 = vector.extract_strided_slice %6 {offsets = [0, 0], sizes = [8, 64], strides = [1, 1]} : vector<64x64xf32> to vector<8x64xf32>
    %57 = arith.mulf %55, %54 : vector<8x64xf32>
    %58 = arith.mulf %56, %26 : vector<8x64xf32>
    %59 = arith.addf %57, %58 : vector<8x64xf32>
    %60 = arith.mulf %55, %52 : vector<8x64xf32>
    %61 = arith.mulf %56, %27 : vector<8x64xf32>
    %62 = arith.addf %60, %61 : vector<8x64xf32>
    %c0_23 = arith.constant 0 : index
    %c0_24 = arith.constant 0 : index
    %63 = vector.load %arg12[%c0_23, %c0_24] : memref<64x64xf32, #tpu.memory_space<vmem>>, vector<8x64xf32>
    tpu.vector_store %arg12[%c0_23, %c0_24], %57 {strides = array<i32>} : memref<64x64xf32, #tpu.memory_space<vmem>>, vector<8x64xf32>,
    %64 = vector.extract_strided_slice %23 {offsets = [8, 0], sizes = [8, 256], strides = [1, 1]} : vector<64x256xf32> to vector<8x256xf32>
    %cst_25 = arith.constant dense<0.000000e+00> : vector<8x256xf32>
    %65 = tpu.matmul %59, %25, %cst_25 {dimension_numbers = #tpu.dot_dimension_numbers<[1], [0], [0], [1], [0, 0, 1, 1], [], []>} : vector<8x64xf32>, vector<64x256xf32>, vector<8x256xf32> -> vector<8x256xf32>
    %66 = arith.addf %64, %65 : vector<8x256xf32>
    %67 = vector.extract_strided_slice %66 {offsets = [0, 0], sizes = [8, 128], strides = [1, 1]} : vector<8x256xf32> to vector<8x128xf32>
    %68 = vector.extract_strided_slice %66 {offsets = [0, 128], sizes = [8, 128], strides = [1, 1]} : vector<8x256xf32> to vector<8x128xf32>
    %69 = arith.negf %67 : vector<8x128xf32>
    %70 = math.exp %69 : vector<8x128xf32>
    %cst_26 = arith.constant 1.000000e+00 : f32
    %71 = vector.broadcast %cst_26 : f32 to vector<8x128xf32>
    %72 = arith.addf %71, %70 : vector<8x128xf32>
    %73 = arith.divf %71, %72 : vector<8x128xf32>
    %74 = vector.extract_strided_slice %73 {offsets = [0, 0], sizes = [8, 64], strides = [1, 1]} : vector<8x128xf32> to vector<8x64xf32>
    %c64_i32_27 = arith.constant 64 : i32
    %75 = tpu.dynamic_rotate %73 by %c64_i32_27 dim 1 : vector<8x128xf32>, i32 -> vector<8x128xf32>
    %76 = vector.extract_strided_slice %75 {offsets = [0, 0], sizes = [8, 64], strides = [1, 1]} : vector<8x128xf32> to vector<8x64xf32>
    %77 = vector.extract_strided_slice %68 {offsets = [0, 0], sizes = [8, 64], strides = [1, 1]} : vector<8x128xf32> to vector<8x64xf32>
    %78 = arith.negf %77 : vector<8x64xf32>
    %79 = math.exp %78 : vector<8x64xf32>
    %cst_28 = arith.constant 1.000000e+00 : f32
    %80 = vector.broadcast %cst_28 : f32 to vector<8x64xf32>
    %81 = arith.addf %80, %79 : vector<8x64xf32>
    %82 = arith.divf %80, %81 : vector<8x64xf32>
    %c64_i32_29 = arith.constant 64 : i32
    %83 = tpu.dynamic_rotate %68 by %c64_i32_29 dim 1 : vector<8x128xf32>, i32 -> vector<8x128xf32>
    %84 = vector.extract_strided_slice %83 {offsets = [0, 0], sizes = [8, 64], strides = [1, 1]} : vector<8x128xf32> to vector<8x64xf32>
    %85 = math.tanh %84 : vector<8x64xf32>
    %86 = arith.mulf %76, %62 : vector<8x64xf32>
    %87 = arith.mulf %74, %85 : vector<8x64xf32>
    %88 = arith.addf %86, %87 : vector<8x64xf32>
    %89 = math.tanh %88 : vector<8x64xf32>
    %90 = arith.mulf %82, %89 : vector<8x64xf32>
    %91 = vector.extract_strided_slice %4 {offsets = [8, 0], sizes = [8, 64], strides = [1, 1]} : vector<64x64xf32> to vector<8x64xf32>
    %92 = vector.extract_strided_slice %6 {offsets = [8, 0], sizes = [8, 64], strides = [1, 1]} : vector<64x64xf32> to vector<8x64xf32>
    %93 = arith.mulf %91, %90 : vector<8x64xf32>
    %94 = arith.mulf %92, %59 : vector<8x64xf32>
    %95 = arith.addf %93, %94 : vector<8x64xf32>
    %96 = arith.mulf %91, %88 : vector<8x64xf32>
    %97 = arith.mulf %92, %62 : vector<8x64xf32>
    %98 = arith.addf %96, %97 : vector<8x64xf32>
    %c8 = arith.constant 8 : index
    %c0_30 = arith.constant 0 : index
    %99 = vector.load %arg12[%c8, %c0_30] : memref<64x64xf32, #tpu.memory_space<vmem>>, vector<8x64xf32>
    tpu.vector_store %arg12[%c8, %c0_30], %93 {strides = array<i32>} : memref<64x64xf32, #tpu.memory_space<vmem>>, vector<8x64xf32>,
    %100 = vector.extract_strided_slice %23 {offsets = [16, 0], sizes = [8, 256], strides = [1, 1]} : vector<64x256xf32> to vector<8x256xf32>
    %cst_31 = arith.constant dense<0.000000e+00> : vector<8x256xf32>
    %101 = tpu.matmul %95, %25, %cst_31 {dimension_numbers = #tpu.dot_dimension_numbers<[1], [0], [0], [1], [0, 0, 1, 1], [], []>} : vector<8x64xf32>, vector<64x256xf32>, vector<8x256xf32> -> vector<8x256xf32>
    %102 = arith.addf %100, %101 : vector<8x256xf32>
    %103 = vector.extract_strided_slice %102 {offsets = [0, 0], sizes = [8, 128], strides = [1, 1]} : vector<8x256xf32> to vector<8x128xf32>
    %104 = vector.extract_strided_slice %102 {offsets = [0, 128], sizes = [8, 128], strides = [1, 1]} : vector<8x256xf32> to vector<8x128xf32>
    %105 = arith.negf %103 : vector<8x128xf32>
    %106 = math.exp %105 : vector<8x128xf32>
    %cst_32 = arith.constant 1.000000e+00 : f32
    %107 = vector.broadcast %cst_32 : f32 to vector<8x128xf32>
    %108 = arith.addf %107, %106 : vector<8x128xf32>
    %109 = arith.divf %107, %108 : vector<8x128xf32>
    %110 = vector.extract_strided_slice %109 {offsets = [0, 0], sizes = [8, 64], strides = [1, 1]} : vector<8x128xf32> to vector<8x64xf32>
    %c64_i32_33 = arith.constant 64 : i32
    %111 = tpu.dynamic_rotate %109 by %c64_i32_33 dim 1 : vector<8x128xf32>, i32 -> vector<8x128xf32>
    %112 = vector.extract_strided_slice %111 {offsets = [0, 0], sizes = [8, 64], strides = [1, 1]} : vector<8x128xf32> to vector<8x64xf32>
    %113 = vector.extract_strided_slice %104 {offsets = [0, 0], sizes = [8, 64], strides = [1, 1]} : vector<8x128xf32> to vector<8x64xf32>
    %114 = arith.negf %113 : vector<8x64xf32>
    %115 = math.exp %114 : vector<8x64xf32>
    %cst_34 = arith.constant 1.000000e+00 : f32
    %116 = vector.broadcast %cst_34 : f32 to vector<8x64xf32>
    %117 = arith.addf %116, %115 : vector<8x64xf32>
    %118 = arith.divf %116, %117 : vector<8x64xf32>
    %c64_i32_35 = arith.constant 64 : i32
    %119 = tpu.dynamic_rotate %104 by %c64_i32_35 dim 1 : vector<8x128xf32>, i32 -> vector<8x128xf32>
    %120 = vector.extract_strided_slice %119 {offsets = [0, 0], sizes = [8, 64], strides = [1, 1]} : vector<8x128xf32> to vector<8x64xf32>
    %121 = math.tanh %120 : vector<8x64xf32>
    %122 = arith.mulf %112, %98 : vector<8x64xf32>
    %123 = arith.mulf %110, %121 : vector<8x64xf32>
    %124 = arith.addf %122, %123 : vector<8x64xf32>
    %125 = math.tanh %124 : vector<8x64xf32>
    %126 = arith.mulf %118, %125 : vector<8x64xf32>
    %127 = vector.extract_strided_slice %4 {offsets = [16, 0], sizes = [8, 64], strides = [1, 1]} : vector<64x64xf32> to vector<8x64xf32>
    %128 = vector.extract_strided_slice %6 {offsets = [16, 0], sizes = [8, 64], strides = [1, 1]} : vector<64x64xf32> to vector<8x64xf32>
    %129 = arith.mulf %127, %126 : vector<8x64xf32>
    %130 = arith.mulf %128, %95 : vector<8x64xf32>
    %131 = arith.addf %129, %130 : vector<8x64xf32>
    %132 = arith.mulf %127, %124 : vector<8x64xf32>
    %133 = arith.mulf %128, %98 : vector<8x64xf32>
    %134 = arith.addf %132, %133 : vector<8x64xf32>
    %c16 = arith.constant 16 : index
    %c0_36 = arith.constant 0 : index
    %135 = vector.load %arg12[%c16, %c0_36] : memref<64x64xf32, #tpu.memory_space<vmem>>, vector<8x64xf32>
    tpu.vector_store %arg12[%c16, %c0_36], %129 {strides = array<i32>} : memref<64x64xf32, #tpu.memory_space<vmem>>, vector<8x64xf32>,
    %136 = vector.extract_strided_slice %23 {offsets = [24, 0], sizes = [8, 256], strides = [1, 1]} : vector<64x256xf32> to vector<8x256xf32>
    %cst_37 = arith.constant dense<0.000000e+00> : vector<8x256xf32>
    %137 = tpu.matmul %131, %25, %cst_37 {dimension_numbers = #tpu.dot_dimension_numbers<[1], [0], [0], [1], [0, 0, 1, 1], [], []>} : vector<8x64xf32>, vector<64x256xf32>, vector<8x256xf32> -> vector<8x256xf32>
    %138 = arith.addf %136, %137 : vector<8x256xf32>
    %139 = vector.extract_strided_slice %138 {offsets = [0, 0], sizes = [8, 128], strides = [1, 1]} : vector<8x256xf32> to vector<8x128xf32>
    %140 = vector.extract_strided_slice %138 {offsets = [0, 128], sizes = [8, 128], strides = [1, 1]} : vector<8x256xf32> to vector<8x128xf32>
    %141 = arith.negf %139 : vector<8x128xf32>
    %142 = math.exp %141 : vector<8x128xf32>
    %cst_38 = arith.constant 1.000000e+00 : f32
    %143 = vector.broadcast %cst_38 : f32 to vector<8x128xf32>
    %144 = arith.addf %143, %142 : vector<8x128xf32>
    %145 = arith.divf %143, %144 : vector<8x128xf32>
    %146 = vector.extract_strided_slice %145 {offsets = [0, 0], sizes = [8, 64], strides = [1, 1]} : vector<8x128xf32> to vector<8x64xf32>
    %c64_i32_39 = arith.constant 64 : i32
    %147 = tpu.dynamic_rotate %145 by %c64_i32_39 dim 1 : vector<8x128xf32>, i32 -> vector<8x128xf32>
    %148 = vector.extract_strided_slice %147 {offsets = [0, 0], sizes = [8, 64], strides = [1, 1]} : vector<8x128xf32> to vector<8x64xf32>
    %149 = vector.extract_strided_slice %140 {offsets = [0, 0], sizes = [8, 64], strides = [1, 1]} : vector<8x128xf32> to vector<8x64xf32>
    %150 = arith.negf %149 : vector<8x64xf32>
    %151 = math.exp %150 : vector<8x64xf32>
    %cst_40 = arith.constant 1.000000e+00 : f32
    %152 = vector.broadcast %cst_40 : f32 to vector<8x64xf32>
    %153 = arith.addf %152, %151 : vector<8x64xf32>
    %154 = arith.divf %152, %153 : vector<8x64xf32>
    %c64_i32_41 = arith.constant 64 : i32
    %155 = tpu.dynamic_rotate %140 by %c64_i32_41 dim 1 : vector<8x128xf32>, i32 -> vector<8x128xf32>
    %156 = vector.extract_strided_slice %155 {offsets = [0, 0], sizes = [8, 64], strides = [1, 1]} : vector<8x128xf32> to vector<8x64xf32>
    %157 = math.tanh %156 : vector<8x64xf32>
    %158 = arith.mulf %148, %134 : vector<8x64xf32>
    %159 = arith.mulf %146, %157 : vector<8x64xf32>
    %160 = arith.addf %158, %159 : vector<8x64xf32>
    %161 = math.tanh %160 : vector<8x64xf32>
    %162 = arith.mulf %154, %161 : vector<8x64xf32>
    %163 = vector.extract_strided_slice %4 {offsets = [24, 0], sizes = [8, 64], strides = [1, 1]} : vector<64x64xf32> to vector<8x64xf32>
    %164 = vector.extract_strided_slice %6 {offsets = [24, 0], sizes = [8, 64], strides = [1, 1]} : vector<64x64xf32> to vector<8x64xf32>
    %165 = arith.mulf %163, %162 : vector<8x64xf32>
    %166 = arith.mulf %164, %131 : vector<8x64xf32>
    %167 = arith.addf %165, %166 : vector<8x64xf32>
    %168 = arith.mulf %163, %160 : vector<8x64xf32>
    %169 = arith.mulf %164, %134 : vector<8x64xf32>
    %170 = arith.addf %168, %169 : vector<8x64xf32>
    %c24 = arith.constant 24 : index
    %c0_42 = arith.constant 0 : index
    %171 = vector.load %arg12[%c24, %c0_42] : memref<64x64xf32, #tpu.memory_space<vmem>>, vector<8x64xf32>
    tpu.vector_store %arg12[%c24, %c0_42], %165 {strides = array<i32>} : memref<64x64xf32, #tpu.memory_space<vmem>>, vector<8x64xf32>,
    %172 = vector.extract_strided_slice %23 {offsets = [32, 0], sizes = [8, 256], strides = [1, 1]} : vector<64x256xf32> to vector<8x256xf32>
    %cst_43 = arith.constant dense<0.000000e+00> : vector<8x256xf32>
    %173 = tpu.matmul %167, %25, %cst_43 {dimension_numbers = #tpu.dot_dimension_numbers<[1], [0], [0], [1], [0, 0, 1, 1], [], []>} : vector<8x64xf32>, vector<64x256xf32>, vector<8x256xf32> -> vector<8x256xf32>
    %174 = arith.addf %172, %173 : vector<8x256xf32>
    %175 = vector.extract_strided_slice %174 {offsets = [0, 0], sizes = [8, 128], strides = [1, 1]} : vector<8x256xf32> to vector<8x128xf32>
    %176 = vector.extract_strided_slice %174 {offsets = [0, 128], sizes = [8, 128], strides = [1, 1]} : vector<8x256xf32> to vector<8x128xf32>
    %177 = arith.negf %175 : vector<8x128xf32>
    %178 = math.exp %177 : vector<8x128xf32>
    %cst_44 = arith.constant 1.000000e+00 : f32
    %179 = vector.broadcast %cst_44 : f32 to vector<8x128xf32>
    %180 = arith.addf %179, %178 : vector<8x128xf32>
    %181 = arith.divf %179, %180 : vector<8x128xf32>
    %182 = vector.extract_strided_slice %181 {offsets = [0, 0], sizes = [8, 64], strides = [1, 1]} : vector<8x128xf32> to vector<8x64xf32>
    %c64_i32_45 = arith.constant 64 : i32
    %183 = tpu.dynamic_rotate %181 by %c64_i32_45 dim 1 : vector<8x128xf32>, i32 -> vector<8x128xf32>
    %184 = vector.extract_strided_slice %183 {offsets = [0, 0], sizes = [8, 64], strides = [1, 1]} : vector<8x128xf32> to vector<8x64xf32>
    %185 = vector.extract_strided_slice %176 {offsets = [0, 0], sizes = [8, 64], strides = [1, 1]} : vector<8x128xf32> to vector<8x64xf32>
    %186 = arith.negf %185 : vector<8x64xf32>
    %187 = math.exp %186 : vector<8x64xf32>
    %cst_46 = arith.constant 1.000000e+00 : f32
    %188 = vector.broadcast %cst_46 : f32 to vector<8x64xf32>
    %189 = arith.addf %188, %187 : vector<8x64xf32>
    %190 = arith.divf %188, %189 : vector<8x64xf32>
    %c64_i32_47 = arith.constant 64 : i32
    %191 = tpu.dynamic_rotate %176 by %c64_i32_47 dim 1 : vector<8x128xf32>, i32 -> vector<8x128xf32>
    %192 = vector.extract_strided_slice %191 {offsets = [0, 0], sizes = [8, 64], strides = [1, 1]} : vector<8x128xf32> to vector<8x64xf32>
    %193 = math.tanh %192 : vector<8x64xf32>
    %194 = arith.mulf %184, %170 : vector<8x64xf32>
    %195 = arith.mulf %182, %193 : vector<8x64xf32>
    %196 = arith.addf %194, %195 : vector<8x64xf32>
    %197 = math.tanh %196 : vector<8x64xf32>
    %198 = arith.mulf %190, %197 : vector<8x64xf32>
    %199 = vector.extract_strided_slice %4 {offsets = [32, 0], sizes = [8, 64], strides = [1, 1]} : vector<64x64xf32> to vector<8x64xf32>
    %200 = vector.extract_strided_slice %6 {offsets = [32, 0], sizes = [8, 64], strides = [1, 1]} : vector<64x64xf32> to vector<8x64xf32>
    %201 = arith.mulf %199, %198 : vector<8x64xf32>
    %202 = arith.mulf %200, %167 : vector<8x64xf32>
    %203 = arith.addf %201, %202 : vector<8x64xf32>
    %204 = arith.mulf %199, %196 : vector<8x64xf32>
    %205 = arith.mulf %200, %170 : vector<8x64xf32>
    %206 = arith.addf %204, %205 : vector<8x64xf32>
    %c32 = arith.constant 32 : index
    %c0_48 = arith.constant 0 : index
    %207 = vector.load %arg12[%c32, %c0_48] : memref<64x64xf32, #tpu.memory_space<vmem>>, vector<8x64xf32>
    tpu.vector_store %arg12[%c32, %c0_48], %201 {strides = array<i32>} : memref<64x64xf32, #tpu.memory_space<vmem>>, vector<8x64xf32>,
    %208 = vector.extract_strided_slice %23 {offsets = [40, 0], sizes = [8, 256], strides = [1, 1]} : vector<64x256xf32> to vector<8x256xf32>
    %cst_49 = arith.constant dense<0.000000e+00> : vector<8x256xf32>
    %209 = tpu.matmul %203, %25, %cst_49 {dimension_numbers = #tpu.dot_dimension_numbers<[1], [0], [0], [1], [0, 0, 1, 1], [], []>} : vector<8x64xf32>, vector<64x256xf32>, vector<8x256xf32> -> vector<8x256xf32>
    %210 = arith.addf %208, %209 : vector<8x256xf32>
    %211 = vector.extract_strided_slice %210 {offsets = [0, 0], sizes = [8, 128], strides = [1, 1]} : vector<8x256xf32> to vector<8x128xf32>
    %212 = vector.extract_strided_slice %210 {offsets = [0, 128], sizes = [8, 128], strides = [1, 1]} : vector<8x256xf32> to vector<8x128xf32>
    %213 = arith.negf %211 : vector<8x128xf32>
    %214 = math.exp %213 : vector<8x128xf32>
    %cst_50 = arith.constant 1.000000e+00 : f32
    %215 = vector.broadcast %cst_50 : f32 to vector<8x128xf32>
    %216 = arith.addf %215, %214 : vector<8x128xf32>
    %217 = arith.divf %215, %216 : vector<8x128xf32>
    %218 = vector.extract_strided_slice %217 {offsets = [0, 0], sizes = [8, 64], strides = [1, 1]} : vector<8x128xf32> to vector<8x64xf32>
    %c64_i32_51 = arith.constant 64 : i32
    %219 = tpu.dynamic_rotate %217 by %c64_i32_51 dim 1 : vector<8x128xf32>, i32 -> vector<8x128xf32>
    %220 = vector.extract_strided_slice %219 {offsets = [0, 0], sizes = [8, 64], strides = [1, 1]} : vector<8x128xf32> to vector<8x64xf32>
    %221 = vector.extract_strided_slice %212 {offsets = [0, 0], sizes = [8, 64], strides = [1, 1]} : vector<8x128xf32> to vector<8x64xf32>
    %222 = arith.negf %221 : vector<8x64xf32>
    %223 = math.exp %222 : vector<8x64xf32>
    %cst_52 = arith.constant 1.000000e+00 : f32
    %224 = vector.broadcast %cst_52 : f32 to vector<8x64xf32>
    %225 = arith.addf %224, %223 : vector<8x64xf32>
    %226 = arith.divf %224, %225 : vector<8x64xf32>
    %c64_i32_53 = arith.constant 64 : i32
    %227 = tpu.dynamic_rotate %212 by %c64_i32_53 dim 1 : vector<8x128xf32>, i32 -> vector<8x128xf32>
    %228 = vector.extract_strided_slice %227 {offsets = [0, 0], sizes = [8, 64], strides = [1, 1]} : vector<8x128xf32> to vector<8x64xf32>
    %229 = math.tanh %228 : vector<8x64xf32>
    %230 = arith.mulf %220, %206 : vector<8x64xf32>
    %231 = arith.mulf %218, %229 : vector<8x64xf32>
    %232 = arith.addf %230, %231 : vector<8x64xf32>
    %233 = math.tanh %232 : vector<8x64xf32>
    %234 = arith.mulf %226, %233 : vector<8x64xf32>
    %235 = vector.extract_strided_slice %4 {offsets = [40, 0], sizes = [8, 64], strides = [1, 1]} : vector<64x64xf32> to vector<8x64xf32>
    %236 = vector.extract_strided_slice %6 {offsets = [40, 0], sizes = [8, 64], strides = [1, 1]} : vector<64x64xf32> to vector<8x64xf32>
    %237 = arith.mulf %235, %234 : vector<8x64xf32>
    %238 = arith.mulf %236, %203 : vector<8x64xf32>
    %239 = arith.addf %237, %238 : vector<8x64xf32>
    %240 = arith.mulf %235, %232 : vector<8x64xf32>
    %241 = arith.mulf %236, %206 : vector<8x64xf32>
    %242 = arith.addf %240, %241 : vector<8x64xf32>
    %c40 = arith.constant 40 : index
    %c0_54 = arith.constant 0 : index
    %243 = vector.load %arg12[%c40, %c0_54] : memref<64x64xf32, #tpu.memory_space<vmem>>, vector<8x64xf32>
    tpu.vector_store %arg12[%c40, %c0_54], %237 {strides = array<i32>} : memref<64x64xf32, #tpu.memory_space<vmem>>, vector<8x64xf32>,
    %244 = vector.extract_strided_slice %23 {offsets = [48, 0], sizes = [8, 256], strides = [1, 1]} : vector<64x256xf32> to vector<8x256xf32>
    %cst_55 = arith.constant dense<0.000000e+00> : vector<8x256xf32>
    %245 = tpu.matmul %239, %25, %cst_55 {dimension_numbers = #tpu.dot_dimension_numbers<[1], [0], [0], [1], [0, 0, 1, 1], [], []>} : vector<8x64xf32>, vector<64x256xf32>, vector<8x256xf32> -> vector<8x256xf32>
    %246 = arith.addf %244, %245 : vector<8x256xf32>
    %247 = vector.extract_strided_slice %246 {offsets = [0, 0], sizes = [8, 128], strides = [1, 1]} : vector<8x256xf32> to vector<8x128xf32>
    %248 = vector.extract_strided_slice %246 {offsets = [0, 128], sizes = [8, 128], strides = [1, 1]} : vector<8x256xf32> to vector<8x128xf32>
    %249 = arith.negf %247 : vector<8x128xf32>
    %250 = math.exp %249 : vector<8x128xf32>
    %cst_56 = arith.constant 1.000000e+00 : f32
    %251 = vector.broadcast %cst_56 : f32 to vector<8x128xf32>
    %252 = arith.addf %251, %250 : vector<8x128xf32>
    %253 = arith.divf %251, %252 : vector<8x128xf32>
    %254 = vector.extract_strided_slice %253 {offsets = [0, 0], sizes = [8, 64], strides = [1, 1]} : vector<8x128xf32> to vector<8x64xf32>
    %c64_i32_57 = arith.constant 64 : i32
    %255 = tpu.dynamic_rotate %253 by %c64_i32_57 dim 1 : vector<8x128xf32>, i32 -> vector<8x128xf32>
    %256 = vector.extract_strided_slice %255 {offsets = [0, 0], sizes = [8, 64], strides = [1, 1]} : vector<8x128xf32> to vector<8x64xf32>
    %257 = vector.extract_strided_slice %248 {offsets = [0, 0], sizes = [8, 64], strides = [1, 1]} : vector<8x128xf32> to vector<8x64xf32>
    %258 = arith.negf %257 : vector<8x64xf32>
    %259 = math.exp %258 : vector<8x64xf32>
    %cst_58 = arith.constant 1.000000e+00 : f32
    %260 = vector.broadcast %cst_58 : f32 to vector<8x64xf32>
    %261 = arith.addf %260, %259 : vector<8x64xf32>
    %262 = arith.divf %260, %261 : vector<8x64xf32>
    %c64_i32_59 = arith.constant 64 : i32
    %263 = tpu.dynamic_rotate %248 by %c64_i32_59 dim 1 : vector<8x128xf32>, i32 -> vector<8x128xf32>
    %264 = vector.extract_strided_slice %263 {offsets = [0, 0], sizes = [8, 64], strides = [1, 1]} : vector<8x128xf32> to vector<8x64xf32>
    %265 = math.tanh %264 : vector<8x64xf32>
    %266 = arith.mulf %256, %242 : vector<8x64xf32>
    %267 = arith.mulf %254, %265 : vector<8x64xf32>
    %268 = arith.addf %266, %267 : vector<8x64xf32>
    %269 = math.tanh %268 : vector<8x64xf32>
    %270 = arith.mulf %262, %269 : vector<8x64xf32>
    %271 = vector.extract_strided_slice %4 {offsets = [48, 0], sizes = [8, 64], strides = [1, 1]} : vector<64x64xf32> to vector<8x64xf32>
    %272 = vector.extract_strided_slice %6 {offsets = [48, 0], sizes = [8, 64], strides = [1, 1]} : vector<64x64xf32> to vector<8x64xf32>
    %273 = arith.mulf %271, %270 : vector<8x64xf32>
    %274 = arith.mulf %272, %239 : vector<8x64xf32>
    %275 = arith.addf %273, %274 : vector<8x64xf32>
    %276 = arith.mulf %271, %268 : vector<8x64xf32>
    %277 = arith.mulf %272, %242 : vector<8x64xf32>
    %278 = arith.addf %276, %277 : vector<8x64xf32>
    %c48 = arith.constant 48 : index
    %c0_60 = arith.constant 0 : index
    %279 = vector.load %arg12[%c48, %c0_60] : memref<64x64xf32, #tpu.memory_space<vmem>>, vector<8x64xf32>
    tpu.vector_store %arg12[%c48, %c0_60], %273 {strides = array<i32>} : memref<64x64xf32, #tpu.memory_space<vmem>>, vector<8x64xf32>,
    %280 = vector.extract_strided_slice %23 {offsets = [56, 0], sizes = [8, 256], strides = [1, 1]} : vector<64x256xf32> to vector<8x256xf32>
    %cst_61 = arith.constant dense<0.000000e+00> : vector<8x256xf32>
    %281 = tpu.matmul %275, %25, %cst_61 {dimension_numbers = #tpu.dot_dimension_numbers<[1], [0], [0], [1], [0, 0, 1, 1], [], []>} : vector<8x64xf32>, vector<64x256xf32>, vector<8x256xf32> -> vector<8x256xf32>
    %282 = arith.addf %280, %281 : vector<8x256xf32>
    %283 = vector.extract_strided_slice %282 {offsets = [0, 0], sizes = [8, 128], strides = [1, 1]} : vector<8x256xf32> to vector<8x128xf32>
    %284 = vector.extract_strided_slice %282 {offsets = [0, 128], sizes = [8, 128], strides = [1, 1]} : vector<8x256xf32> to vector<8x128xf32>
    %285 = arith.negf %283 : vector<8x128xf32>
    %286 = math.exp %285 : vector<8x128xf32>
    %cst_62 = arith.constant 1.000000e+00 : f32
    %287 = vector.broadcast %cst_62 : f32 to vector<8x128xf32>
    %288 = arith.addf %287, %286 : vector<8x128xf32>
    %289 = arith.divf %287, %288 : vector<8x128xf32>
    %290 = vector.extract_strided_slice %289 {offsets = [0, 0], sizes = [8, 64], strides = [1, 1]} : vector<8x128xf32> to vector<8x64xf32>
    %c64_i32_63 = arith.constant 64 : i32
    %291 = tpu.dynamic_rotate %289 by %c64_i32_63 dim 1 : vector<8x128xf32>, i32 -> vector<8x128xf32>
    %292 = vector.extract_strided_slice %291 {offsets = [0, 0], sizes = [8, 64], strides = [1, 1]} : vector<8x128xf32> to vector<8x64xf32>
    %293 = vector.extract_strided_slice %284 {offsets = [0, 0], sizes = [8, 64], strides = [1, 1]} : vector<8x128xf32> to vector<8x64xf32>
    %294 = arith.negf %293 : vector<8x64xf32>
    %295 = math.exp %294 : vector<8x64xf32>
    %cst_64 = arith.constant 1.000000e+00 : f32
    %296 = vector.broadcast %cst_64 : f32 to vector<8x64xf32>
    %297 = arith.addf %296, %295 : vector<8x64xf32>
    %298 = arith.divf %296, %297 : vector<8x64xf32>
    %c64_i32_65 = arith.constant 64 : i32
    %299 = tpu.dynamic_rotate %284 by %c64_i32_65 dim 1 : vector<8x128xf32>, i32 -> vector<8x128xf32>
    %300 = vector.extract_strided_slice %299 {offsets = [0, 0], sizes = [8, 64], strides = [1, 1]} : vector<8x128xf32> to vector<8x64xf32>
    %301 = math.tanh %300 : vector<8x64xf32>
    %302 = arith.mulf %292, %278 : vector<8x64xf32>
    %303 = arith.mulf %290, %301 : vector<8x64xf32>
    %304 = arith.addf %302, %303 : vector<8x64xf32>
    %305 = math.tanh %304 : vector<8x64xf32>
    %306 = arith.mulf %298, %305 : vector<8x64xf32>
    %307 = vector.extract_strided_slice %4 {offsets = [56, 0], sizes = [8, 64], strides = [1, 1]} : vector<64x64xf32> to vector<8x64xf32>
    %308 = arith.mulf %307, %306 : vector<8x64xf32>
    %c56 = arith.constant 56 : index
    %c0_66 = arith.constant 0 : index
    %309 = vector.load %arg12[%c56, %c0_66] : memref<64x64xf32, #tpu.memory_space<vmem>>, vector<8x64xf32>
    tpu.vector_store %arg12[%c56, %c0_66], %308 {strides = array<i32>} : memref<64x64xf32, #tpu.memory_space<vmem>>, vector<8x64xf32>,
    %c0_67 = arith.constant 0 : index
    %c0_68 = arith.constant 0 : index
    %310 = vector.load %arg12[%c0_67, %c0_68] : memref<64x64xf32, #tpu.memory_space<vmem>>, vector<64x64xf32>
    %c1 = arith.constant 1 : index
    %c0_69 = arith.constant 0 : index
    %c0_70 = arith.constant 0 : index
    %311 = vector.load %arg3[%c1, %c0_69, %c0_70] : memref<2x64x256xf32, #tpu.memory_space<vmem>>, vector<1x64x256xf32>
    %312 = vector.shape_cast %311 : vector<1x64x256xf32> to vector<64x256xf32>
    %cst_71 = arith.constant dense<0.000000e+00> : vector<64x256xf32>
    %313 = tpu.matmul %310, %312, %cst_71 {dimension_numbers = #tpu.dot_dimension_numbers<[1], [0], [0], [1], [0, 0, 1, 1], [], []>} : vector<64x64xf32>, vector<64x256xf32>, vector<64x256xf32> -> vector<64x256xf32>
    %c1_72 = arith.constant 1 : index
    %c0_73 = arith.constant 0 : index
    %c0_74 = arith.constant 0 : index
    %314 = vector.load %arg5[%c1_72, %c0_73, %c0_74] : memref<2x1x256xf32, #tpu.memory_space<vmem>>, vector<1x1x256xf32>
    %315 = vector.shape_cast %314 : vector<1x1x256xf32> to vector<1x256xf32>
    %316 = vector.broadcast %315 : vector<1x256xf32> to vector<64x256xf32>
    %317 = arith.addf %313, %316 : vector<64x256xf32>
    %c1_75 = arith.constant 1 : index
    %c0_76 = arith.constant 0 : index
    %c0_77 = arith.constant 0 : index
    %318 = vector.load %arg4[%c1_75, %c0_76, %c0_77] : memref<2x64x256xf32, #tpu.memory_space<vmem>>, vector<1x64x256xf32>
    %319 = vector.shape_cast %318 : vector<1x64x256xf32> to vector<64x256xf32>
    %cst_78 = arith.constant 0.000000e+00 : f32
    %320 = vector.broadcast %cst_78 : f32 to vector<8x64xf32>
    %cst_79 = arith.constant 0.000000e+00 : f32
    %321 = vector.broadcast %cst_79 : f32 to vector<8x64xf32>
    %322 = vector.extract_strided_slice %317 {offsets = [0, 0], sizes = [8, 256], strides = [1, 1]} : vector<64x256xf32> to vector<8x256xf32>
    %cst_80 = arith.constant dense<0.000000e+00> : vector<8x256xf32>
    %323 = tpu.matmul %320, %319, %cst_80 {dimension_numbers = #tpu.dot_dimension_numbers<[1], [0], [0], [1], [0, 0, 1, 1], [], []>} : vector<8x64xf32>, vector<64x256xf32>, vector<8x256xf32> -> vector<8x256xf32>
    %324 = arith.addf %322, %323 : vector<8x256xf32>
    %325 = vector.extract_strided_slice %324 {offsets = [0, 0], sizes = [8, 128], strides = [1, 1]} : vector<8x256xf32> to vector<8x128xf32>
    %326 = vector.extract_strided_slice %324 {offsets = [0, 128], sizes = [8, 128], strides = [1, 1]} : vector<8x256xf32> to vector<8x128xf32>
    %327 = arith.negf %325 : vector<8x128xf32>
    %328 = math.exp %327 : vector<8x128xf32>
    %cst_81 = arith.constant 1.000000e+00 : f32
    %329 = vector.broadcast %cst_81 : f32 to vector<8x128xf32>
    %330 = arith.addf %329, %328 : vector<8x128xf32>
    %331 = arith.divf %329, %330 : vector<8x128xf32>
    %332 = vector.extract_strided_slice %331 {offsets = [0, 0], sizes = [8, 64], strides = [1, 1]} : vector<8x128xf32> to vector<8x64xf32>
    %c64_i32_82 = arith.constant 64 : i32
    %333 = tpu.dynamic_rotate %331 by %c64_i32_82 dim 1 : vector<8x128xf32>, i32 -> vector<8x128xf32>
    %334 = vector.extract_strided_slice %333 {offsets = [0, 0], sizes = [8, 64], strides = [1, 1]} : vector<8x128xf32> to vector<8x64xf32>
    %335 = vector.extract_strided_slice %326 {offsets = [0, 0], sizes = [8, 64], strides = [1, 1]} : vector<8x128xf32> to vector<8x64xf32>
    %336 = arith.negf %335 : vector<8x64xf32>
    %337 = math.exp %336 : vector<8x64xf32>
    %cst_83 = arith.constant 1.000000e+00 : f32
    %338 = vector.broadcast %cst_83 : f32 to vector<8x64xf32>
    %339 = arith.addf %338, %337 : vector<8x64xf32>
    %340 = arith.divf %338, %339 : vector<8x64xf32>
    %c64_i32_84 = arith.constant 64 : i32
    %341 = tpu.dynamic_rotate %326 by %c64_i32_84 dim 1 : vector<8x128xf32>, i32 -> vector<8x128xf32>
    %342 = vector.extract_strided_slice %341 {offsets = [0, 0], sizes = [8, 64], strides = [1, 1]} : vector<8x128xf32> to vector<8x64xf32>
    %343 = math.tanh %342 : vector<8x64xf32>
    %344 = arith.mulf %334, %321 : vector<8x64xf32>
    %345 = arith.mulf %332, %343 : vector<8x64xf32>
    %346 = arith.addf %344, %345 : vector<8x64xf32>
    %347 = math.tanh %346 : vector<8x64xf32>
    %348 = arith.mulf %340, %347 : vector<8x64xf32>
    %349 = vector.extract_strided_slice %4 {offsets = [0, 0], sizes = [8, 64], strides = [1, 1]} : vector<64x64xf32> to vector<8x64xf32>
    %350 = vector.extract_strided_slice %6 {offsets = [0, 0], sizes = [8, 64], strides = [1, 1]} : vector<64x64xf32> to vector<8x64xf32>
    %351 = arith.mulf %349, %348 : vector<8x64xf32>
    %352 = arith.mulf %350, %320 : vector<8x64xf32>
    %353 = arith.addf %351, %352 : vector<8x64xf32>
    %354 = arith.mulf %349, %346 : vector<8x64xf32>
    %355 = arith.mulf %350, %321 : vector<8x64xf32>
    %356 = arith.addf %354, %355 : vector<8x64xf32>
    %c0_85 = arith.constant 0 : index
    %c0_86 = arith.constant 0 : index
    %357 = vector.load %arg12[%c0_85, %c0_86] : memref<64x64xf32, #tpu.memory_space<vmem>>, vector<8x64xf32>
    tpu.vector_store %arg12[%c0_85, %c0_86], %351 {strides = array<i32>} : memref<64x64xf32, #tpu.memory_space<vmem>>, vector<8x64xf32>,
    %358 = vector.extract_strided_slice %317 {offsets = [8, 0], sizes = [8, 256], strides = [1, 1]} : vector<64x256xf32> to vector<8x256xf32>
    %cst_87 = arith.constant dense<0.000000e+00> : vector<8x256xf32>
    %359 = tpu.matmul %353, %319, %cst_87 {dimension_numbers = #tpu.dot_dimension_numbers<[1], [0], [0], [1], [0, 0, 1, 1], [], []>} : vector<8x64xf32>, vector<64x256xf32>, vector<8x256xf32> -> vector<8x256xf32>
    %360 = arith.addf %358, %359 : vector<8x256xf32>
    %361 = vector.extract_strided_slice %360 {offsets = [0, 0], sizes = [8, 128], strides = [1, 1]} : vector<8x256xf32> to vector<8x128xf32>
    %362 = vector.extract_strided_slice %360 {offsets = [0, 128], sizes = [8, 128], strides = [1, 1]} : vector<8x256xf32> to vector<8x128xf32>
    %363 = arith.negf %361 : vector<8x128xf32>
    %364 = math.exp %363 : vector<8x128xf32>
    %cst_88 = arith.constant 1.000000e+00 : f32
    %365 = vector.broadcast %cst_88 : f32 to vector<8x128xf32>
    %366 = arith.addf %365, %364 : vector<8x128xf32>
    %367 = arith.divf %365, %366 : vector<8x128xf32>
    %368 = vector.extract_strided_slice %367 {offsets = [0, 0], sizes = [8, 64], strides = [1, 1]} : vector<8x128xf32> to vector<8x64xf32>
    %c64_i32_89 = arith.constant 64 : i32
    %369 = tpu.dynamic_rotate %367 by %c64_i32_89 dim 1 : vector<8x128xf32>, i32 -> vector<8x128xf32>
    %370 = vector.extract_strided_slice %369 {offsets = [0, 0], sizes = [8, 64], strides = [1, 1]} : vector<8x128xf32> to vector<8x64xf32>
    %371 = vector.extract_strided_slice %362 {offsets = [0, 0], sizes = [8, 64], strides = [1, 1]} : vector<8x128xf32> to vector<8x64xf32>
    %372 = arith.negf %371 : vector<8x64xf32>
    %373 = math.exp %372 : vector<8x64xf32>
    %cst_90 = arith.constant 1.000000e+00 : f32
    %374 = vector.broadcast %cst_90 : f32 to vector<8x64xf32>
    %375 = arith.addf %374, %373 : vector<8x64xf32>
    %376 = arith.divf %374, %375 : vector<8x64xf32>
    %c64_i32_91 = arith.constant 64 : i32
    %377 = tpu.dynamic_rotate %362 by %c64_i32_91 dim 1 : vector<8x128xf32>, i32 -> vector<8x128xf32>
    %378 = vector.extract_strided_slice %377 {offsets = [0, 0], sizes = [8, 64], strides = [1, 1]} : vector<8x128xf32> to vector<8x64xf32>
    %379 = math.tanh %378 : vector<8x64xf32>
    %380 = arith.mulf %370, %356 : vector<8x64xf32>
    %381 = arith.mulf %368, %379 : vector<8x64xf32>
    %382 = arith.addf %380, %381 : vector<8x64xf32>
    %383 = math.tanh %382 : vector<8x64xf32>
    %384 = arith.mulf %376, %383 : vector<8x64xf32>
    %385 = vector.extract_strided_slice %4 {offsets = [8, 0], sizes = [8, 64], strides = [1, 1]} : vector<64x64xf32> to vector<8x64xf32>
    %386 = vector.extract_strided_slice %6 {offsets = [8, 0], sizes = [8, 64], strides = [1, 1]} : vector<64x64xf32> to vector<8x64xf32>
    %387 = arith.mulf %385, %384 : vector<8x64xf32>
    %388 = arith.mulf %386, %353 : vector<8x64xf32>
    %389 = arith.addf %387, %388 : vector<8x64xf32>
    %390 = arith.mulf %385, %382 : vector<8x64xf32>
    %391 = arith.mulf %386, %356 : vector<8x64xf32>
    %392 = arith.addf %390, %391 : vector<8x64xf32>
    %c8_92 = arith.constant 8 : index
    %c0_93 = arith.constant 0 : index
    %393 = vector.load %arg12[%c8_92, %c0_93] : memref<64x64xf32, #tpu.memory_space<vmem>>, vector<8x64xf32>
    tpu.vector_store %arg12[%c8_92, %c0_93], %387 {strides = array<i32>} : memref<64x64xf32, #tpu.memory_space<vmem>>, vector<8x64xf32>,
    %394 = vector.extract_strided_slice %317 {offsets = [16, 0], sizes = [8, 256], strides = [1, 1]} : vector<64x256xf32> to vector<8x256xf32>
    %cst_94 = arith.constant dense<0.000000e+00> : vector<8x256xf32>
    %395 = tpu.matmul %389, %319, %cst_94 {dimension_numbers = #tpu.dot_dimension_numbers<[1], [0], [0], [1], [0, 0, 1, 1], [], []>} : vector<8x64xf32>, vector<64x256xf32>, vector<8x256xf32> -> vector<8x256xf32>
    %396 = arith.addf %394, %395 : vector<8x256xf32>
    %397 = vector.extract_strided_slice %396 {offsets = [0, 0], sizes = [8, 128], strides = [1, 1]} : vector<8x256xf32> to vector<8x128xf32>
    %398 = vector.extract_strided_slice %396 {offsets = [0, 128], sizes = [8, 128], strides = [1, 1]} : vector<8x256xf32> to vector<8x128xf32>
    %399 = arith.negf %397 : vector<8x128xf32>
    %400 = math.exp %399 : vector<8x128xf32>
    %cst_95 = arith.constant 1.000000e+00 : f32
    %401 = vector.broadcast %cst_95 : f32 to vector<8x128xf32>
    %402 = arith.addf %401, %400 : vector<8x128xf32>
    %403 = arith.divf %401, %402 : vector<8x128xf32>
    %404 = vector.extract_strided_slice %403 {offsets = [0, 0], sizes = [8, 64], strides = [1, 1]} : vector<8x128xf32> to vector<8x64xf32>
    %c64_i32_96 = arith.constant 64 : i32
    %405 = tpu.dynamic_rotate %403 by %c64_i32_96 dim 1 : vector<8x128xf32>, i32 -> vector<8x128xf32>
    %406 = vector.extract_strided_slice %405 {offsets = [0, 0], sizes = [8, 64], strides = [1, 1]} : vector<8x128xf32> to vector<8x64xf32>
    %407 = vector.extract_strided_slice %398 {offsets = [0, 0], sizes = [8, 64], strides = [1, 1]} : vector<8x128xf32> to vector<8x64xf32>
    %408 = arith.negf %407 : vector<8x64xf32>
    %409 = math.exp %408 : vector<8x64xf32>
    %cst_97 = arith.constant 1.000000e+00 : f32
    %410 = vector.broadcast %cst_97 : f32 to vector<8x64xf32>
    %411 = arith.addf %410, %409 : vector<8x64xf32>
    %412 = arith.divf %410, %411 : vector<8x64xf32>
    %c64_i32_98 = arith.constant 64 : i32
    %413 = tpu.dynamic_rotate %398 by %c64_i32_98 dim 1 : vector<8x128xf32>, i32 -> vector<8x128xf32>
    %414 = vector.extract_strided_slice %413 {offsets = [0, 0], sizes = [8, 64], strides = [1, 1]} : vector<8x128xf32> to vector<8x64xf32>
    %415 = math.tanh %414 : vector<8x64xf32>
    %416 = arith.mulf %406, %392 : vector<8x64xf32>
    %417 = arith.mulf %404, %415 : vector<8x64xf32>
    %418 = arith.addf %416, %417 : vector<8x64xf32>
    %419 = math.tanh %418 : vector<8x64xf32>
    %420 = arith.mulf %412, %419 : vector<8x64xf32>
    %421 = vector.extract_strided_slice %4 {offsets = [16, 0], sizes = [8, 64], strides = [1, 1]} : vector<64x64xf32> to vector<8x64xf32>
    %422 = vector.extract_strided_slice %6 {offsets = [16, 0], sizes = [8, 64], strides = [1, 1]} : vector<64x64xf32> to vector<8x64xf32>
    %423 = arith.mulf %421, %420 : vector<8x64xf32>
    %424 = arith.mulf %422, %389 : vector<8x64xf32>
    %425 = arith.addf %423, %424 : vector<8x64xf32>
    %426 = arith.mulf %421, %418 : vector<8x64xf32>
    %427 = arith.mulf %422, %392 : vector<8x64xf32>
    %428 = arith.addf %426, %427 : vector<8x64xf32>
    %c16_99 = arith.constant 16 : index
    %c0_100 = arith.constant 0 : index
    %429 = vector.load %arg12[%c16_99, %c0_100] : memref<64x64xf32, #tpu.memory_space<vmem>>, vector<8x64xf32>
    tpu.vector_store %arg12[%c16_99, %c0_100], %423 {strides = array<i32>} : memref<64x64xf32, #tpu.memory_space<vmem>>, vector<8x64xf32>,
    %430 = vector.extract_strided_slice %317 {offsets = [24, 0], sizes = [8, 256], strides = [1, 1]} : vector<64x256xf32> to vector<8x256xf32>
    %cst_101 = arith.constant dense<0.000000e+00> : vector<8x256xf32>
    %431 = tpu.matmul %425, %319, %cst_101 {dimension_numbers = #tpu.dot_dimension_numbers<[1], [0], [0], [1], [0, 0, 1, 1], [], []>} : vector<8x64xf32>, vector<64x256xf32>, vector<8x256xf32> -> vector<8x256xf32>
    %432 = arith.addf %430, %431 : vector<8x256xf32>
    %433 = vector.extract_strided_slice %432 {offsets = [0, 0], sizes = [8, 128], strides = [1, 1]} : vector<8x256xf32> to vector<8x128xf32>
    %434 = vector.extract_strided_slice %432 {offsets = [0, 128], sizes = [8, 128], strides = [1, 1]} : vector<8x256xf32> to vector<8x128xf32>
    %435 = arith.negf %433 : vector<8x128xf32>
    %436 = math.exp %435 : vector<8x128xf32>
    %cst_102 = arith.constant 1.000000e+00 : f32
    %437 = vector.broadcast %cst_102 : f32 to vector<8x128xf32>
    %438 = arith.addf %437, %436 : vector<8x128xf32>
    %439 = arith.divf %437, %438 : vector<8x128xf32>
    %440 = vector.extract_strided_slice %439 {offsets = [0, 0], sizes = [8, 64], strides = [1, 1]} : vector<8x128xf32> to vector<8x64xf32>
    %c64_i32_103 = arith.constant 64 : i32
    %441 = tpu.dynamic_rotate %439 by %c64_i32_103 dim 1 : vector<8x128xf32>, i32 -> vector<8x128xf32>
    %442 = vector.extract_strided_slice %441 {offsets = [0, 0], sizes = [8, 64], strides = [1, 1]} : vector<8x128xf32> to vector<8x64xf32>
    %443 = vector.extract_strided_slice %434 {offsets = [0, 0], sizes = [8, 64], strides = [1, 1]} : vector<8x128xf32> to vector<8x64xf32>
    %444 = arith.negf %443 : vector<8x64xf32>
    %445 = math.exp %444 : vector<8x64xf32>
    %cst_104 = arith.constant 1.000000e+00 : f32
    %446 = vector.broadcast %cst_104 : f32 to vector<8x64xf32>
    %447 = arith.addf %446, %445 : vector<8x64xf32>
    %448 = arith.divf %446, %447 : vector<8x64xf32>
    %c64_i32_105 = arith.constant 64 : i32
    %449 = tpu.dynamic_rotate %434 by %c64_i32_105 dim 1 : vector<8x128xf32>, i32 -> vector<8x128xf32>
    %450 = vector.extract_strided_slice %449 {offsets = [0, 0], sizes = [8, 64], strides = [1, 1]} : vector<8x128xf32> to vector<8x64xf32>
    %451 = math.tanh %450 : vector<8x64xf32>
    %452 = arith.mulf %442, %428 : vector<8x64xf32>
    %453 = arith.mulf %440, %451 : vector<8x64xf32>
    %454 = arith.addf %452, %453 : vector<8x64xf32>
    %455 = math.tanh %454 : vector<8x64xf32>
    %456 = arith.mulf %448, %455 : vector<8x64xf32>
    %457 = vector.extract_strided_slice %4 {offsets = [24, 0], sizes = [8, 64], strides = [1, 1]} : vector<64x64xf32> to vector<8x64xf32>
    %458 = vector.extract_strided_slice %6 {offsets = [24, 0], sizes = [8, 64], strides = [1, 1]} : vector<64x64xf32> to vector<8x64xf32>
    %459 = arith.mulf %457, %456 : vector<8x64xf32>
    %460 = arith.mulf %458, %425 : vector<8x64xf32>
    %461 = arith.addf %459, %460 : vector<8x64xf32>
    %462 = arith.mulf %457, %454 : vector<8x64xf32>
    %463 = arith.mulf %458, %428 : vector<8x64xf32>
    %464 = arith.addf %462, %463 : vector<8x64xf32>
    %c24_106 = arith.constant 24 : index
    %c0_107 = arith.constant 0 : index
    %465 = vector.load %arg12[%c24_106, %c0_107] : memref<64x64xf32, #tpu.memory_space<vmem>>, vector<8x64xf32>
    tpu.vector_store %arg12[%c24_106, %c0_107], %459 {strides = array<i32>} : memref<64x64xf32, #tpu.memory_space<vmem>>, vector<8x64xf32>,
    %466 = vector.extract_strided_slice %317 {offsets = [32, 0], sizes = [8, 256], strides = [1, 1]} : vector<64x256xf32> to vector<8x256xf32>
    %cst_108 = arith.constant dense<0.000000e+00> : vector<8x256xf32>
    %467 = tpu.matmul %461, %319, %cst_108 {dimension_numbers = #tpu.dot_dimension_numbers<[1], [0], [0], [1], [0, 0, 1, 1], [], []>} : vector<8x64xf32>, vector<64x256xf32>, vector<8x256xf32> -> vector<8x256xf32>
    %468 = arith.addf %466, %467 : vector<8x256xf32>
    %469 = vector.extract_strided_slice %468 {offsets = [0, 0], sizes = [8, 128], strides = [1, 1]} : vector<8x256xf32> to vector<8x128xf32>
    %470 = vector.extract_strided_slice %468 {offsets = [0, 128], sizes = [8, 128], strides = [1, 1]} : vector<8x256xf32> to vector<8x128xf32>
    %471 = arith.negf %469 : vector<8x128xf32>
    %472 = math.exp %471 : vector<8x128xf32>
    %cst_109 = arith.constant 1.000000e+00 : f32
    %473 = vector.broadcast %cst_109 : f32 to vector<8x128xf32>
    %474 = arith.addf %473, %472 : vector<8x128xf32>
    %475 = arith.divf %473, %474 : vector<8x128xf32>
    %476 = vector.extract_strided_slice %475 {offsets = [0, 0], sizes = [8, 64], strides = [1, 1]} : vector<8x128xf32> to vector<8x64xf32>
    %c64_i32_110 = arith.constant 64 : i32
    %477 = tpu.dynamic_rotate %475 by %c64_i32_110 dim 1 : vector<8x128xf32>, i32 -> vector<8x128xf32>
    %478 = vector.extract_strided_slice %477 {offsets = [0, 0], sizes = [8, 64], strides = [1, 1]} : vector<8x128xf32> to vector<8x64xf32>
    %479 = vector.extract_strided_slice %470 {offsets = [0, 0], sizes = [8, 64], strides = [1, 1]} : vector<8x128xf32> to vector<8x64xf32>
    %480 = arith.negf %479 : vector<8x64xf32>
    %481 = math.exp %480 : vector<8x64xf32>
    %cst_111 = arith.constant 1.000000e+00 : f32
    %482 = vector.broadcast %cst_111 : f32 to vector<8x64xf32>
    %483 = arith.addf %482, %481 : vector<8x64xf32>
    %484 = arith.divf %482, %483 : vector<8x64xf32>
    %c64_i32_112 = arith.constant 64 : i32
    %485 = tpu.dynamic_rotate %470 by %c64_i32_112 dim 1 : vector<8x128xf32>, i32 -> vector<8x128xf32>
    %486 = vector.extract_strided_slice %485 {offsets = [0, 0], sizes = [8, 64], strides = [1, 1]} : vector<8x128xf32> to vector<8x64xf32>
    %487 = math.tanh %486 : vector<8x64xf32>
    %488 = arith.mulf %478, %464 : vector<8x64xf32>
    %489 = arith.mulf %476, %487 : vector<8x64xf32>
    %490 = arith.addf %488, %489 : vector<8x64xf32>
    %491 = math.tanh %490 : vector<8x64xf32>
    %492 = arith.mulf %484, %491 : vector<8x64xf32>
    %493 = vector.extract_strided_slice %4 {offsets = [32, 0], sizes = [8, 64], strides = [1, 1]} : vector<64x64xf32> to vector<8x64xf32>
    %494 = vector.extract_strided_slice %6 {offsets = [32, 0], sizes = [8, 64], strides = [1, 1]} : vector<64x64xf32> to vector<8x64xf32>
    %495 = arith.mulf %493, %492 : vector<8x64xf32>
    %496 = arith.mulf %494, %461 : vector<8x64xf32>
    %497 = arith.addf %495, %496 : vector<8x64xf32>
    %498 = arith.mulf %493, %490 : vector<8x64xf32>
    %499 = arith.mulf %494, %464 : vector<8x64xf32>
    %500 = arith.addf %498, %499 : vector<8x64xf32>
    %c32_113 = arith.constant 32 : index
    %c0_114 = arith.constant 0 : index
    %501 = vector.load %arg12[%c32_113, %c0_114] : memref<64x64xf32, #tpu.memory_space<vmem>>, vector<8x64xf32>
    tpu.vector_store %arg12[%c32_113, %c0_114], %495 {strides = array<i32>} : memref<64x64xf32, #tpu.memory_space<vmem>>, vector<8x64xf32>,
    %502 = vector.extract_strided_slice %317 {offsets = [40, 0], sizes = [8, 256], strides = [1, 1]} : vector<64x256xf32> to vector<8x256xf32>
    %cst_115 = arith.constant dense<0.000000e+00> : vector<8x256xf32>
    %503 = tpu.matmul %497, %319, %cst_115 {dimension_numbers = #tpu.dot_dimension_numbers<[1], [0], [0], [1], [0, 0, 1, 1], [], []>} : vector<8x64xf32>, vector<64x256xf32>, vector<8x256xf32> -> vector<8x256xf32>
    %504 = arith.addf %502, %503 : vector<8x256xf32>
    %505 = vector.extract_strided_slice %504 {offsets = [0, 0], sizes = [8, 128], strides = [1, 1]} : vector<8x256xf32> to vector<8x128xf32>
    %506 = vector.extract_strided_slice %504 {offsets = [0, 128], sizes = [8, 128], strides = [1, 1]} : vector<8x256xf32> to vector<8x128xf32>
    %507 = arith.negf %505 : vector<8x128xf32>
    %508 = math.exp %507 : vector<8x128xf32>
    %cst_116 = arith.constant 1.000000e+00 : f32
    %509 = vector.broadcast %cst_116 : f32 to vector<8x128xf32>
    %510 = arith.addf %509, %508 : vector<8x128xf32>
    %511 = arith.divf %509, %510 : vector<8x128xf32>
    %512 = vector.extract_strided_slice %511 {offsets = [0, 0], sizes = [8, 64], strides = [1, 1]} : vector<8x128xf32> to vector<8x64xf32>
    %c64_i32_117 = arith.constant 64 : i32
    %513 = tpu.dynamic_rotate %511 by %c64_i32_117 dim 1 : vector<8x128xf32>, i32 -> vector<8x128xf32>
    %514 = vector.extract_strided_slice %513 {offsets = [0, 0], sizes = [8, 64], strides = [1, 1]} : vector<8x128xf32> to vector<8x64xf32>
    %515 = vector.extract_strided_slice %506 {offsets = [0, 0], sizes = [8, 64], strides = [1, 1]} : vector<8x128xf32> to vector<8x64xf32>
    %516 = arith.negf %515 : vector<8x64xf32>
    %517 = math.exp %516 : vector<8x64xf32>
    %cst_118 = arith.constant 1.000000e+00 : f32
    %518 = vector.broadcast %cst_118 : f32 to vector<8x64xf32>
    %519 = arith.addf %518, %517 : vector<8x64xf32>
    %520 = arith.divf %518, %519 : vector<8x64xf32>
    %c64_i32_119 = arith.constant 64 : i32
    %521 = tpu.dynamic_rotate %506 by %c64_i32_119 dim 1 : vector<8x128xf32>, i32 -> vector<8x128xf32>
    %522 = vector.extract_strided_slice %521 {offsets = [0, 0], sizes = [8, 64], strides = [1, 1]} : vector<8x128xf32> to vector<8x64xf32>
    %523 = math.tanh %522 : vector<8x64xf32>
    %524 = arith.mulf %514, %500 : vector<8x64xf32>
    %525 = arith.mulf %512, %523 : vector<8x64xf32>
    %526 = arith.addf %524, %525 : vector<8x64xf32>
    %527 = math.tanh %526 : vector<8x64xf32>
    %528 = arith.mulf %520, %527 : vector<8x64xf32>
    %529 = vector.extract_strided_slice %4 {offsets = [40, 0], sizes = [8, 64], strides = [1, 1]} : vector<64x64xf32> to vector<8x64xf32>
    %530 = vector.extract_strided_slice %6 {offsets = [40, 0], sizes = [8, 64], strides = [1, 1]} : vector<64x64xf32> to vector<8x64xf32>
    %531 = arith.mulf %529, %528 : vector<8x64xf32>
    %532 = arith.mulf %530, %497 : vector<8x64xf32>
    %533 = arith.addf %531, %532 : vector<8x64xf32>
    %534 = arith.mulf %529, %526 : vector<8x64xf32>
    %535 = arith.mulf %530, %500 : vector<8x64xf32>
    %536 = arith.addf %534, %535 : vector<8x64xf32>
    %c40_120 = arith.constant 40 : index
    %c0_121 = arith.constant 0 : index
    %537 = vector.load %arg12[%c40_120, %c0_121] : memref<64x64xf32, #tpu.memory_space<vmem>>, vector<8x64xf32>
    tpu.vector_store %arg12[%c40_120, %c0_121], %531 {strides = array<i32>} : memref<64x64xf32, #tpu.memory_space<vmem>>, vector<8x64xf32>,
    %538 = vector.extract_strided_slice %317 {offsets = [48, 0], sizes = [8, 256], strides = [1, 1]} : vector<64x256xf32> to vector<8x256xf32>
    %cst_122 = arith.constant dense<0.000000e+00> : vector<8x256xf32>
    %539 = tpu.matmul %533, %319, %cst_122 {dimension_numbers = #tpu.dot_dimension_numbers<[1], [0], [0], [1], [0, 0, 1, 1], [], []>} : vector<8x64xf32>, vector<64x256xf32>, vector<8x256xf32> -> vector<8x256xf32>
    %540 = arith.addf %538, %539 : vector<8x256xf32>
    %541 = vector.extract_strided_slice %540 {offsets = [0, 0], sizes = [8, 128], strides = [1, 1]} : vector<8x256xf32> to vector<8x128xf32>
    %542 = vector.extract_strided_slice %540 {offsets = [0, 128], sizes = [8, 128], strides = [1, 1]} : vector<8x256xf32> to vector<8x128xf32>
    %543 = arith.negf %541 : vector<8x128xf32>
    %544 = math.exp %543 : vector<8x128xf32>
    %cst_123 = arith.constant 1.000000e+00 : f32
    %545 = vector.broadcast %cst_123 : f32 to vector<8x128xf32>
    %546 = arith.addf %545, %544 : vector<8x128xf32>
    %547 = arith.divf %545, %546 : vector<8x128xf32>
    %548 = vector.extract_strided_slice %547 {offsets = [0, 0], sizes = [8, 64], strides = [1, 1]} : vector<8x128xf32> to vector<8x64xf32>
    %c64_i32_124 = arith.constant 64 : i32
    %549 = tpu.dynamic_rotate %547 by %c64_i32_124 dim 1 : vector<8x128xf32>, i32 -> vector<8x128xf32>
    %550 = vector.extract_strided_slice %549 {offsets = [0, 0], sizes = [8, 64], strides = [1, 1]} : vector<8x128xf32> to vector<8x64xf32>
    %551 = vector.extract_strided_slice %542 {offsets = [0, 0], sizes = [8, 64], strides = [1, 1]} : vector<8x128xf32> to vector<8x64xf32>
    %552 = arith.negf %551 : vector<8x64xf32>
    %553 = math.exp %552 : vector<8x64xf32>
    %cst_125 = arith.constant 1.000000e+00 : f32
    %554 = vector.broadcast %cst_125 : f32 to vector<8x64xf32>
    %555 = arith.addf %554, %553 : vector<8x64xf32>
    %556 = arith.divf %554, %555 : vector<8x64xf32>
    %c64_i32_126 = arith.constant 64 : i32
    %557 = tpu.dynamic_rotate %542 by %c64_i32_126 dim 1 : vector<8x128xf32>, i32 -> vector<8x128xf32>
    %558 = vector.extract_strided_slice %557 {offsets = [0, 0], sizes = [8, 64], strides = [1, 1]} : vector<8x128xf32> to vector<8x64xf32>
    %559 = math.tanh %558 : vector<8x64xf32>
    %560 = arith.mulf %550, %536 : vector<8x64xf32>
    %561 = arith.mulf %548, %559 : vector<8x64xf32>
    %562 = arith.addf %560, %561 : vector<8x64xf32>
    %563 = math.tanh %562 : vector<8x64xf32>
    %564 = arith.mulf %556, %563 : vector<8x64xf32>
    %565 = vector.extract_strided_slice %4 {offsets = [48, 0], sizes = [8, 64], strides = [1, 1]} : vector<64x64xf32> to vector<8x64xf32>
    %566 = vector.extract_strided_slice %6 {offsets = [48, 0], sizes = [8, 64], strides = [1, 1]} : vector<64x64xf32> to vector<8x64xf32>
    %567 = arith.mulf %565, %564 : vector<8x64xf32>
    %568 = arith.mulf %566, %533 : vector<8x64xf32>
    %569 = arith.addf %567, %568 : vector<8x64xf32>
    %570 = arith.mulf %565, %562 : vector<8x64xf32>
    %571 = arith.mulf %566, %536 : vector<8x64xf32>
    %572 = arith.addf %570, %571 : vector<8x64xf32>
    %c48_127 = arith.constant 48 : index
    %c0_128 = arith.constant 0 : index
    %573 = vector.load %arg12[%c48_127, %c0_128] : memref<64x64xf32, #tpu.memory_space<vmem>>, vector<8x64xf32>
    tpu.vector_store %arg12[%c48_127, %c0_128], %567 {strides = array<i32>} : memref<64x64xf32, #tpu.memory_space<vmem>>, vector<8x64xf32>,
    %574 = vector.extract_strided_slice %317 {offsets = [56, 0], sizes = [8, 256], strides = [1, 1]} : vector<64x256xf32> to vector<8x256xf32>
    %cst_129 = arith.constant dense<0.000000e+00> : vector<8x256xf32>
    %575 = tpu.matmul %569, %319, %cst_129 {dimension_numbers = #tpu.dot_dimension_numbers<[1], [0], [0], [1], [0, 0, 1, 1], [], []>} : vector<8x64xf32>, vector<64x256xf32>, vector<8x256xf32> -> vector<8x256xf32>
    %576 = arith.addf %574, %575 : vector<8x256xf32>
    %577 = vector.extract_strided_slice %576 {offsets = [0, 0], sizes = [8, 128], strides = [1, 1]} : vector<8x256xf32> to vector<8x128xf32>
    %578 = vector.extract_strided_slice %576 {offsets = [0, 128], sizes = [8, 128], strides = [1, 1]} : vector<8x256xf32> to vector<8x128xf32>
    %579 = arith.negf %577 : vector<8x128xf32>
    %580 = math.exp %579 : vector<8x128xf32>
    %cst_130 = arith.constant 1.000000e+00 : f32
    %581 = vector.broadcast %cst_130 : f32 to vector<8x128xf32>
    %582 = arith.addf %581, %580 : vector<8x128xf32>
    %583 = arith.divf %581, %582 : vector<8x128xf32>
    %584 = vector.extract_strided_slice %583 {offsets = [0, 0], sizes = [8, 64], strides = [1, 1]} : vector<8x128xf32> to vector<8x64xf32>
    %c64_i32_131 = arith.constant 64 : i32
    %585 = tpu.dynamic_rotate %583 by %c64_i32_131 dim 1 : vector<8x128xf32>, i32 -> vector<8x128xf32>
    %586 = vector.extract_strided_slice %585 {offsets = [0, 0], sizes = [8, 64], strides = [1, 1]} : vector<8x128xf32> to vector<8x64xf32>
    %587 = vector.extract_strided_slice %578 {offsets = [0, 0], sizes = [8, 64], strides = [1, 1]} : vector<8x128xf32> to vector<8x64xf32>
    %588 = arith.negf %587 : vector<8x64xf32>
    %589 = math.exp %588 : vector<8x64xf32>
    %cst_132 = arith.constant 1.000000e+00 : f32
    %590 = vector.broadcast %cst_132 : f32 to vector<8x64xf32>
    %591 = arith.addf %590, %589 : vector<8x64xf32>
    %592 = arith.divf %590, %591 : vector<8x64xf32>
    %c64_i32_133 = arith.constant 64 : i32
    %593 = tpu.dynamic_rotate %578 by %c64_i32_133 dim 1 : vector<8x128xf32>, i32 -> vector<8x128xf32>
    %594 = vector.extract_strided_slice %593 {offsets = [0, 0], sizes = [8, 64], strides = [1, 1]} : vector<8x128xf32> to vector<8x64xf32>
    %595 = math.tanh %594 : vector<8x64xf32>
    %596 = arith.mulf %586, %572 : vector<8x64xf32>
    %597 = arith.mulf %584, %595 : vector<8x64xf32>
    %598 = arith.addf %596, %597 : vector<8x64xf32>
    %599 = math.tanh %598 : vector<8x64xf32>
    %600 = arith.mulf %592, %599 : vector<8x64xf32>
    %601 = vector.extract_strided_slice %4 {offsets = [56, 0], sizes = [8, 64], strides = [1, 1]} : vector<64x64xf32> to vector<8x64xf32>
    %602 = arith.mulf %601, %600 : vector<8x64xf32>
    %c56_134 = arith.constant 56 : index
    %c0_135 = arith.constant 0 : index
    %603 = vector.load %arg12[%c56_134, %c0_135] : memref<64x64xf32, #tpu.memory_space<vmem>>, vector<8x64xf32>
    tpu.vector_store %arg12[%c56_134, %c0_135], %602 {strides = array<i32>} : memref<64x64xf32, #tpu.memory_space<vmem>>, vector<8x64xf32>,
    %c0_136 = arith.constant 0 : index
    %c0_137 = arith.constant 0 : index
    %604 = vector.load %arg12[%c0_136, %c0_137] : memref<64x64xf32, #tpu.memory_space<vmem>>, vector<64x64xf32>
    %c0_138 = arith.constant 0 : index
    %c0_139 = arith.constant 0 : index
    %605 = vector.load %arg6[%c0_138, %c0_139] : memref<64x64xf32, #tpu.memory_space<vmem>>, vector<64x64xf32>
    %cst_140 = arith.constant dense<0.000000e+00> : vector<64x64xf32>
    %606 = tpu.matmul %604, %605, %cst_140 {dimension_numbers = #tpu.dot_dimension_numbers<[1], [0], [0], [1], [0, 0, 1, 1], [], []>} : vector<64x64xf32>, vector<64x64xf32>, vector<64x64xf32> -> vector<64x64xf32>
    %c0_141 = arith.constant 0 : index
    %c0_142 = arith.constant 0 : index
    %607 = vector.load %arg7[%c0_141, %c0_142] : memref<1x64xf32, #tpu.memory_space<vmem>>, vector<1x64xf32>
    %608 = vector.broadcast %607 : vector<1x64xf32> to vector<64x64xf32>
    %609 = arith.addf %606, %608 : vector<64x64xf32>
    %610 = math.tanh %609 : vector<64x64xf32>
    %c0_143 = arith.constant 0 : index
    %c0_144 = arith.constant 0 : index
    %611 = vector.load %arg8[%c0_143, %c0_144] : memref<64x1xf32, #tpu.memory_space<vmem>>, vector<64x1xf32>
    %cst_145 = arith.constant dense<0.000000e+00> : vector<64x1xf32>
    %612 = tpu.matmul %610, %611, %cst_145 {dimension_numbers = #tpu.dot_dimension_numbers<[1], [0], [0], [1], [0, 0, 1, 1], [], []>} : vector<64x64xf32>, vector<64x1xf32>, vector<64x1xf32> -> vector<64x1xf32>
    %613 = vector.shape_cast %612 : vector<64x1xf32> to vector<8x8x1xf32>
    %cst_146 = arith.constant dense<0xFF800000> : vector<8x1xf32>
    %614 = vector.multi_reduction <maximumf>, %613, %cst_146 [0] : vector<8x8x1xf32> to vector<8x1xf32>
    %615 = vector.shape_cast %614 : vector<8x1xf32> to vector<1x8x1xf32>
    %616 = vector.broadcast %615 : vector<1x8x1xf32> to vector<8x8x1xf32>
    %617 = arith.subf %613, %616 : vector<8x8x1xf32>
    %618 = math.exp %617 : vector<8x8x1xf32>
    %cst_147 = arith.constant dense<0.000000e+00> : vector<8x1xf32>
    %619 = vector.multi_reduction <add>, %618, %cst_147 [0] : vector<8x8x1xf32> to vector<8x1xf32>
    %620 = vector.shape_cast %619 : vector<8x1xf32> to vector<1x8x1xf32>
    %621 = vector.broadcast %620 : vector<1x8x1xf32> to vector<8x8x1xf32>
    %622 = arith.divf %618, %621 : vector<8x8x1xf32>
    %623 = vector.shape_cast %604 : vector<64x64xf32> to vector<8x8x64xf32>
    %624 = vector.broadcast %622 : vector<8x8x1xf32> to vector<8x8x64xf32>
    %625 = arith.mulf %623, %624 : vector<8x8x64xf32>
    %cst_148 = arith.constant dense<0.000000e+00> : vector<8x64xf32>
    %626 = vector.multi_reduction <add>, %625, %cst_148 [0] : vector<8x8x64xf32> to vector<8x64xf32>
    %c0_149 = arith.constant 0 : index
    %c0_150 = arith.constant 0 : index
    %627 = vector.load %arg9[%c0_149, %c0_150] : memref<64x1xf32, #tpu.memory_space<vmem>>, vector<64x1xf32>
    %cst_151 = arith.constant dense<0.000000e+00> : vector<8x1xf32>
    %628 = tpu.matmul %626, %627, %cst_151 {dimension_numbers = #tpu.dot_dimension_numbers<[1], [0], [0], [1], [0, 0, 1, 1], [], []>} : vector<8x64xf32>, vector<64x1xf32>, vector<8x1xf32> -> vector<8x1xf32>
    %c0_152 = arith.constant 0 : index
    %c0_153 = arith.constant 0 : index
    %629 = vector.load %arg10[%c0_152, %c0_153] : memref<1x1xf32, #tpu.memory_space<vmem>>, vector<1x1xf32>
    %630 = vector.broadcast %629 : vector<1x1xf32> to vector<8x1xf32>
    %631 = arith.addf %628, %630 : vector<8x1xf32>
    %c0_154 = arith.constant 0 : index
    %c0_155 = arith.constant 0 : index
    %632 = vector.load %arg11[%c0_154, %c0_155] : memref<8x1xf32, #tpu.memory_space<vmem>>, vector<8x1xf32>
    tpu.vector_store %arg11[%c0_154, %c0_155], %631 {strides = array<i32>} : memref<8x1xf32, #tpu.memory_space<vmem>>, vector<8x1xf32>,
    return
  }
}

</mosaic_0001>

<bundles_post_ra>
// kernel: tpu_custom_call.1
= control target key start
LH: loop header
LB: loop body
LE: loop exit
PB: predicated region body
PF: predicated region fallthrough
CT: control target
= control target key end

     0   :  { %s4352_s0 = inlined_call_operand.vmem [shape: f32[64,32], index: 0, kind: input, shape index: {}]   ;;  %s4353_s1 = inlined_call_operand.vmem [shape: f32[8,32], index: 1, kind: input, shape index: {}]   ;;  %s4354_s2 = inlined_call_operand.vmem [shape: f32[64,1], index: 2, kind: input, shape index: {}]   ;;  %s4355_s3 = inlined_call_operand.vmem [shape: f32[2,64,256], index: 3, kind: input, shape index: {}]   ;;  %s4356_s4 = inlined_call_operand.hbm [shape: f32[2,64,256], index: 4, kind: input, shape index: {}]   ;;  %s4357_s5 = inlined_call_operand.vmem [shape: f32[2,1,256], index: 5, kind: input, shape index: {}]   ;;  %s4358_s6 = inlined_call_operand.hbm [shape: f32[64,64], index: 6, kind: input, shape index: {}]   ;;  %s4359_s7 = inlined_call_operand.vmem [shape: f32[1,64], index: 7, kind: input, shape index: {}]   ;;  %s4360_s8 = inlined_call_operand.vmem [shape: f32[64,1], index: 8, kind: input, shape index: {}]   ;;  %s4361_s9 = inlined_call_operand.vmem [shape: f32[64,1], index: 9, kind: input, shape index: {}]   ;;  %s4362_s10 = inlined_call_operand.<no memory space> [shape: f32[1,1], index: 10, kind: input, shape index: {}]   ;;  %s4363_s11 = inlined_call_operand.vmem [shape: f32[8,1], index: 11, kind: output, shape index: {}]  }
   0x1   :  { %v16_v0 = vstv %s4362_s10 }
   0x2   :  { %17 = vst [vmem:[#allocation3] sm:$0x1] %v16_v0 }
   0x3   :  { %18 = vsyncpa [#allocation5], 0 }
   0x4   :  { %19 = vsyncpa [#allocation7], 0  ;;  %s3277_s19 = smov [#allocation4]  }
   0x5   :  { %s33_s20 = sshll.u32 %s3277_s19, 4  ;;  %s34_s20 = int_to_ptr.vmem [resolvable:$true] %s33_s20 }
   0x6   :  { %s3241_s21 = scalar_lea.vmem %s34_s20, 4096  ;;  %p3246_p1 = scmp.lt.s32.totalorder %s34_s20, %s34_s20 }
   0x7   :  { %p3242_p0 = scmp.ne.s32.totalorder %s34_s20, %s3241_s21  ;;  %p3247_p2 = scmp.lt.s32.totalorder %s3241_s21, %s3241_s21 }
   0x9   :  { %p3248_p3 = por %p3247_p2, %p3246_p1 }
   0xb   :  { %p3249_p4 = pnand %p3248_p3, %p3242_p0 }
   0xd   :  { %3252 = shalt.err (!%p3249_p4)
}
   0xe   :  { %s3278_s22 = smov 256   ;;  %s3279_s23 = smov 16  }
   0xf   :  { %39 = dma.hbm_to_vmem [thread:$0]  %s4356_s4, 4096, %s34_s20, [#allocation5], %s3278_s22, %s3278_s22, %s3279_s23  }
  0x10   :  { %s3280_s10 = smov [#allocation6]  }
  0x11   :  { %s47_s26 = sshll.u32 %s3280_s10, 4  ;;  %s48_s26 = int_to_ptr.vmem [resolvable:$true] %s47_s26 }
  0x12   :  { %s3261_s27 = scalar_lea.vmem %s48_s26, 1024  ;;  %p3266_p6 = scmp.lt.s32.totalorder %s48_s26, %s48_s26 }
  0x13   :  { %p3262_p5 = scmp.ne.s32.totalorder %s48_s26, %s3261_s27  ;;  %p3267_p7 = scmp.lt.s32.totalorder %s3261_s27, %s3261_s27 }
  0x15   :  { %p3268_p8 = por %p3267_p7, %p3266_p6 }
  0x17   :  { %p3269_p9 = pnand %p3268_p8, %p3262_p5 }
  0x19   :  { %3272 = shalt.err (!%p3269_p9)
}
  0x1a   :  { %s3281_s28 = smov 128   ;;  %s3282_s29 = smov 8  }
  0x1b   :  { %53 = dma.hbm_to_vmem [thread:$0]  %s4358_s6, 1024, %s48_s26, [#allocation7], %s3281_s28, %s3281_s28, %s3282_s29  }
  0x1c   :  { %3273 = dma.done.wait [#allocation5], 4096  }
  0x1d   :  { %3274 = vsyncadd [#allocation5], 4294963200 }
  0x1e   :  { %3275 = dma.done.wait [#allocation7], 1024  }
  0x1f   :  { %3276 = vsyncadd [#allocation7], 4294966272  ;;  %v3283_v1 = vmov 0.0   ;;  %v133_v2 = vld [vmem:[%s4355_s3 + $0x78] sm:$0xff]  ;;  %v132_v4 = vld [vmem:[%s4355_s3 + $0x70] sm:$0xff]  ;;  %vm147_vm0 = vcmask 261120   ;;  %v137_v45 = vlaneseq }
  0x20   :  { %215 = vmatprep.mubr.f32.mxu1 %v3283_v1  ;;  %467 = vmatprep.mubr.f32.mxu0 %v3283_v1  ;;  %v3361_v3 = vld [vmem:[#allocation4 + $0x78] sm:$0xff]  ;;  %v3367_v5 = vld [vmem:[#allocation4 + $0x70] sm:$0xff]  ;;  %v131_v6 = vld [vmem:[%s4355_s3 + $0x68] sm:$0xff]  ;;  %v3284_v43 = vmov 0   ;;  %s3285_s18 = smov 64   ;;  %vm399_vm1 = vcmask 523264  }
  0x21   :  { %175 = vmatprep.subr.mxu1 %v133_v2  ;;  %419 = vmatprep.subr.mxu0 %v3361_v3  ;;  %v3372_v7 = vld [vmem:[#allocation4 + $0x68] sm:$0xff]  ;;  %v130_v8 = vld [vmem:[%s4355_s3 + $0x60] sm:$0xff]  ;;  %v129_v10 = vld [vmem:[%s4355_s3 + $0x58] sm:$0xff]  ;;  %v3538_v46 = vshrl.u32 %v137_v45, 7  ;;  %vm2558_vm2 = vcmask 7168   ;;  %vm3286_vm3 = vmmov 0  }
  0x22   :  { %176 = vmatpush1.msra.mxu1 %v132_v4  ;;  %420 = vmatpush1.msra.mxu0 %v3367_v5  ;;  %v3378_v9 = vld [vmem:[#allocation4 + $0x60] sm:$0xff]  ;;  %v3384_v11 = vld [vmem:[#allocation4 + $0x58] sm:$0xff]  ;;  %v128_v12 = vld [vmem:[%s4355_s3 + $0x50] sm:$0xff] }
  0x23   :  { %177 = vmatprep.subr.mxu1 %v131_v6  ;;  %421 = vmatprep.subr.mxu0 %v3372_v7  ;;  %v3389_v13 = vld [vmem:[#allocation4 + $0x50] sm:$0xff]  ;;  %v127_v14 = vld [vmem:[%s4355_s3 + $0x48] sm:$0xff]  ;;  %v126_v16 = vld [vmem:[%s4355_s3 + $0x40] sm:$0xff]  ;;  %v139_v47 = vsub.s32 0, %v3538_v46  ;;  %v143_v49 = vsub.s32 1, %v3538_v46 }
  0x24   :  { %178 = vmatpush1.msra.mxu1 %v130_v8  ;;  %422 = vmatpush1.msra.mxu0 %v3378_v9  ;;  %v3395_v15 = vld [vmem:[#allocation4 + $0x48] sm:$0xff]  ;;  %v3401_v17 = vld [vmem:[#allocation4 + $0x40] sm:$0xff]  ;;  %v125_v19 = vld [vmem:[%s4355_s3 + $0x38] sm:$0xff] }
  0x25   :  { %179 = vmatprep.subr.mxu1 %v129_v10  ;;  %423 = vmatprep.subr.mxu0 %v3384_v11  ;;  %v134_v18 = vld [vmem:[%s4353_s1] sm:$0xff]  ;;  %v124_v21 = vld [vmem:[%s4355_s3 + $0x30] sm:$0xff]  ;;  %v123_v23 = vld [vmem:[%s4355_s3 + $0x28] sm:$0xff] }
  0x26   :  { %180 = vmatpush1.msra.mxu1 %v128_v12  ;;  %424 = vmatpush1.msra.mxu0 %v3389_v13  ;;  %v3411_v20 = vld [vmem:[#allocation4 + $0x38] sm:$0xff]  ;;  %v3417_v22 = vld [vmem:[#allocation4 + $0x30] sm:$0xff]  ;;  %v3423_v24 = vld [vmem:[#allocation4 + $0x28] sm:$0xff] }
  0x27   :  { %181 = vmatprep.subr.mxu1 %v127_v14  ;;  %425 = vmatprep.subr.mxu0 %v3395_v15  ;;  %v122_v25 = vld [vmem:[%s4355_s3 + $0x20] sm:$0xff]  ;;  %v121_v27 = vld [vmem:[%s4355_s3 + $0x18] sm:$0xff]  ;;  %v120_v29 = vld [vmem:[%s4355_s3 + $0x10] sm:$0xff] }
  0x28   :  { %182 = vmatpush1.msra.mxu1 %v126_v16  ;;  %426 = vmatpush1.msra.mxu0 %v3401_v17  ;;  %v3429_v26 = vld [vmem:[#allocation4 + $0x20] sm:$0xff]  ;;  %v3435_v28 = vld [vmem:[#allocation4 + $0x18] sm:$0xff]  ;;  %v3441_v30 = vld [vmem:[#allocation4 + $0x10] sm:$0xff] }
  0x29   :  { %2780 = vmatmul.mubr.msk.f32.vlgmr.msra.gmra.mxu1 %vm147_vm0, %v134_v18  ;;  %278 = vmatprep.subr.mxu1 %v125_v19  ;;  %v119_v31 = vld [vmem:[%s4355_s3 + $0x8] sm:$0xff]  ;;  %v118_v33 = vld [vmem:[%s4355_s3] sm:$0xff]  ;;  %v224_v37 = vld [vmem:[%s4352_s0 + $0x10] sm:$0xff] }
  0x2a   :  { %427 = vmatprep.subr.mxu0 %v3411_v20  ;;  %279 = vmatpush1.msra.mxu1 %v124_v21  ;;  %v3447_v32 = vld [vmem:[#allocation4 + $0x8] sm:$0xff]  ;;  %v3453_v34 = vld [vmem:[#allocation4] sm:$0xff]  ;;  %v225_v38 = vld [vmem:[%s4352_s0 + $0x18] sm:$0xff] }
  0x2b   :  { %428 = vmatpush1.msra.mxu0 %v3417_v22  ;;  %280 = vmatprep.subr.mxu1 %v123_v23  ;;  %v222_v35 = vld [vmem:[%s4352_s0] sm:$0xff]  ;;  %v223_v36 = vld [vmem:[%s4352_s0 + $0x8] sm:$0xff]  ;;  %v228_v41 = vld [vmem:[%s4352_s0 + $0x30] sm:$0xff] }
  0x2c   :  { %429 = vmatprep.subr.mxu0 %v3423_v24  ;;  %281 = vmatpush1.msra.mxu1 %v122_v25  ;;  %v226_v39 = vld [vmem:[%s4352_s0 + $0x20] sm:$0xff]  ;;  %v227_v40 = vld [vmem:[%s4352_s0 + $0x28] sm:$0xff]  ;;  %v229_v42 = vld [vmem:[%s4352_s0 + $0x38] sm:$0xff] }
  0x2d   :  { %430 = vmatpush1.msra.mxu0 %v3429_v26  ;;  %282 = vmatprep.subr.mxu1 %v121_v27  ;;  %v68_v44 = vld [vmem:[%s4354_s2] sm:$0xff] }
  0x2e   :  { %431 = vmatprep.subr.mxu0 %v3435_v28  ;;  %283 = vmatpush1.msra.mxu1 %v120_v29  ;;  %v135_v48 = vld [vmem:[%s4357_s5] sm:$0x3] }
  0x2f   :  { %432 = vmatpush1.msra.mxu0 %v3441_v30  ;;  %284 = vmatprep.subr.mxu1 %v119_v31  ;;  %v140_v51 = vrot.slane %v135_v48, %v139_v47  ;;  %v144_v52 = vrot.slane %v135_v48, %v143_v49 }
  0x30   :  { %433 = vmatprep.subr.mxu0 %v3447_v32  ;;  %285 = vmatpush1.msra.mxu1 %v118_v33 }
  0x31   :  { %318 = vmatprep.mubr.f32.mxu1 %v3283_v1  ;;  %434 = vmatpush1.msra.mxu0 %v3453_v34 }
  0x32   :  { %2781 = vmatmul.mubr.msk.f32.vlgmr.msra.gmra.mxu1 %vm147_vm0, %v222_v35  ;;  %468 = vmatmul.mubr.f32.vlgmr.msra.gmra.mxu0 %v3283_v1 }
  0x33   :  { %324 = vmatprep.mubr.f32.mxu1 %v3283_v1  ;;  %523 = vmatprep.subr.mxu0 %v3361_v3 }
  0x34   :  { %524 = vmatpush1.msra.mxu0 %v3367_v5  ;;  %571 = vmatprep.mubr.f32.mxu0 %v3283_v1 }
  0x35   :  { %525 = vmatprep.subr.mxu0 %v3372_v7  ;;  %628 = vmatprep.subr.mxu1 %v3361_v3 }
  0x36   :  { %2782 = vmatmul.mubr.msk.f32.gmra.mxu1 %vm147_vm0, %v223_v36  ;;  %526 = vmatpush1.msra.mxu0 %v3378_v9 }
  0x37   :  { %330 = vmatprep.mubr.f32.mxu1 %v3283_v1  ;;  %527 = vmatprep.subr.mxu0 %v3384_v11 }
  0x38   :  { %528 = vmatpush1.msra.mxu0 %v3389_v13  ;;  %629 = vmatpush1.msra.mxu1 %v3367_v5 }
  0x39   :  { %529 = vmatprep.subr.mxu0 %v3395_v15  ;;  %630 = vmatprep.subr.mxu1 %v3372_v7 }
  0x3a   :  { %2783 = vmatmul.mubr.msk.f32.gmra.mxu1 %vm147_vm0, %v224_v37  ;;  %530 = vmatpush1.msra.mxu0 %v3401_v17 }
  0x3b   :  { %336 = vmatprep.mubr.f32.mxu1 %v3283_v1  ;;  %531 = vmatprep.subr.mxu0 %v3411_v20 }
  0x3c   :  { %532 = vmatpush1.msra.mxu0 %v3417_v22  ;;  %631 = vmatpush1.msra.mxu1 %v3378_v9 }
  0x3d   :  { %533 = vmatprep.subr.mxu0 %v3423_v24  ;;  %632 = vmatprep.subr.mxu1 %v3384_v11 }
  0x3e   :  { %2784 = vmatmul.mubr.msk.f32.gmra.mxu1 %vm147_vm0, %v225_v38  ;;  %534 = vmatpush1.msra.mxu0 %v3429_v26 }
  0x3f   :  { %342 = vmatprep.mubr.f32.mxu1 %v3283_v1  ;;  %535 = vmatprep.subr.mxu0 %v3435_v28 }
  0x40   :  { %536 = vmatpush1.msra.mxu0 %v3441_v30  ;;  %633 = vmatpush1.msra.mxu1 %v3389_v13 }
  0x41   :  { %537 = vmatprep.subr.mxu0 %v3447_v32  ;;  %634 = vmatprep.subr.mxu1 %v3395_v15 }
  0x42   :  { %2785 = vmatmul.mubr.msk.f32.gmra.mxu1 %vm147_vm0, %v226_v39  ;;  %538 = vmatpush1.msra.mxu0 %v3453_v34 }
  0x43   :  { %348 = vmatprep.mubr.f32.mxu1 %v3283_v1  ;;  %635 = vmatpush1.msra.mxu1 %v3401_v17 }
  0x44   :  { %636 = vmatprep.subr.mxu1 %v3411_v20  ;;  %733 = vmatprep.subr.mxu0 %v3361_v3 }
  0x45   :  { %637 = vmatpush1.msra.mxu1 %v3417_v22  ;;  %3005 = vset.pattern.permute.xlu1 %v3284_v43 }
  0x46   :  { %2786 = vmatmul.mubr.msk.f32.gmra.mxu1 %vm147_vm0, %v227_v40  ;;  %638 = vmatprep.subr.mxu1 %v3423_v24 }
  0x47   :  { %354 = vmatprep.mubr.f32.mxu1 %v3283_v1  ;;  %639 = vmatpush1.msra.mxu1 %v3429_v26 }
  0x48   :  { %640 = vmatprep.subr.mxu1 %v3435_v28  ;;  %3006 = vset.pattern.permute.xlu0 %v3284_v43 }
  0x49   :  { %641 = vmatpush1.msra.mxu1 %v3441_v30  ;;  %78 = vperm.xlu1 %3005, %v68_v44  }
  0x4a   :  { %2787 = vmatmul.mubr.msk.f32.gmra.mxu1 %vm147_vm0, %v228_v41  ;;  %642 = vmatprep.subr.mxu1 %v3447_v32 }
  0x4b   :  { %360 = vmatprep.mubr.f32.mxu1 %v3283_v1  ;;  %643 = vmatpush1.msra.mxu1 %v3453_v34 }
  0x4c   :  { %838 = vmatprep.subr.mxu1 %v3361_v3 }
  0x4e   :  { %2788 = vmatmul.mubr.msk.f32.gmra.mxu1 %vm147_vm0, %v229_v42 }
  0x4f   :  { %676 = vmatprep.mubr.f32.mxu1 %v3283_v1 }
  0xe9   :  { %v217_v50 = vpop.f32.mrf.mxu1 }
  0xea   :  { %v3549_v54 = vadd.f32 %v217_v50, %v140_v51 }
  0xeb   :  { %v219_v53 = vpop.f32.mrf.mxu1 }
  0xec   :  { %v3551_v57 = vadd.f32 %v219_v53, %v144_v52 }
  0xf2   :  { %v320_v55 = vpop.f32.mrf.mxu1  ;;  %v469_v56 = vpop.f32.mrf.mxu0 }
  0xf3   :  { %v367_v58 = vadd.f32 %v320_v55, %v3549_v54 }
  0xf4   :  { %v322_v59 = vpop.f32.mrf.mxu1  ;;  %v471_v62 = vpop.f32.mrf.mxu0 }
  0xf5   :  { %v474_v60 = vadd.f32 %v469_v56, %v367_v58  ;;  %v368_v61 = vadd.f32 %v322_v59, %v3551_v57  ;;  %v3592_v56 = vpop.permute.xlu1 %78 }
  0xf6   :  { %v3555_v63 = vpop.f32.mrf.mxu1  ;;  %v111_v59 = vsub.f32 1.0, %v3592_v56 }
  0xf7   :  { %v2789_v0 = vmul.f32 -1.442695, %v474_v60  ;;  %v475_v2 = vadd.f32 %v471_v62, %v368_v61 }
  0xf8   :  { %v3557_v4 = vpop.f32.mrf.mxu1 }
  0xf9   :  { %3007 = vpow2.f32 %v2789_v0  ;;  %490 = vrot.lane.b32.xlu0 %v475_v2, %s3285_s18  ;;  %v2790_v43 = vmul.f32 -1.442695, %v475_v2  ;;  %v3596_v0 = vmul.f32 0.0, %v111_v59 }
  0xfa   :  { %v3560_v6 = vpop.f32.mrf.mxu1 }
  0xfc   :  { %v3562_v8 = vpop.f32.mrf.mxu1 }
  0xfe   :  { %v338_v10 = vpop.f32.mrf.mxu1 }
  0xff   :  { %v3565_v12 = vadd.f32 %v338_v10, %v3549_v54  ;;  %v369_v10 = vadd.f32 %v3555_v63, %v3549_v54 }
 0x100   :  { %v340_v14 = vpop.f32.mrf.mxu1 }
 0x101   :  { %v3568_v16 = vadd.f32 %v340_v14, %v3551_v57 }
 0x102   :  { %v344_v18 = vpop.f32.mrf.mxu1 }
 0x103   :  { %v3571_v19 = vadd.f32 %v344_v18, %v3549_v54  ;;  %v370_v18 = vadd.f32 %v3557_v4, %v3551_v57 }
 0x104   :  { %v346_v21 = vpop.f32.mrf.mxu1 }
 0x105   :  { %v3574_v23 = vadd.f32 %v346_v21, %v3551_v57 }
 0x106   :  { %v3008_v25 = vpop.eup %3007  ;;  %v350_v27 = vpop.f32.mrf.mxu1 }
 0x107   :  { %v479_v29 = vadd.f32 1.0, %v3008_v25  ;;  %v3577_v31 = vadd.f32 %v350_v27, %v3549_v54 }
 0x108   :  { %v352_v33 = vpop.f32.mrf.mxu1 }
 0x109   :  { %3009 = vrcp.f32 %v479_v29  ;;  %v3580_v35 = vadd.f32 %v352_v33, %v3551_v57  ;;  %v69_v33 = vld [vmem:[%s4354_s2 + $0x8] sm:$0xff] }
 0x10a   :  { %v356_v36 = vpop.f32.mrf.mxu1  ;;  %3011 = vpow2.f32 %v2790_v43 }
 0x10b   :  { %v3583_v37 = vadd.f32 %v356_v36, %v3549_v54 }
 0x10c   :  { %v358_v38 = vpop.f32.mrf.mxu1 }
 0x10d   :  { %v3586_v39 = vadd.f32 %v358_v38, %v3551_v57 }
 0x10e   :  { %v362_v40 = vpop.f32.mrf.mxu1 }
 0x10f   :  { %v3589_v41 = vadd.f32 %v362_v40, %v3549_v54 }
 0x116   :  { %v3010_v42 = vpop.eup %3009 }
 0x117   :  { %482 = vrot.lane.b32.xlu0 %v3010_v42, %s3285_s18  ;;  %v3012_v45 = vpop.eup %3011 }
 0x118   :  { %v487_v50 = vadd.f32 1.0, %v3012_v45 }
 0x16b   :  { %v491_v44 = vpop.permute.xlu0 %490 }
 0x16c   :  { %3013 = vtanh.f32 %v491_v44 }
 0x16d   :  { %3015 = vrcp.f32 %v487_v50 }
 0x179   :  { %v3014_v48 = vpop.eup %3013 }
 0x17a   :  { %v494_v52 = vmul.f32 %v3014_v48, %v3010_v42  ;;  %v3016_v58 = vpop.eup %3015 }
 0x189   :  { %v483_v51 = vpop.permute.xlu0 %482 }
 0x18a   :  { %v493_v53 = vmul.f32 0.0, %v483_v51 }
 0x18c   :  { %v495_v55 = vadd.f32 %v494_v52, %v493_v53 }
 0x18e   :  { %3017 = vtanh.f32 %v495_v55  ;;  %v501_v42 = vmul.f32 %v495_v55, %v3592_v56 }
 0x190   :  { %v502_v48 = vadd.f32 %v501_v42, %v3596_v0 }
 0x19b   :  { %v3018_v60 = vpop.eup %3017 }
 0x19c   :  { %v497_v61 = vmul.f32 %v3018_v60, %v3016_v58 }
 0x19e   :  { %v498_v62 = vmul.f32 %v497_v61, %v3592_v56 }
 0x1a0   :  { %v500_v2 = vadd.f32 %v3596_v0, %v498_v62  ;;  %503 = vst.msk [vmem:[#allocation2] sm:$0xff] %vm399_vm1, %v498_v62 }
 0x1a2   :  { %2791 = vmatmul.mubr.msk.f32.vlgmr.msra.gmra.mxu0 %vm399_vm1, %v500_v2 }
 0x1a3   :  { %734 = vmatpush1.msra.mxu0 %v3367_v5  ;;  %781 = vmatprep.mubr.f32.mxu0 %v3283_v1 }
 0x1a4   :  { %735 = vmatprep.subr.mxu0 %v3372_v7 }
 0x1a5   :  { %736 = vmatpush1.msra.mxu0 %v3378_v9 }
 0x1a6   :  { %737 = vmatprep.subr.mxu0 %v3384_v11 }
 0x1a7   :  { %738 = vmatpush1.msra.mxu0 %v3389_v13 }
 0x1a8   :  { %739 = vmatprep.subr.mxu0 %v3395_v15 }
 0x1a9   :  { %740 = vmatpush1.msra.mxu0 %v3401_v17 }
 0x1aa   :  { %741 = vmatprep.subr.mxu0 %v3411_v20 }
 0x1ab   :  { %742 = vmatpush1.msra.mxu0 %v3417_v22 }
 0x1ac   :  { %743 = vmatprep.subr.mxu0 %v3423_v24 }
 0x1ad   :  { %744 = vmatpush1.msra.mxu0 %v3429_v26 }
 0x1ae   :  { %745 = vmatprep.subr.mxu0 %v3435_v28 }
 0x1af   :  { %746 = vmatpush1.msra.mxu0 %v3441_v30 }
 0x1b0   :  { %747 = vmatprep.subr.mxu0 %v3447_v32 }
 0x1b1   :  { %748 = vmatpush1.msra.mxu0 %v3453_v34 }
 0x1b2   :  { %943 = vmatprep.subr.mxu0 %v3361_v3 }
 0x262   :  { %v573_v14 = vpop.f32.mrf.mxu0 }
 0x263   :  { %v578_v21 = vadd.f32 %v573_v14, %v369_v10 }
 0x264   :  { %v575_v25 = vpop.f32.mrf.mxu0 }
 0x265   :  { %v2792_v27 = vmul.f32 -1.442695, %v578_v21  ;;  %v579_v29 = vadd.f32 %v575_v25, %v370_v18 }
 0x267   :  { %3019 = vpow2.f32 %v2792_v27  ;;  %594 = vrot.lane.b32.xlu1 %v579_v29, %s3285_s18  ;;  %v2793_v40 = vmul.f32 -1.442695, %v579_v29  ;;  %v371_v27 = vadd.f32 %v3560_v6, %v3549_v54  ;;  %v71_v54 = vld [vmem:[%s4354_s2 + $0x18] sm:$0xff] }
 0x26b   :  { %83 = vperm.xlu1 %3005, %v69_v33   ;;  %v372_v33 = vadd.f32 %v3562_v8, %v3551_v57 }
 0x274   :  { %v3020_v36 = vpop.eup %3019 }
 0x275   :  { %v583_v38 = vadd.f32 1.0, %v3020_v36 }
 0x277   :  { %3021 = vrcp.f32 %v583_v38 }
 0x278   :  { %3023 = vpow2.f32 %v2793_v40 }
 0x284   :  { %v3022_v63 = vpop.eup %3021 }
 0x285   :  { %586 = vrot.lane.b32.xlu0 %v3022_v63, %s3285_s18  ;;  %v3024_v43 = vpop.eup %3023 }
 0x286   :  { %v591_v50 = vadd.f32 1.0, %v3024_v43 }
 0x2d9   :  { %v595_v4 = vpop.permute.xlu1 %594 }
 0x2da   :  { %3025 = vtanh.f32 %v595_v4  ;;  %v70_v4 = vld [vmem:[%s4354_s2 + $0x10] sm:$0xff] }
 0x2db   :  { %3027 = vrcp.f32 %v591_v50 }
 0x2e6   :  { %v3628_v45 = vpop.permute.xlu1 %83 }
 0x2e7   :  { %v3026_v44 = vpop.eup %3025  ;;  %v3632_v52 = vsub.f32 1.0, %v3628_v45 }
 0x2e8   :  { %v598_v58 = vmul.f32 %v3026_v44, %v3022_v63  ;;  %v3028_v62 = vpop.eup %3027 }
 0x2e9   :  { %v606_v55 = vmul.f32 %v502_v48, %v3632_v52  ;;  %v603_v18 = vmul.f32 %v500_v2, %v3632_v52  ;;  %v3657_v2 = vpop.f32.mrf.mxu1 }
 0x2f7   :  { %v587_v51 = vpop.permute.xlu0 %586 }
 0x2f8   :  { %v597_v53 = vmul.f32 %v587_v51, %v502_v48 }
 0x2fa   :  { %v599_v59 = vadd.f32 %v598_v58, %v597_v53 }
 0x2fc   :  { %3029 = vtanh.f32 %v599_v59  ;;  %v605_v60 = vmul.f32 %v599_v59, %v3628_v45 }
 0x2fe   :  { %v607_v61 = vadd.f32 %v606_v55, %v605_v60 }
 0x309   :  { %v3030_v10 = vpop.eup %3029 }
 0x30a   :  { %v601_v14 = vmul.f32 %v3030_v10, %v3028_v62 }
 0x30c   :  { %v602_v21 = vmul.f32 %v601_v14, %v3628_v45 }
 0x30e   :  { %v604_v25 = vadd.f32 %v603_v18, %v602_v21  ;;  %608 = vst.msk [vmem:[#allocation2 + $0x8] sm:$0xff] %vm399_vm1, %v602_v21 }
 0x310   :  { %2794 = vmatmul.mubr.msk.f32.vlgmr.msra.gmra.mxu1 %vm399_vm1, %v604_v25 }
 0x311   :  { %839 = vmatpush1.msra.mxu1 %v3367_v5  ;;  %886 = vmatprep.mubr.f32.mxu1 %v3283_v1 }
 0x312   :  { %840 = vmatprep.subr.mxu1 %v3372_v7 }
 0x313   :  { %841 = vmatpush1.msra.mxu1 %v3378_v9 }
 0x314   :  { %842 = vmatprep.subr.mxu1 %v3384_v11 }
 0x315   :  { %843 = vmatpush1.msra.mxu1 %v3389_v13 }
 0x316   :  { %844 = vmatprep.subr.mxu1 %v3395_v15 }
 0x317   :  { %845 = vmatpush1.msra.mxu1 %v3401_v17 }
 0x318   :  { %846 = vmatprep.subr.mxu1 %v3411_v20 }
 0x319   :  { %847 = vmatpush1.msra.mxu1 %v3417_v22 }
 0x31a   :  { %848 = vmatprep.subr.mxu1 %v3423_v24 }
 0x31b   :  { %849 = vmatpush1.msra.mxu1 %v3429_v26 }
 0x31c   :  { %850 = vmatprep.subr.mxu1 %v3435_v28 }
 0x31d   :  { %851 = vmatpush1.msra.mxu1 %v3441_v30 }
 0x31e   :  { %852 = vmatprep.subr.mxu1 %v3447_v32 }
 0x31f   :  { %853 = vmatpush1.msra.mxu1 %v3453_v34 }
 0x320   :  { %1048 = vmatprep.subr.mxu1 %v3361_v3 }
 0x3d0   :  { %v678_v29 = vpop.f32.mrf.mxu1 }
 0x3d1   :  { %v683_v36 = vadd.f32 %v678_v29, %v371_v27 }
 0x3d2   :  { %v680_v38 = vpop.f32.mrf.mxu1 }
 0x3d3   :  { %v2795_v63 = vmul.f32 -1.442695, %v683_v36  ;;  %v684_v40 = vadd.f32 %v680_v38, %v372_v33 }
 0x3d5   :  { %3031 = vpow2.f32 %v2795_v63  ;;  %699 = vrot.lane.b32.xlu0 %v684_v40, %s3285_s18  ;;  %v2796_v43 = vmul.f32 -1.442695, %v684_v40 }
 0x3d9   :  { %88 = vperm.xlu0 %3006, %v70_v4  }
 0x3dd   :  { %93 = vperm.xlu0 %3006, %v71_v54  }
 0x3e2   :  { %v3032_v6 = vpop.eup %3031 }
 0x3e3   :  { %v688_v42 = vadd.f32 1.0, %v3032_v6 }
 0x3e5   :  { %3033 = vrcp.f32 %v688_v42 }
 0x3e6   :  { %3035 = vpow2.f32 %v2796_v43 }
 0x3f2   :  { %v3034_v8 = vpop.eup %3033 }
 0x3f3   :  { %691 = vrot.lane.b32.xlu1 %v3034_v8, %s3285_s18  ;;  %v3036_v48 = vpop.eup %3035 }
 0x3f4   :  { %v696_v53 = vadd.f32 1.0, %v3036_v48 }
 0x447   :  { %v700_v44 = vpop.permute.xlu0 %699 }
 0x448   :  { %3037 = vtanh.f32 %v700_v44 }
 0x449   :  { %3039 = vrcp.f32 %v696_v53 }
 0x454   :  { %v3671_v51 = vpop.permute.xlu0 %88 }
 0x455   :  { %v3038_v50 = vpop.eup %3037  ;;  %v3674_v59 = vsub.f32 1.0, %v3671_v51 }
 0x456   :  { %v703_v55 = vmul.f32 %v3038_v50, %v3034_v8  ;;  %v3040_v21 = vpop.eup %3039 }
 0x457   :  { %v711_v14 = vmul.f32 %v607_v61, %v3674_v59  ;;  %v708_v36 = vmul.f32 %v604_v25, %v3674_v59 }
 0x465   :  { %v692_v58 = vpop.permute.xlu1 %691 }
 0x466   :  { %v702_v60 = vmul.f32 %v692_v58, %v607_v61  ;;  %v3706_v58 = vpop.permute.xlu0 %93 }
 0x468   :  { %v704_v62 = vadd.f32 %v703_v55, %v702_v60 }
 0x46a   :  { %3041 = vtanh.f32 %v704_v62  ;;  %v710_v10 = vmul.f32 %v704_v62, %v3671_v51  ;;  %v3709_v62 = vsub.f32 1.0, %v3706_v58 }
 0x46c   :  { %v3678_v18 = vadd.f32 %v711_v14, %v710_v10 }
 0x477   :  { %v3042_v27 = vpop.eup %3041 }
 0x478   :  { %v706_v29 = vmul.f32 %v3042_v27, %v3040_v21 }
 0x47a   :  { %v707_v33 = vmul.f32 %v706_v29, %v3671_v51 }
 0x47c   :  { %v709_v38 = vadd.f32 %v708_v36, %v707_v33  ;;  %713 = vst.msk [vmem:[#allocation2 + $0x10] sm:$0xff] %vm399_vm1, %v707_v33 }
 0x47e   :  { %2797 = vmatmul.mubr.msk.f32.vlgmr.msra.gmra.mxu0 %vm399_vm1, %v709_v38  ;;  %v813_v21 = vmul.f32 %v709_v38, %v3709_v62 }
 0x47f   :  { %944 = vmatpush1.msra.mxu0 %v3367_v5  ;;  %991 = vmatprep.mubr.f32.mxu0 %v3283_v1 }
 0x480   :  { %945 = vmatprep.subr.mxu0 %v3372_v7 }
 0x481   :  { %946 = vmatpush1.msra.mxu0 %v3378_v9 }
 0x482   :  { %947 = vmatprep.subr.mxu0 %v3384_v11 }
 0x483   :  { %948 = vmatpush1.msra.mxu0 %v3389_v13 }
 0x484   :  { %949 = vmatprep.subr.mxu0 %v3395_v15 }
 0x485   :  { %950 = vmatpush1.msra.mxu0 %v3401_v17 }
 0x486   :  { %951 = vmatprep.subr.mxu0 %v3411_v20 }
 0x487   :  { %952 = vmatpush1.msra.mxu0 %v3417_v22 }
 0x488   :  { %953 = vmatprep.subr.mxu0 %v3423_v24 }
 0x489   :  { %954 = vmatpush1.msra.mxu0 %v3429_v26 }
 0x48a   :  { %955 = vmatprep.subr.mxu0 %v3435_v28 }
 0x48b   :  { %956 = vmatpush1.msra.mxu0 %v3441_v30 }
 0x48c   :  { %957 = vmatprep.subr.mxu0 %v3447_v32 }
 0x48d   :  { %958 = vmatpush1.msra.mxu0 %v3453_v34 }
 0x48e   :  { %1153 = vmatprep.subr.mxu0 %v3361_v3 }
 0x53e   :  { %v783_v61 = vpop.f32.mrf.mxu0 }
 0x53f   :  { %v788_v25 = vadd.f32 %v783_v61, %v3565_v12 }
 0x540   :  { %v785_v63 = vpop.f32.mrf.mxu0 }
 0x541   :  { %v2798_v40 = vmul.f32 -1.442695, %v788_v25  ;;  %v789_v4 = vadd.f32 %v785_v63, %v3568_v16  ;;  %v72_v25 = vld [vmem:[%s4354_s2 + $0x20] sm:$0xff] }
 0x543   :  { %3043 = vpow2.f32 %v2798_v40  ;;  %804 = vrot.lane.b32.xlu1 %v789_v4, %s3285_s18  ;;  %v2799_v8 = vmul.f32 -1.442695, %v789_v4 }
 0x550   :  { %v3044_v54 = vpop.eup %3043 }
 0x551   :  { %v793_v6 = vadd.f32 1.0, %v3044_v54 }
 0x553   :  { %3045 = vrcp.f32 %v793_v6 }
 0x554   :  { %3047 = vpow2.f32 %v2799_v8 }
 0x560   :  { %v3046_v42 = vpop.eup %3045 }
 0x561   :  { %796 = vrot.lane.b32.xlu1 %v3046_v42, %s3285_s18  ;;  %v3048_v3 = vpop.eup %3047 }
 0x562   :  { %v801_v12 = vadd.f32 1.0, %v3048_v3 }
 0x5b5   :  { %v805_v43 = vpop.permute.xlu1 %804 }
 0x5b6   :  { %3049 = vtanh.f32 %v805_v43 }
 0x5b7   :  { %3051 = vrcp.f32 %v801_v12 }
 0x5c3   :  { %v3050_v44 = vpop.eup %3049 }
 0x5c4   :  { %v808_v50 = vmul.f32 %v3050_v44, %v3046_v42  ;;  %v3052_v60 = vpop.eup %3051  ;;  %v816_v42 = vmul.f32 %v3678_v18, %v3709_v62 }
 0x5d3   :  { %v797_v48 = vpop.permute.xlu1 %796 }
 0x5d4   :  { %v807_v16 = vmul.f32 %v797_v48, %v3678_v18 }
 0x5d6   :  { %v809_v53 = vadd.f32 %v808_v50, %v807_v16 }
 0x5d8   :  { %3053 = vtanh.f32 %v809_v53 }
 0x5e5   :  { %v3054_v55 = vpop.eup %3053 }
 0x5e6   :  { %v811_v10 = vmul.f32 %v3054_v55, %v3052_v60 }
 0x5e8   :  { %v812_v14 = vmul.f32 %v811_v10, %v3706_v58 }
 0x5ea   :  { %v814_v27 = vadd.f32 %v813_v21, %v812_v14  ;;  %818 = vst.msk [vmem:[#allocation2 + $0x18] sm:$0xff] %vm399_vm1, %v812_v14 }
 0x5ec   :  { %2800 = vmatmul.mubr.msk.f32.vlgmr.msra.gmra.mxu1 %vm399_vm1, %v814_v27 }
 0x5ed   :  { %1049 = vmatpush1.msra.mxu1 %v3367_v5  ;;  %1096 = vmatprep.mubr.f32.mxu1 %v3283_v1 }
 0x5ee   :  { %1050 = vmatprep.subr.mxu1 %v3372_v7 }
 0x5ef   :  { %1051 = vmatpush1.msra.mxu1 %v3378_v9 }
 0x5f0   :  { %1052 = vmatprep.subr.mxu1 %v3384_v11 }
 0x5f1   :  { %1053 = vmatpush1.msra.mxu1 %v3389_v13 }
 0x5f2   :  { %1054 = vmatprep.subr.mxu1 %v3395_v15 }
 0x5f3   :  { %1055 = vmatpush1.msra.mxu1 %v3401_v17 }
 0x5f4   :  { %1056 = vmatprep.subr.mxu1 %v3411_v20 }
 0x5f5   :  { %1057 = vmatpush1.msra.mxu1 %v3417_v22 }
 0x5f6   :  { %1058 = vmatprep.subr.mxu1 %v3423_v24 }
 0x5f7   :  { %1059 = vmatpush1.msra.mxu1 %v3429_v26 }
 0x5f8   :  { %1060 = vmatprep.subr.mxu1 %v3435_v28 }
 0x5f9   :  { %1061 = vmatpush1.msra.mxu1 %v3441_v30 }
 0x5fa   :  { %1062 = vmatprep.subr.mxu1 %v3447_v32 }
 0x5fb   :  { %1063 = vmatpush1.msra.mxu1 %v3453_v34 }
 0x6ac   :  { %v888_v29 = vpop.f32.mrf.mxu1 }
 0x6ad   :  { %v893_v33 = vadd.f32 %v888_v29, %v3571_v19 }
 0x6ae   :  { %v890_v36 = vpop.f32.mrf.mxu1 }
 0x6af   :  { %v2801_v38 = vmul.f32 -1.442695, %v893_v33  ;;  %v894_v61 = vadd.f32 %v890_v36, %v3574_v23  ;;  %v815_v23 = vmul.f32 %v809_v53, %v3706_v58 }
 0x6b1   :  { %3055 = vpow2.f32 %v2801_v38  ;;  %909 = vrot.lane.b32.xlu1 %v894_v61, %s3285_s18  ;;  %v2802_v54 = vmul.f32 -1.442695, %v894_v61  ;;  %v817_v3 = vadd.f32 %v816_v42, %v815_v23 }
 0x6b5   :  { %98 = vperm.xlu1 %3005, %v72_v25  }
 0x6be   :  { %v3056_v63 = vpop.eup %3055 }
 0x6bf   :  { %v898_v40 = vadd.f32 1.0, %v3056_v63 }
 0x6c1   :  { %3057 = vrcp.f32 %v898_v40 }
 0x6c2   :  { %3059 = vpow2.f32 %v2802_v54 }
 0x6ce   :  { %v3058_v4 = vpop.eup %3057 }
 0x6cf   :  { %901 = vrot.lane.b32.xlu0 %v3058_v4, %s3285_s18  ;;  %v3060_v6 = vpop.eup %3059 }
 0x6d0   :  { %v906_v44 = vadd.f32 1.0, %v3060_v6 }
 0x723   :  { %v910_v19 = vpop.permute.xlu1 %909 }
 0x724   :  { %3061 = vtanh.f32 %v910_v19 }
 0x725   :  { %3063 = vrcp.f32 %v906_v44  ;;  %v2825_v44 = vld [vmem:[%s4355_s3 + $0xe8] sm:$0xff] }
 0x730   :  { %v3741_v43 = vpop.permute.xlu1 %98 }
 0x731   :  { %v3062_v8 = vpop.eup %3061  ;;  %v3744_v48 = vsub.f32 1.0, %v3741_v43 }
 0x732   :  { %v913_v16 = vmul.f32 %v3062_v8, %v3058_v4  ;;  %v3064_v18 = vpop.eup %3063 }
 0x733   :  { %v921_v55 = vmul.f32 %v817_v3, %v3744_v48  ;;  %v918_v33 = vmul.f32 %v814_v27, %v3744_v48 }
 0x741   :  { %v902_v12 = vpop.permute.xlu0 %901 }
 0x742   :  { %v912_v50 = vmul.f32 %v902_v12, %v817_v3  ;;  %v2826_v3 = vld [vmem:[%s4355_s3 + $0xf0] sm:$0xff]  ;;  %v2824_v12 = vld [vmem:[%s4355_s3 + $0xe0] sm:$0xff] }
 0x744   :  { %v914_v60 = vadd.f32 %v913_v16, %v912_v50  ;;  %v2823_v50 = vld [vmem:[%s4355_s3 + $0xd8] sm:$0xff]  ;;  %v2822_v16 = vld [vmem:[%s4355_s3 + $0xd0] sm:$0xff] }
 0x746   :  { %3065 = vtanh.f32 %v914_v60  ;;  %v920_v53 = vmul.f32 %v914_v60, %v3741_v43  ;;  %v2821_v60 = vld [vmem:[%s4355_s3 + $0xc8] sm:$0xff] }
 0x748   :  { %v922_v10 = vadd.f32 %v921_v55, %v920_v53  ;;  %v2820_v53 = vld [vmem:[%s4355_s3 + $0xc0] sm:$0xff]  ;;  %v2819_v55 = vld [vmem:[%s4355_s3 + $0xb8] sm:$0xff] }
 0x753   :  { %v3066_v14 = vpop.eup %3065 }
 0x754   :  { %v916_v21 = vmul.f32 %v3066_v14, %v3064_v18  ;;  %v2817_v18 = vld [vmem:[%s4355_s3 + $0xa8] sm:$0xff]  ;;  %v2816_v14 = vld [vmem:[%s4355_s3 + $0xa0] sm:$0xff] }
 0x756   :  { %v917_v29 = vmul.f32 %v916_v21, %v3741_v43  ;;  %v2815_v21 = vld [vmem:[%s4355_s3 + $0x98] sm:$0xff] }
 0x758   :  { %v919_v36 = vadd.f32 %v918_v33, %v917_v29  ;;  %923 = vst.msk [vmem:[#allocation2 + $0x20] sm:$0xff] %vm399_vm1, %v917_v29  ;;  %v2814_v29 = vld [vmem:[%s4355_s3 + $0x90] sm:$0xff]  ;;  %v2813_v33 = vld [vmem:[%s4355_s3 + $0x88] sm:$0xff] }
 0x75a   :  { %2803 = vmatmul.mubr.msk.f32.vlgmr.msra.gmra.mxu0 %vm399_vm1, %v919_v36 }
 0x75b   :  { %1154 = vmatpush1.msra.mxu0 %v3367_v5  ;;  %1201 = vmatprep.mubr.f32.mxu0 %v3283_v1 }
 0x75c   :  { %1155 = vmatprep.subr.mxu0 %v3372_v7 }
 0x75d   :  { %1156 = vmatpush1.msra.mxu0 %v3378_v9 }
 0x75e   :  { %1157 = vmatprep.subr.mxu0 %v3384_v11 }
 0x75f   :  { %1158 = vmatpush1.msra.mxu0 %v3389_v13 }
 0x760   :  { %1159 = vmatprep.subr.mxu0 %v3395_v15  ;;  %v73_v15 = vld [vmem:[%s4354_s2 + $0x28] sm:$0xff] }
 0x761   :  { %1160 = vmatpush1.msra.mxu0 %v3401_v17 }
 0x762   :  { %1161 = vmatprep.subr.mxu0 %v3411_v20 }
 0x763   :  { %1162 = vmatpush1.msra.mxu0 %v3417_v22  ;;  %v2827_v22 = vld [vmem:[%s4355_s3 + $0xf8] sm:$0xff] }
 0x764   :  { %1163 = vmatprep.subr.mxu0 %v3423_v24  ;;  %1317 = vmatprep.subr.mxu1 %v2827_v22 }
 0x765   :  { %1164 = vmatpush1.msra.mxu0 %v3429_v26 }
 0x766   :  { %1165 = vmatprep.subr.mxu0 %v3435_v28 }
 0x767   :  { %1166 = vmatpush1.msra.mxu0 %v3441_v30 }
 0x768   :  { %1167 = vmatprep.subr.mxu0 %v3447_v32 }
 0x769   :  { %1168 = vmatpush1.msra.mxu0 %v3453_v34 }
 0x81a   :  { %v993_v5 = vpop.f32.mrf.mxu0 }
 0x81b   :  { %v998_v7 = vadd.f32 %v993_v5, %v3577_v31  ;;  %v1239_v5 = vld [vmem:[#allocation2] sm:$0xff] }
 0x81c   :  { %v995_v9 = vpop.f32.mrf.mxu0 }
 0x81d   :  { %v2804_v11 = vmul.f32 -1.442695, %v998_v7  ;;  %v999_v13 = vadd.f32 %v995_v9, %v3580_v35  ;;  %v1240_v7 = vld [vmem:[#allocation2 + $0x8] sm:$0xff]  ;;  %v1241_v9 = vld [vmem:[#allocation2 + $0x10] sm:$0xff] }
 0x81f   :  { %3067 = vpow2.f32 %v2804_v11  ;;  %1014 = vrot.lane.b32.xlu0 %v999_v13, %s3285_s18  ;;  %v2805_v26 = vmul.f32 -1.442695, %v999_v13  ;;  %v1242_v11 = vld [vmem:[#allocation2 + $0x18] sm:$0xff]  ;;  %v1243_v13 = vld [vmem:[#allocation2 + $0x20] sm:$0xff] }
 0x823   :  { %103 = vperm.xlu0 %3006, %v73_v15  }
 0x82c   :  { %v3068_v17 = vpop.eup %3067 }
 0x82d   :  { %v1003_v20 = vadd.f32 1.0, %v3068_v17 }
 0x82f   :  { %3069 = vrcp.f32 %v1003_v20 }
 0x830   :  { %3071 = vpow2.f32 %v2805_v26 }
 0x83c   :  { %v3070_v24 = vpop.eup %3069 }
 0x83d   :  { %1006 = vrot.lane.b32.xlu1 %v3070_v24, %s3285_s18  ;;  %v3072_v30 = vpop.eup %3071 }
 0x83e   :  { %v1011_v31 = vadd.f32 1.0, %v3072_v30 }
 0x891   :  { %v1015_v28 = vpop.permute.xlu0 %1014 }
 0x892   :  { %3073 = vtanh.f32 %v1015_v28  ;;  %v74_v28 = vld [vmem:[%s4354_s2 + $0x30] sm:$0xff] }
 0x893   :  { %3075 = vrcp.f32 %v1011_v31  ;;  %v3858_v31 = vld [vmem:[#allocation4 + $0xf8] sm:$0xff] }
 0x894   :  { %1447 = vmatprep.subr.mxu0 %v3858_v31 }
 0x89e   :  { %v3778_v34 = vpop.permute.xlu0 %103 }
 0x89f   :  { %v3074_v32 = vpop.eup %3073  ;;  %v3781_v27 = vsub.f32 1.0, %v3778_v34 }
 0x8a0   :  { %v1018_v61 = vmul.f32 %v3074_v32, %v3070_v24  ;;  %v3076_v54 = vpop.eup %3075 }
 0x8a1   :  { %v1026_v40 = vmul.f32 %v922_v10, %v3781_v27  ;;  %v1023_v42 = vmul.f32 %v919_v36, %v3781_v27  ;;  %v2812_v36 = vld [vmem:[%s4355_s3 + $0x80] sm:$0xff] }
 0x8af   :  { %v1007_v35 = vpop.permute.xlu1 %1006 }
 0x8b0   :  { %v1017_v38 = vmul.f32 %v1007_v35, %v922_v10  ;;  %v2818_v10 = vld [vmem:[%s4355_s3 + $0xb0] sm:$0xff] }
 0x8b1   :  { %v3865_v35 = vld [vmem:[#allocation4 + $0xe8] sm:$0xff] }
 0x8b2   :  { %v1019_v25 = vadd.f32 %v1018_v61, %v1017_v38  ;;  %v3868_v38 = vld [vmem:[#allocation4 + $0xe0] sm:$0xff]  ;;  %v3871_v61 = vld [vmem:[#allocation4 + $0xd8] sm:$0xff] }
 0x8b4   :  { %3077 = vtanh.f32 %v1019_v25  ;;  %v1025_v63 = vmul.f32 %v1019_v25, %v3778_v34  ;;  %v3874_v25 = vld [vmem:[#allocation4 + $0xd0] sm:$0xff] }
 0x8b6   :  { %v3785_v4 = vadd.f32 %v1026_v40, %v1025_v63  ;;  %v3877_v63 = vld [vmem:[#allocation4 + $0xc8] sm:$0xff]  ;;  %v3880_v40 = vld [vmem:[#allocation4 + $0xc0] sm:$0xff] }
 0x8c1   :  { %v3078_v19 = vpop.eup %3077 }
 0x8c2   :  { %v1021_v23 = vmul.f32 %v3078_v19, %v3076_v54  ;;  %v3883_v54 = vld [vmem:[#allocation4 + $0xb8] sm:$0xff]  ;;  %v3886_v19 = vld [vmem:[#allocation4 + $0xb0] sm:$0xff] }
 0x8c4   :  { %v1022_v6 = vmul.f32 %v1021_v23, %v3778_v34  ;;  %v3889_v23 = vld [vmem:[#allocation4 + $0xa8] sm:$0xff] }
 0x8c6   :  { %v3789_v8 = vadd.f32 %v1023_v42, %v1022_v6  ;;  %1028 = vst.msk [vmem:[#allocation2 + $0x28] sm:$0xff] %vm399_vm1, %v1022_v6  ;;  %v3892_v6 = vld [vmem:[#allocation4 + $0xa0] sm:$0xff]  ;;  %v3895_v42 = vld [vmem:[#allocation4 + $0x98] sm:$0xff] }
 0x8c8   :  { %2806 = vmatmul.mubr.msk.f32.vlgmr.msra.gmra.mxu1 %vm399_vm1, %v3789_v8 }
 0x8c9   :  { %1318 = vmatpush1.msra.mxu1 %v2826_v3  ;;  %1365 = vmatprep.mubr.f32.mxu1 %v3283_v1  ;;  %v3898_v3 = vld [vmem:[#allocation4 + $0x90] sm:$0xff] }
 0x8ca   :  { %1319 = vmatprep.subr.mxu1 %v2825_v44  ;;  %v3901_v44 = vld [vmem:[#allocation4 + $0x88] sm:$0xff] }
 0x8cb   :  { %1320 = vmatpush1.msra.mxu1 %v2824_v12  ;;  %v3904_v12 = vld [vmem:[#allocation4 + $0x80] sm:$0xff] }
 0x8cc   :  { %1321 = vmatprep.subr.mxu1 %v2823_v50 }
 0x8cd   :  { %1322 = vmatpush1.msra.mxu1 %v2822_v16  ;;  %v1244_v15 = vld [vmem:[#allocation2 + $0x28] sm:$0xff] }
 0x8ce   :  { %1323 = vmatprep.subr.mxu1 %v2821_v60 }
 0x8cf   :  { %1324 = vmatpush1.msra.mxu1 %v2820_v53 }
 0x8d0   :  { %1325 = vmatprep.subr.mxu1 %v2819_v55 }
 0x8d1   :  { %1326 = vmatpush1.msra.mxu1 %v2818_v10 }
 0x8d2   :  { %1327 = vmatprep.subr.mxu1 %v2817_v18 }
 0x8d3   :  { %1328 = vmatpush1.msra.mxu1 %v2816_v14 }
 0x8d4   :  { %1329 = vmatprep.subr.mxu1 %v2815_v21 }
 0x8d5   :  { %1330 = vmatpush1.msra.mxu1 %v2814_v29 }
 0x8d6   :  { %1331 = vmatprep.subr.mxu1 %v2813_v33 }
 0x8d7   :  { %1332 = vmatpush1.msra.mxu1 %v2812_v36 }
 0x8d8   :  { %2829 = vmatmul.mubr.msk.f32.vlgmr.msra.gmra.mxu1 %vm399_vm1, %v1239_v5  ;;  %1655 = vmatprep.subr.mxu1 %v3858_v31 }
 0x8d9   :  { %1371 = vmatprep.mubr.f32.mxu1 %v3283_v1 }
 0x8dc   :  { %2830 = vmatmul.mubr.msk.f32.gmra.mxu1 %vm399_vm1, %v1240_v7 }
 0x8dd   :  { %1377 = vmatprep.mubr.f32.mxu1 %v3283_v1 }
 0x8e0   :  { %2831 = vmatmul.mubr.msk.f32.gmra.mxu1 %vm399_vm1, %v1241_v9 }
 0x8e1   :  { %1383 = vmatprep.mubr.f32.mxu1 %v3283_v1 }
 0x8e4   :  { %2832 = vmatmul.mubr.msk.f32.gmra.mxu1 %vm399_vm1, %v1242_v11 }
 0x8e5   :  { %1389 = vmatprep.mubr.f32.mxu1 %v3283_v1 }
 0x8e8   :  { %2833 = vmatmul.mubr.msk.f32.gmra.mxu1 %vm399_vm1, %v1243_v13 }
 0x8e9   :  { %1395 = vmatprep.mubr.f32.mxu1 %v3283_v1 }
 0x8ec   :  { %2834 = vmatmul.mubr.msk.f32.gmra.mxu1 %vm399_vm1, %v1244_v15 }
 0x8ed   :  { %1401 = vmatprep.mubr.f32.mxu1 %v3283_v1 }
 0x988   :  { %v1098_v17 = vpop.f32.mrf.mxu1 }
 0x989   :  { %v1103_v20 = vadd.f32 %v1098_v17, %v3583_v37 }
 0x98a   :  { %v1100_v22 = vpop.f32.mrf.mxu1 }
 0x98b   :  { %v2807_v24 = vmul.f32 -1.442695, %v1103_v20  ;;  %v1104_v26 = vadd.f32 %v1100_v22, %v3586_v39  ;;  %v3863_v39 = vld [vmem:[#allocation4 + $0xf0] sm:$0xff] }
 0x98c   :  { %1656 = vmatpush1.msra.mxu1 %v3863_v39 }
 0x98d   :  { %3079 = vpow2.f32 %v2807_v24  ;;  %1119 = vrot.lane.b32.xlu1 %v1104_v26, %s3285_s18  ;;  %1657 = vmatprep.subr.mxu1 %v3865_v35  ;;  %v2808_v50 = vmul.f32 -1.442695, %v1104_v26  ;;  %v2828_v26 = vld [vmem:[%s4357_s5 + $0x2] sm:$0x3] }
 0x98e   :  { %1658 = vmatpush1.msra.mxu1 %v3868_v38 }
 0x98f   :  { %1659 = vmatprep.subr.mxu1 %v3871_v61 }
 0x990   :  { %1660 = vmatpush1.msra.mxu1 %v3874_v25 }
 0x991   :  { %108 = vperm.xlu1 %3005, %v74_v28   ;;  %1661 = vmatprep.subr.mxu1 %v3877_v63 }
 0x992   :  { %1662 = vmatpush1.msra.mxu1 %v3880_v40 }
 0x993   :  { %1663 = vmatprep.subr.mxu1 %v3883_v54 }
 0x994   :  { %1664 = vmatpush1.msra.mxu1 %v3886_v19 }
 0x995   :  { %1665 = vmatprep.subr.mxu1 %v3889_v23 }
 0x996   :  { %1666 = vmatpush1.msra.mxu1 %v3892_v6 }
 0x997   :  { %1667 = vmatprep.subr.mxu1 %v3895_v42 }
 0x998   :  { %1668 = vmatpush1.msra.mxu1 %v3898_v3  ;;  %v1367_v28 = vpop.f32.mrf.mxu1 }
 0x999   :  { %1669 = vmatprep.subr.mxu1 %v3901_v44 }
 0x99a   :  { %v3080_v30 = vpop.eup %3079  ;;  %1670 = vmatpush1.msra.mxu1 %v3904_v12 }
 0x99b   :  { %v1108_v32 = vadd.f32 1.0, %v3080_v30  ;;  %1865 = vmatprep.subr.mxu1 %v3858_v31  ;;  %v3968_v30 = vrot.slane %v2828_v26, %v139_v47  ;;  %v382_v47 = vadd.f32 %v3657_v2, %v3551_v57 }
 0x99d   :  { %3081 = vrcp.f32 %v1108_v32  ;;  %v3972_v32 = vrot.slane %v2828_v26, %v143_v49 }
 0x99e   :  { %3083 = vpow2.f32 %v2808_v50 }
 0x9aa   :  { %v3082_v37 = vpop.eup %3081 }
 0x9ab   :  { %1111 = vrot.lane.b32.xlu0 %v3082_v37, %s3285_s18  ;;  %v3084_v60 = vpop.eup %3083 }
 0x9ac   :  { %v1116_v10 = vadd.f32 1.0, %v3084_v60 }
 0x9ff   :  { %v1120_v16 = vpop.permute.xlu1 %1119 }
 0xa00   :  { %3085 = vtanh.f32 %v1120_v16  ;;  %v1368_v16 = vadd.f32 %v1367_v28, %v3968_v30 }
 0xa01   :  { %3087 = vrcp.f32 %v1116_v10 }
 0xa0c   :  { %v3909_v55 = vpop.permute.xlu1 %108 }
 0xa0d   :  { %v3086_v53 = vpop.eup %3085  ;;  %v3912_v14 = vsub.f32 1.0, %v3909_v55 }
 0xa0e   :  { %v1123_v29 = vmul.f32 %v3086_v53, %v3082_v37  ;;  %v3088_v9 = vpop.eup %3087  ;;  %v1369_v37 = vpop.f32.mrf.mxu1 }
 0xa0f   :  { %v1131_v5 = vmul.f32 %v3785_v4, %v3912_v14  ;;  %v1128_v17 = vmul.f32 %v3789_v8, %v3912_v14  ;;  %v1370_v60 = vadd.f32 %v1369_v37, %v3972_v32 }
 0xa1d   :  { %v1112_v18 = vpop.permute.xlu0 %1111 }
 0xa1e   :  { %v1122_v21 = vmul.f32 %v1112_v18, %v3785_v4 }
 0xa20   :  { %v1124_v33 = vadd.f32 %v1123_v29, %v1122_v21 }
 0xa22   :  { %3089 = vtanh.f32 %v1124_v33  ;;  %v1130_v36 = vmul.f32 %v1124_v33, %v3909_v55 }
 0xa24   :  { %v3918_v7 = vadd.f32 %v1131_v5, %v1130_v36 }
 0xa2f   :  { %v3090_v11 = vpop.eup %3089 }
 0xa30   :  { %v1126_v13 = vmul.f32 %v3090_v11, %v3088_v9  ;;  %v75_v9 = vld [vmem:[%s4354_s2 + $0x38] sm:$0xff] }
 0xa32   :  { %v1127_v15 = vmul.f32 %v1126_v13, %v3909_v55 }
 0xa34   :  { %v1129_v20 = vadd.f32 %v1128_v17, %v1127_v15  ;;  %1133 = vst.msk [vmem:[#allocation2 + $0x30] sm:$0xff] %vm399_vm1, %v1127_v15 }
 0xa36   :  { %2809 = vmatmul.mubr.msk.f32.vlgmr.msra.gmra.mxu0 %vm399_vm1, %v1129_v20 }
 0xa37   :  { %1448 = vmatpush1.msra.mxu0 %v3863_v39  ;;  %1495 = vmatprep.mubr.f32.mxu0 %v3283_v1 }
 0xa38   :  { %1449 = vmatprep.subr.mxu0 %v3865_v35 }
 0xa39   :  { %1450 = vmatpush1.msra.mxu0 %v3868_v38 }
 0xa3a   :  { %1451 = vmatprep.subr.mxu0 %v3871_v61 }
 0xa3b   :  { %1452 = vmatpush1.msra.mxu0 %v3874_v25  ;;  %v1245_v4 = vld [vmem:[#allocation2 + $0x30] sm:$0xff] }
 0xa3c   :  { %1453 = vmatprep.subr.mxu0 %v3877_v63  ;;  %2835 = vmatmul.mubr.msk.f32.gmra.mxu1 %vm399_vm1, %v1245_v4 }
 0xa3d   :  { %1454 = vmatpush1.msra.mxu0 %v3880_v40  ;;  %1407 = vmatprep.mubr.f32.mxu1 %v3283_v1 }
 0xa3e   :  { %1455 = vmatprep.subr.mxu0 %v3883_v54 }
 0xa3f   :  { %1456 = vmatpush1.msra.mxu0 %v3886_v19 }
 0xa40   :  { %1457 = vmatprep.subr.mxu0 %v3889_v23 }
 0xa41   :  { %1458 = vmatpush1.msra.mxu0 %v3892_v6 }
 0xa42   :  { %1459 = vmatprep.subr.mxu0 %v3895_v42 }
 0xa43   :  { %1460 = vmatpush1.msra.mxu0 %v3898_v3 }
 0xa44   :  { %1461 = vmatprep.subr.mxu0 %v3901_v44 }
 0xa45   :  { %1462 = vmatpush1.msra.mxu0 %v3904_v12 }
 0xa46   :  { %1496 = vmatmul.mubr.f32.vlgmr.msra.gmra.mxu0 %v3283_v1  ;;  %1550 = vmatprep.subr.mxu0 %v3858_v31 }
 0xa47   :  { %1551 = vmatpush1.msra.mxu0 %v3863_v39  ;;  %1598 = vmatprep.mubr.f32.mxu0 %v3283_v1 }
 0xa48   :  { %1552 = vmatprep.subr.mxu0 %v3865_v35 }
 0xa49   :  { %1553 = vmatpush1.msra.mxu0 %v3868_v38 }
 0xa4a   :  { %1554 = vmatprep.subr.mxu0 %v3871_v61 }
 0xa4b   :  { %1555 = vmatpush1.msra.mxu0 %v3874_v25 }
 0xa4c   :  { %1556 = vmatprep.subr.mxu0 %v3877_v63 }
 0xa4d   :  { %1557 = vmatpush1.msra.mxu0 %v3880_v40 }
 0xa4e   :  { %1558 = vmatprep.subr.mxu0 %v3883_v54 }
 0xa4f   :  { %1559 = vmatpush1.msra.mxu0 %v3886_v19 }
 0xa50   :  { %1560 = vmatprep.subr.mxu0 %v3889_v23 }
 0xa51   :  { %1561 = vmatpush1.msra.mxu0 %v3892_v6 }
 0xa52   :  { %1562 = vmatprep.subr.mxu0 %v3895_v42 }
 0xa53   :  { %1563 = vmatpush1.msra.mxu0 %v3898_v3 }
 0xa54   :  { %1564 = vmatprep.subr.mxu0 %v3901_v44 }
 0xa55   :  { %1565 = vmatpush1.msra.mxu0 %v3904_v12 }
 0xa56   :  { %1760 = vmatprep.subr.mxu0 %v3858_v31 }
 0xaf6   :  { %v1203_v8 = vpop.f32.mrf.mxu0 }
 0xaf7   :  { %v1208_v22 = vadd.f32 %v1203_v8, %v3589_v41 }
 0xaf8   :  { %v1205_v50 = vpop.f32.mrf.mxu0 }
 0xaf9   :  { %v2810_v24 = vmul.f32 -1.442695, %v1208_v22  ;;  %v1209_v46 = vadd.f32 %v1205_v50, %v382_v47 }
 0xafb   :  { %3091 = vpow2.f32 %v2810_v24  ;;  %v2811_v57 = vmul.f32 -1.442695, %v1209_v46 }
 0xb06   :  { %v1497_v41 = vpop.f32.mrf.mxu0 }
 0xb07   :  { %v1502_v53 = vadd.f32 %v1497_v41, %v1368_v16 }
 0xb08   :  { %v3092_v10 = vpop.eup %3091  ;;  %v1499_v18 = vpop.f32.mrf.mxu0 }
 0xb09   :  { %v1213_v21 = vadd.f32 1.0, %v3092_v10  ;;  %v2837_v29 = vmul.f32 -1.442695, %v1502_v53  ;;  %v1503_v33 = vadd.f32 %v1499_v18, %v1370_v60 }
 0xb0b   :  { %3093 = vrcp.f32 %v1213_v21  ;;  %1518 = vrot.lane.b32.xlu0 %v1503_v33, %s3285_s18  ;;  %v2838_v15 = vmul.f32 -1.442695, %v1503_v33 }
 0xb0c   :  { %3095 = vpow2.f32 %v2837_v29 }
 0xb0f   :  { %1224 = vrot.lane.b32.xlu0 %v1209_v46, %s3285_s18 }
 0xb18   :  { %v3094_v49 = vpop.eup %3093 }
 0xb19   :  { %v3096_v36 = vpop.eup %3095  ;;  %1216 = vrot.lane.b32.xlu0 %v3094_v49, %s3285_s18 }
 0xb1a   :  { %v1507_v5 = vadd.f32 1.0, %v3096_v36 }
 0xb1c   :  { %3097 = vrcp.f32 %v1507_v5 }
 0xb1d   :  { %1234 = vperm.xlu0 %3006, %v75_v9   ;;  %3099 = vpow2.f32 %v2811_v57  ;;  %v1373_v9 = vpop.f32.mrf.mxu1 }
 0xb1e   :  { %v1374_v57 = vadd.f32 %v1373_v9, %v3968_v30 }
 0xb29   :  { %v3098_v11 = vpop.eup %3097 }
 0xb2a   :  { %1510 = vrot.lane.b32.xlu1 %v3098_v11, %s3285_s18  ;;  %v3100_v17 = vpop.eup %3099 }
 0xb2b   :  { %v1221_v8 = vadd.f32 1.0, %v3100_v17 }
 0xb7d   :  { %v1519_v2 = vpop.permute.xlu0 %1518 }
 0xb81   :  { %v1225_v13 = vpop.permute.xlu0 %1224 }
 0xb82   :  { %3101 = vtanh.f32 %v1225_v13 }
 0xb83   :  { %3103 = vpow2.f32 %v2838_v15 }
 0xb84   :  { %3105 = vtanh.f32 %v1519_v2 }
 0xb85   :  { %3107 = vrcp.f32 %v1221_v8 }
 0xb8b   :  { %v1217_v20 = vpop.permute.xlu0 %1216 }
 0xb8c   :  { %v1227_v24 = vmul.f32 %v1217_v20, %v3918_v7 }
 0xb8f   :  { %v3102_v4 = vpop.eup %3101 }
 0xb90   :  { %v1228_v22 = vmul.f32 %v3102_v4, %v3094_v49  ;;  %v3104_v28 = vpop.eup %3103 }
 0xb91   :  { %v3106_v37 = vpop.eup %3105  ;;  %v1515_v50 = vadd.f32 1.0, %v3104_v28 }
 0xb92   :  { %v1229_v26 = vadd.f32 %v1228_v22, %v1227_v24  ;;  %v1522_v60 = vmul.f32 %v3106_v37, %v3098_v11  ;;  %v3108_v10 = vpop.eup %3107  ;;  %v1375_v11 = vpop.f32.mrf.mxu1 }
 0xb93   :  { %v1376_v13 = vadd.f32 %v1375_v11, %v3972_v32 }
 0xb94   :  { %3109 = vtanh.f32 %v1229_v26 }
 0xb95   :  { %3111 = vrcp.f32 %v1515_v50 }
 0xb98   :  { %v3986_v29 = vpop.permute.xlu0 %1234 }
 0xb9c   :  { %v1511_v16 = vpop.permute.xlu1 %1510 }
 0xb9d   :  { %v1521_v41 = vmul.f32 0.0, %v1511_v16 }
 0xb9f   :  { %v1523_v53 = vadd.f32 %v1522_v60, %v1521_v41 }
 0xba1   :  { %v3110_v18 = vpop.eup %3109  ;;  %3113 = vtanh.f32 %v1523_v53  ;;  %v1528_v37 = vmul.f32 %v1523_v53, %v3592_v56 }
 0xba2   :  { %v1231_v21 = vmul.f32 %v3110_v18, %v3108_v10  ;;  %v3112_v7 = vpop.eup %3111 }
 0xba3   :  { %v4019_v41 = vadd.f32 %v1528_v37, %v3596_v0 }
 0xba4   :  { %v1237_v33 = vmul.f32 %v3986_v29, %v1231_v21 }
 0xba6   :  { %1238 = vst.msk [vmem:[#allocation2 + $0x38] sm:$0xff] %vm399_vm1, %v1237_v33 }
 0xbad   :  { %v1246_v47 = vld [vmem:[#allocation2 + $0x38] sm:$0xff] }
 0xbae   :  { %v3114_v46 = vpop.eup %3113  ;;  %2836 = vmatmul.mubr.msk.f32.gmra.mxu1 %vm399_vm1, %v1246_v47 }
 0xbaf   :  { %v1525_v49 = vmul.f32 %v3114_v46, %v3112_v7  ;;  %1703 = vmatprep.mubr.f32.mxu1 %v3283_v1 }
 0xbb1   :  { %v1526_v36 = vmul.f32 %v1525_v49, %v3592_v56 }
 0xbb3   :  { %v1527_v5 = vadd.f32 %v1526_v36, %v3596_v0  ;;  %1530 = vst.msk [vmem:[#allocation2] sm:$0xff] %vm399_vm1, %v1526_v36  ;;  %v1379_v0 = vpop.f32.mrf.mxu1 }
 0xbb5   :  { %2839 = vmatmul.mubr.msk.f32.vlgmr.msra.gmra.mxu0 %vm399_vm1, %v1527_v5  ;;  %v1630_v49 = vmul.f32 %v1527_v5, %v3632_v52  ;;  %v1381_v36 = vpop.f32.mrf.mxu1 }
 0xbb6   :  { %1761 = vmatpush1.msra.mxu0 %v3863_v39  ;;  %1808 = vmatprep.mubr.f32.mxu0 %v3283_v1 }
 0xbb7   :  { %1762 = vmatprep.subr.mxu0 %v3865_v35  ;;  %v4046_v5 = vpop.f32.mrf.mxu1 }
 0xbb8   :  { %1763 = vmatpush1.msra.mxu0 %v3868_v38 }
 0xbb9   :  { %1764 = vmatprep.subr.mxu0 %v3871_v61  ;;  %v4048_v9 = vpop.f32.mrf.mxu1 }
 0xbba   :  { %1765 = vmatpush1.msra.mxu0 %v3874_v25 }
 0xbbb   :  { %1766 = vmatprep.subr.mxu0 %v3877_v63  ;;  %v4050_v11 = vpop.f32.mrf.mxu1 }
 0xbbc   :  { %1767 = vmatpush1.msra.mxu0 %v3880_v40 }
 0xbbd   :  { %1768 = vmatprep.subr.mxu0 %v3883_v54 }
 0xbbe   :  { %1769 = vmatpush1.msra.mxu0 %v3886_v19 }
 0xbbf   :  { %1770 = vmatprep.subr.mxu0 %v3889_v23 }
 0xbc0   :  { %1771 = vmatpush1.msra.mxu0 %v3892_v6 }
 0xbc1   :  { %1772 = vmatprep.subr.mxu0 %v3895_v42 }
 0xbc2   :  { %1773 = vmatpush1.msra.mxu0 %v3898_v3 }
 0xbc3   :  { %1774 = vmatprep.subr.mxu0 %v3901_v44 }
 0xbc4   :  { %1775 = vmatpush1.msra.mxu0 %v3904_v12 }
 0xbc5   :  { %1970 = vmatprep.subr.mxu0 %v3858_v31 }
 0xc75   :  { %v1600_v2 = vpop.f32.mrf.mxu0 }
 0xc76   :  { %v1605_v15 = vadd.f32 %v1600_v2, %v1374_v57  ;;  %v4052_v57 = vpop.f32.mrf.mxu1 }
 0xc77   :  { %v1602_v17 = vpop.f32.mrf.mxu0 }
 0xc78   :  { %v2840_v20 = vmul.f32 -1.442695, %v1605_v15  ;;  %v1606_v4 = vadd.f32 %v1602_v17, %v1376_v13  ;;  %v4054_v2 = vpop.f32.mrf.mxu1 }
 0xc7a   :  { %3115 = vpow2.f32 %v2840_v20  ;;  %1621 = vrot.lane.b32.xlu1 %v1606_v4, %s3285_s18  ;;  %v2841_v26 = vmul.f32 -1.442695, %v1606_v4  ;;  %v4056_v13 = vpop.f32.mrf.mxu1 }
 0xc7c   :  { %v4058_v15 = vpop.f32.mrf.mxu1 }
 0xc7e   :  { %v4060_v17 = vpop.f32.mrf.mxu1 }
 0xc80   :  { %v4062_v20 = vpop.f32.mrf.mxu1 }
 0xc82   :  { %v4064_v4 = vpop.f32.mrf.mxu1 }
 0xc87   :  { %v3116_v8 = vpop.eup %3115 }
 0xc88   :  { %v1610_v22 = vadd.f32 1.0, %v3116_v8  ;;  %v1380_v8 = vadd.f32 %v1379_v0, %v3968_v30 }
 0xc8a   :  { %3117 = vrcp.f32 %v1610_v22 }
 0xc8b   :  { %3119 = vpow2.f32 %v2841_v26 }
 0xc97   :  { %v3118_v24 = vpop.eup %3117 }
 0xc98   :  { %1613 = vrot.lane.b32.xlu1 %v3118_v24, %s3285_s18  ;;  %v3120_v50 = vpop.eup %3119 }
 0xc99   :  { %v1618_v60 = vadd.f32 1.0, %v3120_v50 }
 0xcec   :  { %v1622_v28 = vpop.permute.xlu1 %1621 }
 0xced   :  { %3121 = vtanh.f32 %v1622_v28 }
 0xcee   :  { %3123 = vrcp.f32 %v1618_v60 }
 0xcfa   :  { %v3122_v16 = vpop.eup %3121 }
 0xcfb   :  { %v1625_v18 = vmul.f32 %v3122_v16, %v3118_v24  ;;  %v3124_v7 = vpop.eup %3123  ;;  %v1382_v24 = vadd.f32 %v1381_v36, %v3972_v32 }
 0xd0a   :  { %v1614_v10 = vpop.permute.xlu1 %1613 }
 0xd0b   :  { %v1624_v21 = vmul.f32 %v1614_v10, %v4019_v41 }
 0xd0d   :  { %v1626_v33 = vadd.f32 %v1625_v18, %v1624_v21 }
 0xd0f   :  { %3125 = vtanh.f32 %v1626_v33 }
 0xd1c   :  { %v3126_v47 = vpop.eup %3125 }
 0xd1d   :  { %v1628_v46 = vmul.f32 %v3126_v47, %v3124_v7  ;;  %v1632_v7 = vmul.f32 %v1626_v33, %v3628_v45 }
 0xd1f   :  { %v1629_v56 = vmul.f32 %v1628_v46, %v3628_v45  ;;  %v1633_v46 = vmul.f32 %v4019_v41, %v3632_v52  ;;  %v1386_v52 = vadd.f32 %v4046_v5, %v3968_v30 }
 0xd21   :  { %v4024_v53 = vadd.f32 %v1630_v49, %v1629_v56  ;;  %1635 = vst.msk [vmem:[#allocation2 + $0x8] sm:$0xff] %vm399_vm1, %v1629_v56  ;;  %v1634_v56 = vadd.f32 %v1633_v46, %v1632_v7 }
 0xd23   :  { %2842 = vmatmul.mubr.msk.f32.vlgmr.msra.gmra.mxu1 %vm399_vm1, %v4024_v53  ;;  %v1735_v45 = vmul.f32 %v4024_v53, %v3674_v59  ;;  %v1388_v53 = vadd.f32 %v4048_v9, %v3972_v32 }
 0xd24   :  { %1866 = vmatpush1.msra.mxu1 %v3863_v39  ;;  %1913 = vmatprep.mubr.f32.mxu1 %v3283_v1 }
 0xd25   :  { %1867 = vmatprep.subr.mxu1 %v3865_v35 }
 0xd26   :  { %1868 = vmatpush1.msra.mxu1 %v3868_v38 }
 0xd27   :  { %1869 = vmatprep.subr.mxu1 %v3871_v61 }
 0xd28   :  { %1870 = vmatpush1.msra.mxu1 %v3874_v25 }
 0xd29   :  { %1871 = vmatprep.subr.mxu1 %v3877_v63 }
 0xd2a   :  { %1872 = vmatpush1.msra.mxu1 %v3880_v40 }
 0xd2b   :  { %1873 = vmatprep.subr.mxu1 %v3883_v54 }
 0xd2c   :  { %1874 = vmatpush1.msra.mxu1 %v3886_v19 }
 0xd2d   :  { %1875 = vmatprep.subr.mxu1 %v3889_v23 }
 0xd2e   :  { %1876 = vmatpush1.msra.mxu1 %v3892_v6 }
 0xd2f   :  { %1877 = vmatprep.subr.mxu1 %v3895_v42 }
 0xd30   :  { %1878 = vmatpush1.msra.mxu1 %v3898_v3 }
 0xd31   :  { %1879 = vmatprep.subr.mxu1 %v3901_v44 }
 0xd32   :  { %1880 = vmatpush1.msra.mxu1 %v3904_v12 }
 0xd33   :  { %2075 = vmatprep.subr.mxu1 %v3858_v31 }
 0xde3   :  { %v1705_v22 = vpop.f32.mrf.mxu1 }
 0xde4   :  { %v1710_v26 = vadd.f32 %v1705_v22, %v1380_v8 }
 0xde5   :  { %v1707_v28 = vpop.f32.mrf.mxu1 }
 0xde6   :  { %v2843_v37 = vmul.f32 -1.442695, %v1710_v26  ;;  %v1711_v50 = vadd.f32 %v1707_v28, %v1382_v24 }
 0xde8   :  { %3127 = vpow2.f32 %v2843_v37  ;;  %1726 = vrot.lane.b32.xlu1 %v1711_v50, %s3285_s18  ;;  %v2844_v18 = vmul.f32 -1.442695, %v1711_v50 }
 0xdf5   :  { %v3128_v16 = vpop.eup %3127 }
 0xdf6   :  { %v1715_v60 = vadd.f32 1.0, %v3128_v16 }
 0xdf8   :  { %3129 = vrcp.f32 %v1715_v60 }
 0xdf9   :  { %3131 = vpow2.f32 %v2844_v18 }
 0xe05   :  { %v3130_v10 = vpop.eup %3129 }
 0xe06   :  { %1718 = vrot.lane.b32.xlu0 %v3130_v10, %s3285_s18  ;;  %v3132_v47 = vpop.eup %3131 }
 0xe07   :  { %v1723_v0 = vadd.f32 1.0, %v3132_v47 }
 0xe5a   :  { %v1727_v21 = vpop.permute.xlu1 %1726 }
 0xe5b   :  { %3133 = vtanh.f32 %v1727_v21 }
 0xe5c   :  { %3135 = vrcp.f32 %v1723_v0 }
 0xe68   :  { %v3134_v49 = vpop.eup %3133 }
 0xe69   :  { %v1730_v22 = vmul.f32 %v3134_v49, %v3130_v10  ;;  %v3136_v26 = vpop.eup %3135  ;;  %v1738_v49 = vmul.f32 %v1634_v56, %v3674_v59  ;;  %v1392_v59 = vadd.f32 %v4050_v11, %v3968_v30 }
 0xe78   :  { %v1719_v36 = vpop.permute.xlu0 %1718 }
 0xe79   :  { %v1729_v8 = vmul.f32 %v1719_v36, %v1634_v56 }
 0xe7b   :  { %v1731_v24 = vadd.f32 %v1730_v22, %v1729_v8 }
 0xe7d   :  { %3137 = vtanh.f32 %v1731_v24  ;;  %v1737_v5 = vmul.f32 %v1731_v24, %v3671_v51  ;;  %v1394_v24 = vadd.f32 %v4052_v57, %v3972_v32 }
 0xe7f   :  { %v1739_v36 = vadd.f32 %v1738_v49, %v1737_v5 }
 0xe8a   :  { %v3138_v28 = vpop.eup %3137 }
 0xe8b   :  { %v1733_v37 = vmul.f32 %v3138_v28, %v3136_v26 }
 0xe8d   :  { %v1734_v50 = vmul.f32 %v1733_v37, %v3671_v51 }
 0xe8f   :  { %v1736_v33 = vadd.f32 %v1735_v45, %v1734_v50  ;;  %1740 = vst.msk [vmem:[#allocation2 + $0x10] sm:$0xff] %vm399_vm1, %v1734_v50 }
 0xe91   :  { %2845 = vmatmul.mubr.msk.f32.vlgmr.msra.gmra.mxu0 %vm399_vm1, %v1736_v33 }
 0xe92   :  { %1971 = vmatpush1.msra.mxu0 %v3863_v39  ;;  %2018 = vmatprep.mubr.f32.mxu0 %v3283_v1 }
 0xe93   :  { %1972 = vmatprep.subr.mxu0 %v3865_v35 }
 0xe94   :  { %1973 = vmatpush1.msra.mxu0 %v3868_v38 }
 0xe95   :  { %1974 = vmatprep.subr.mxu0 %v3871_v61 }
 0xe96   :  { %1975 = vmatpush1.msra.mxu0 %v3874_v25 }
 0xe97   :  { %1976 = vmatprep.subr.mxu0 %v3877_v63 }
 0xe98   :  { %1977 = vmatpush1.msra.mxu0 %v3880_v40 }
 0xe99   :  { %1978 = vmatprep.subr.mxu0 %v3883_v54 }
 0xe9a   :  { %1979 = vmatpush1.msra.mxu0 %v3886_v19 }
 0xe9b   :  { %1980 = vmatprep.subr.mxu0 %v3889_v23 }
 0xe9c   :  { %1981 = vmatpush1.msra.mxu0 %v3892_v6 }
 0xe9d   :  { %1982 = vmatprep.subr.mxu0 %v3895_v42 }
 0xe9e   :  { %1983 = vmatpush1.msra.mxu0 %v3898_v3 }
 0xe9f   :  { %1984 = vmatprep.subr.mxu0 %v3901_v44 }
 0xea0   :  { %1985 = vmatpush1.msra.mxu0 %v3904_v12 }
 0xea1   :  { %2180 = vmatprep.subr.mxu0 %v3858_v31 }
 0xf51   :  { %v1810_v41 = vpop.f32.mrf.mxu0 }
 0xf52   :  { %v1815_v16 = vadd.f32 %v1810_v41, %v1386_v52 }
 0xf53   :  { %v1812_v60 = vpop.f32.mrf.mxu0 }
 0xf54   :  { %v2846_v10 = vmul.f32 -1.442695, %v1815_v16  ;;  %v1816_v18 = vadd.f32 %v1812_v60, %v1388_v53  ;;  %v1840_v53 = vmul.f32 %v1736_v33, %v3709_v62 }
 0xf56   :  { %3139 = vpow2.f32 %v2846_v10  ;;  %1831 = vrot.lane.b32.xlu1 %v1816_v18, %s3285_s18  ;;  %v2847_v31 = vmul.f32 -1.442695, %v1816_v18 }
 0xf63   :  { %v3140_v21 = vpop.eup %3139 }
 0xf64   :  { %v1820_v7 = vadd.f32 1.0, %v3140_v21 }
 0xf66   :  { %3141 = vrcp.f32 %v1820_v7 }
 0xf67   :  { %3143 = vpow2.f32 %v2847_v31 }
 0xf73   :  { %v3142_v47 = vpop.eup %3141 }
 0xf74   :  { %1823 = vrot.lane.b32.xlu0 %v3142_v47, %s3285_s18  ;;  %v3144_v9 = vpop.eup %3143 }
 0xf75   :  { %v1828_v8 = vadd.f32 1.0, %v3144_v9 }
 0xfc8   :  { %v1832_v46 = vpop.permute.xlu1 %1831 }
 0xfc9   :  { %3145 = vtanh.f32 %v1832_v46  ;;  %v1843_v46 = vmul.f32 %v1739_v36, %v3709_v62  ;;  %v1398_v62 = vadd.f32 %v4054_v2, %v3968_v30 }
 0xfca   :  { %3147 = vrcp.f32 %v1828_v8 }
 0xfd6   :  { %v3146_v0 = vpop.eup %3145 }
 0xfd7   :  { %v1835_v28 = vmul.f32 %v3146_v0, %v3142_v47  ;;  %v3148_v50 = vpop.eup %3147 }
 0xfe6   :  { %v1824_v22 = vpop.permute.xlu0 %1823 }
 0xfe7   :  { %v1834_v26 = vmul.f32 %v1824_v22, %v1739_v36 }
 0xfe9   :  { %v1836_v37 = vadd.f32 %v1835_v28, %v1834_v26 }
 0xfeb   :  { %3149 = vtanh.f32 %v1836_v37  ;;  %v1842_v11 = vmul.f32 %v1836_v37, %v3706_v58 }
 0xfed   :  { %v1844_v9 = vadd.f32 %v1843_v46, %v1842_v11  ;;  %v2269_v11 = vld [vmem:[#allocation6] sm:$0xff]  ;;  %v4180_v46 = vld [vmem:[#allocation2 + $0x10] sm:$0xff] }
 0xff8   :  { %v3150_v45 = vpop.eup %3149 }
 0xff9   :  { %v1838_v52 = vmul.f32 %v3150_v45, %v3148_v50 }
 0xffb   :  { %v1839_v41 = vmul.f32 %v1838_v52, %v3706_v58 }
 0xffd   :  { %v1841_v51 = vadd.f32 %v1840_v53, %v1839_v41  ;;  %1845 = vst.msk [vmem:[#allocation2 + $0x18] sm:$0xff] %vm399_vm1, %v1839_v41 }
 0xfff   :  { %2848 = vmatmul.mubr.msk.f32.vlgmr.msra.gmra.mxu1 %vm399_vm1, %v1841_v51  ;;  %v1945_v41 = vmul.f32 %v1841_v51, %v3744_v48 }
0x1000   :  { %2076 = vmatpush1.msra.mxu1 %v3863_v39  ;;  %2123 = vmatprep.mubr.f32.mxu1 %v3283_v1 }
0x1001   :  { %2077 = vmatprep.subr.mxu1 %v3865_v35 }
0x1002   :  { %2078 = vmatpush1.msra.mxu1 %v3868_v38 }
0x1003   :  { %2079 = vmatprep.subr.mxu1 %v3871_v61 }
0x1004   :  { %2080 = vmatpush1.msra.mxu1 %v3874_v25 }
0x1005   :  { %2081 = vmatprep.subr.mxu1 %v3877_v63 }
0x1006   :  { %2082 = vmatpush1.msra.mxu1 %v3880_v40 }
0x1007   :  { %2083 = vmatprep.subr.mxu1 %v3883_v54 }
0x1008   :  { %2084 = vmatpush1.msra.mxu1 %v3886_v19 }
0x1009   :  { %2085 = vmatprep.subr.mxu1 %v3889_v23 }
0x100a   :  { %2086 = vmatpush1.msra.mxu1 %v3892_v6 }
0x100b   :  { %2087 = vmatprep.subr.mxu1 %v3895_v42 }
0x100c   :  { %2088 = vmatpush1.msra.mxu1 %v3898_v3 }
0x100d   :  { %2089 = vmatprep.subr.mxu1 %v3901_v44 }
0x100e   :  { %2090 = vmatpush1.msra.mxu1 %v3904_v12 }
0x10bf   :  { %v1915_v56 = vpop.f32.mrf.mxu1 }
0x10c0   :  { %v1920_v33 = vadd.f32 %v1915_v56, %v1392_v59 }
0x10c1   :  { %v1917_v16 = vpop.f32.mrf.mxu1 }
0x10c2   :  { %v2849_v60 = vmul.f32 -1.442695, %v1920_v33  ;;  %v1921_v10 = vadd.f32 %v1917_v16, %v1394_v24 }
0x10c4   :  { %3151 = vpow2.f32 %v2849_v60  ;;  %1936 = vrot.lane.b32.xlu1 %v1921_v10, %s3285_s18  ;;  %v2850_v47 = vmul.f32 -1.442695, %v1921_v10  ;;  %v2275_v60 = vld [vmem:[#allocation6 + $0x30] sm:$0xff]  ;;  %v4172_v10 = vld [vmem:[#allocation2] sm:$0xff] }
0x10d1   :  { %v3152_v18 = vpop.eup %3151 }
0x10d2   :  { %v1925_v21 = vadd.f32 1.0, %v3152_v18  ;;  %v2274_v18 = vld [vmem:[#allocation6 + $0x28] sm:$0xff] }
0x10d4   :  { %3153 = vrcp.f32 %v1925_v21  ;;  %v2273_v21 = vld [vmem:[#allocation6 + $0x20] sm:$0xff] }
0x10d5   :  { %3155 = vpow2.f32 %v2850_v47  ;;  %v2271_v47 = vld [vmem:[#allocation6 + $0x10] sm:$0xff] }
0x10e1   :  { %v3154_v7 = vpop.eup %3153 }
0x10e2   :  { %1928 = vrot.lane.b32.xlu0 %v3154_v7, %s3285_s18  ;;  %v3156_v57 = vpop.eup %3155 }
0x10e3   :  { %v1933_v49 = vadd.f32 1.0, %v3156_v57  ;;  %v4176_v57 = vld [vmem:[#allocation2 + $0x8] sm:$0xff] }
0x1136   :  { %v1937_v31 = vpop.permute.xlu1 %1936 }
0x1137   :  { %3157 = vtanh.f32 %v1937_v31  ;;  %v2270_v31 = vld [vmem:[#allocation6 + $0x8] sm:$0xff] }
0x1138   :  { %3159 = vrcp.f32 %v1933_v49 }
0x1144   :  { %v3158_v5 = vpop.eup %3157 }
0x1145   :  { %v1940_v22 = vmul.f32 %v3158_v5, %v3154_v7  ;;  %v3160_v28 = vpop.eup %3159  ;;  %v2272_v7 = vld [vmem:[#allocation6 + $0x18] sm:$0xff] }
0x1146   :  { %v4185_v5 = vld [vmem:[#allocation2 + $0x18] sm:$0xff] }
0x1154   :  { %v1929_v0 = vpop.permute.xlu0 %1928 }
0x1155   :  { %v1939_v8 = vmul.f32 %v1929_v0, %v1844_v9  ;;  %v1404_v0 = vadd.f32 %v4058_v15, %v3968_v30 }
0x1157   :  { %v1941_v26 = vadd.f32 %v1940_v22, %v1939_v8  ;;  %v1406_v22 = vadd.f32 %v4060_v17, %v3972_v32 }
0x1159   :  { %3161 = vtanh.f32 %v1941_v26 }
0x1166   :  { %v3162_v50 = vpop.eup %3161 }
0x1167   :  { %v1943_v45 = vmul.f32 %v3162_v50, %v3160_v28 }
0x1169   :  { %v1944_v52 = vmul.f32 %v1943_v45, %v3741_v43 }
0x116b   :  { %v1946_v58 = vadd.f32 %v1945_v41, %v1944_v52  ;;  %1950 = vst.msk [vmem:[#allocation2 + $0x20] sm:$0xff] %vm399_vm1, %v1944_v52 }
0x116d   :  { %2851 = vmatmul.mubr.msk.f32.vlgmr.msra.gmra.mxu0 %vm399_vm1, %v1946_v58 }
0x116e   :  { %2181 = vmatpush1.msra.mxu0 %v3863_v39  ;;  %2228 = vmatprep.mubr.f32.mxu0 %v3283_v1 }
0x116f   :  { %2182 = vmatprep.subr.mxu0 %v3865_v35  ;;  %v1400_v35 = vadd.f32 %v4056_v13, %v3972_v32 }
0x1170   :  { %2183 = vmatpush1.msra.mxu0 %v3868_v38 }
0x1171   :  { %2184 = vmatprep.subr.mxu0 %v3871_v61 }
0x1172   :  { %2185 = vmatpush1.msra.mxu0 %v3874_v25 }
0x1173   :  { %2186 = vmatprep.subr.mxu0 %v3877_v63 }
0x1174   :  { %2187 = vmatpush1.msra.mxu0 %v3880_v40 }
0x1175   :  { %2188 = vmatprep.subr.mxu0 %v3883_v54 }
0x1176   :  { %2189 = vmatpush1.msra.mxu0 %v3886_v19  ;;  %v2276_v19 = vld [vmem:[#allocation6 + $0x38] sm:$0xff] }
0x1177   :  { %2190 = vmatprep.subr.mxu0 %v3889_v23  ;;  %2920 = vmatprep.subr.mxu1 %v2276_v19 }
0x1178   :  { %2191 = vmatpush1.msra.mxu0 %v3892_v6 }
0x1179   :  { %2192 = vmatprep.subr.mxu0 %v3895_v42 }
0x117a   :  { %2193 = vmatpush1.msra.mxu0 %v3898_v3  ;;  %v1947_v3 = vmul.f32 %v1941_v26, %v3741_v43 }
0x117b   :  { %2194 = vmatprep.subr.mxu0 %v3901_v44 }
0x117c   :  { %2195 = vmatpush1.msra.mxu0 %v3904_v12  ;;  %v1948_v12 = vmul.f32 %v1844_v9, %v3744_v48  ;;  %v2050_v48 = vmul.f32 %v1946_v58, %v3781_v27  ;;  %v4189_v9 = vld [vmem:[#allocation2 + $0x20] sm:$0xff]  ;;  %v2428_v58 = vld [vmem:[%s4360_s8 + $0x38] sm:$0xff] }
0x117d   :  { %2948 = vmatprep.subr.mxu0 %v2428_v58 }
0x117e   :  { %v4159_v13 = vadd.f32 %v1948_v12, %v1947_v3 }
0x122d   :  { %v2020_v39 = vpop.f32.mrf.mxu0 }
0x122e   :  { %v2025_v38 = vadd.f32 %v2020_v39, %v1398_v62 }
0x122f   :  { %v2022_v61 = vpop.f32.mrf.mxu0 }
0x1230   :  { %v2852_v25 = vmul.f32 -1.442695, %v2025_v38  ;;  %v2026_v63 = vadd.f32 %v2022_v61, %v1400_v35  ;;  %v2053_v38 = vmul.f32 %v4159_v13, %v3781_v27 }
0x1232   :  { %3163 = vpow2.f32 %v2852_v25  ;;  %2041 = vrot.lane.b32.xlu1 %v2026_v63, %s3285_s18  ;;  %v2853_v6 = vmul.f32 -1.442695, %v2026_v63 }
0x123f   :  { %v3164_v40 = vpop.eup %3163 }
0x1240   :  { %v2030_v54 = vadd.f32 1.0, %v3164_v40 }
0x1242   :  { %3165 = vrcp.f32 %v2030_v54 }
0x1243   :  { %3167 = vpow2.f32 %v2853_v6 }
0x124f   :  { %v3166_v23 = vpop.eup %3165 }
0x1250   :  { %2033 = vrot.lane.b32.xlu0 %v3166_v23, %s3285_s18  ;;  %v3168_v44 = vpop.eup %3167 }
0x1251   :  { %v2038_v36 = vadd.f32 1.0, %v3168_v44 }
0x12a4   :  { %v2042_v42 = vpop.permute.xlu1 %2041 }
0x12a5   :  { %3169 = vtanh.f32 %v2042_v42 }
0x12a6   :  { %3171 = vrcp.f32 %v2038_v36 }
0x12b2   :  { %v3170_v2 = vpop.eup %3169 }
0x12b3   :  { %v2045_v51 = vmul.f32 %v3170_v2, %v3166_v23  ;;  %v3172_v56 = vpop.eup %3171 }
0x12c2   :  { %v2034_v37 = vpop.permute.xlu0 %2033 }
0x12c3   :  { %v2044_v53 = vmul.f32 %v2034_v37, %v4159_v13 }
0x12c5   :  { %v4162_v59 = vadd.f32 %v2045_v51, %v2044_v53 }
0x12c7   :  { %3173 = vtanh.f32 %v4162_v59  ;;  %v2052_v39 = vmul.f32 %v4162_v59, %v3778_v34 }
0x12c9   :  { %v4210_v25 = vadd.f32 %v2053_v38, %v2052_v39 }
0x12d4   :  { %v3174_v24 = vpop.eup %3173 }
0x12d5   :  { %v2048_v33 = vmul.f32 %v3174_v24, %v3172_v56  ;;  %v2427_v24 = vld [vmem:[%s4360_s8 + $0x30] sm:$0xff] }
0x12d7   :  { %v2049_v43 = vmul.f32 %v2048_v33, %v3778_v34  ;;  %v4219_v34 = vld [vmem:[%s4359_s7] ss:$0 sm:$0xff] }
0x12d9   :  { %v4167_v16 = vadd.f32 %v2050_v48, %v2049_v43  ;;  %2055 = vst.msk [vmem:[#allocation2 + $0x28] sm:$0xff] %vm399_vm1, %v2049_v43  ;;  %v2426_v48 = vld [vmem:[%s4360_s8 + $0x28] sm:$0xff] }
0x12db   :  { %2854 = vmatmul.mubr.msk.f32.vlgmr.msra.gmra.mxu1 %vm399_vm1, %v4167_v16  ;;  %v2155_v53 = vmul.f32 %v4167_v16, %v3912_v14 }
0x12dc   :  { %2921 = vmatpush3.msra.mxu1 %v2276_v19  ;;  %2936 = vmatprep.mubr.msk.f32.mxu1 %vm399_vm1, %v4172_v10 }
0x12dd   :  { %2922 = vmatprep.subr.mxu1 %v2275_v60 }
0x12de   :  { %2923 = vmatpush3.msra.mxu1 %v2275_v60 }
0x12df   :  { %2924 = vmatprep.subr.mxu1 %v2274_v18 }
0x12e0   :  { %2925 = vmatpush3.msra.mxu1 %v2274_v18  ;;  %v4193_v49 = vld [vmem:[#allocation2 + $0x28] sm:$0xff]  ;;  %v2425_v18 = vld [vmem:[%s4360_s8 + $0x20] sm:$0xff] }
0x12e1   :  { %2926 = vmatprep.subr.mxu1 %v2273_v21 }
0x12e2   :  { %2927 = vmatpush3.msra.mxu1 %v2273_v21 }
0x12e3   :  { %2928 = vmatprep.subr.mxu1 %v2272_v7 }
0x12e4   :  { %2929 = vmatpush3.msra.mxu1 %v2272_v7  ;;  %v2424_v7 = vld [vmem:[%s4360_s8 + $0x18] sm:$0xff] }
0x12e5   :  { %2930 = vmatprep.subr.mxu1 %v2271_v47 }
0x12e6   :  { %2931 = vmatpush3.msra.mxu1 %v2271_v47 }
0x12e7   :  { %2932 = vmatprep.subr.mxu1 %v2270_v31 }
0x12e8   :  { %2933 = vmatpush3.msra.mxu1 %v2270_v31  ;;  %v2423_v31 = vld [vmem:[%s4360_s8 + $0x10] sm:$0xff] }
0x12e9   :  { %2934 = vmatprep.subr.mxu1 %v2269_v11 }
0x12ea   :  { %2935 = vmatpush3.msra.mxu1 %v2269_v11  ;;  %v2422_v11 = vld [vmem:[%s4360_s8 + $0x8] sm:$0xff] }
0x12eb   :  { %2937 = vmatmul.mubr.msk.f32.vlgmr.msra.gmra.mxu1 %vm399_vm1, %v4176_v57  ;;  %2976 = vmatprep.subr.mxu1 %v3283_v1 }
0x12ec   :  { %2939 = vmatprep.mubr.msk.f32.mxu1 %vm399_vm1, %v4180_v46 }
0x12ef   :  { %2940 = vmatmul.mubr.msk.f32.gmra.mxu1 %vm399_vm1, %v4185_v5 }
0x12f0   :  { %2942 = vmatprep.mubr.msk.f32.mxu1 %vm399_vm1, %v4189_v9 }
0x12f3   :  { %2943 = vmatmul.mubr.msk.f32.gmra.mxu1 %vm399_vm1, %v4193_v49 }
0x139b   :  { %v2125_v8 = vpop.f32.mrf.mxu1 }
0x139c   :  { %v2130_v26 = vadd.f32 %v2125_v8, %v1404_v0  ;;  %v2421_v0 = vld [vmem:[%s4360_s8] sm:$0xff] }
0x139d   :  { %v2127_v28 = vpop.f32.mrf.mxu1 }
0x139e   :  { %v2855_v50 = vmul.f32 -1.442695, %v2130_v26  ;;  %v2131_v45 = vadd.f32 %v2127_v28, %v1406_v22 }
0x13a0   :  { %3175 = vpow2.f32 %v2855_v50  ;;  %2146 = vrot.lane.b32.xlu1 %v2131_v45, %s3285_s18  ;;  %v2856_v62 = vmul.f32 -1.442695, %v2131_v45  ;;  %v1410_v45 = vadd.f32 %v4062_v20, %v3968_v30  ;;  %v2158_v20 = vmul.f32 %v4210_v25, %v3912_v14 }
0x13ab   :  { %v2938_v54 = vpop.f32.mrf.mxu1 }
0x13ac   :  { %v2380_v51 = vadd.f32 %v2938_v54, %v4219_v34 }
0x13ad   :  { %v3176_v52 = vpop.eup %3175  ;;  %v2374_v42 = vpop.f32.mrf.mxu1 }
0x13ae   :  { %v2135_v41 = vadd.f32 1.0, %v3176_v52  ;;  %v2375_v27 = vadd.f32 %v4219_v34, %v2374_v42 }
0x13af   :  { %v2941_v3 = vpop.f32.mrf.mxu1 }
0x13b0   :  { %3177 = vrcp.f32 %v2135_v41  ;;  %v2390_v16 = vadd.f32 %v2941_v3, %v4219_v34  ;;  %v1412_v41 = vadd.f32 %v4064_v4, %v3972_v32 }
0x13b1   :  { %3179 = vpow2.f32 %v2856_v62  ;;  %v2384_v12 = vpop.f32.mrf.mxu1 }
0x13b2   :  { %v2385_v56 = vadd.f32 %v4219_v34, %v2384_v12 }
0x13b3   :  { %v2944_v36 = vpop.f32.mrf.mxu1 }
0x13b4   :  { %v2400_v47 = vadd.f32 %v2944_v36, %v4219_v34 }
0x13b5   :  { %v2394_v43 = vpop.f32.mrf.mxu1 }
0x13b6   :  { %v2395_v60 = vadd.f32 %v4219_v34, %v2394_v43 }
0x13bd   :  { %v3178_v15 = vpop.eup %3177 }
0x13be   :  { %2138 = vrot.lane.b32.xlu0 %v3178_v15, %s3285_s18  ;;  %v3180_v35 = vpop.eup %3179 }
0x13bf   :  { %v2143_v63 = vadd.f32 1.0, %v3180_v35 }
0x1412   :  { %v2147_v17 = vpop.permute.xlu1 %2146 }
0x1413   :  { %3181 = vtanh.f32 %v2147_v17 }
0x1414   :  { %3183 = vrcp.f32 %v2143_v63 }
0x1420   :  { %v3182_v61 = vpop.eup %3181 }
0x1421   :  { %v2150_v23 = vmul.f32 %v3182_v61, %v3178_v15  ;;  %v3184_v44 = vpop.eup %3183 }
0x1430   :  { %v2139_v40 = vpop.permute.xlu0 %2138 }
0x1431   :  { %v2149_v19 = vmul.f32 %v2139_v40, %v4210_v25 }
0x1433   :  { %v4213_v6 = vadd.f32 %v2150_v23, %v2149_v19 }
0x1435   :  { %3185 = vtanh.f32 %v4213_v6  ;;  %v2157_v30 = vmul.f32 %v4213_v6, %v3909_v55 }
0x1436   :  { %3187 = vtanh.f32 %v2375_v27 }
0x1437   :  { %3189 = vtanh.f32 %v2380_v51  ;;  %v2159_v40 = vadd.f32 %v2158_v20, %v2157_v30 }
0x1438   :  { %3191 = vtanh.f32 %v2385_v56 }
0x1439   :  { %3193 = vtanh.f32 %v2390_v16 }
0x143a   :  { %3195 = vtanh.f32 %v2395_v60 }
0x143b   :  { %3197 = vtanh.f32 %v2400_v47 }
0x1442   :  { %v3186_v2 = vpop.eup %3185 }
0x1443   :  { %v2153_v13 = vmul.f32 %v3186_v2, %v3184_v44  ;;  %v3188_v33 = vpop.eup %3187 }
0x1444   :  { %v3190_v8 = vpop.eup %3189 }
0x1445   :  { %v2154_v37 = vmul.f32 %v2153_v13, %v3909_v55  ;;  %v3192_v22 = vpop.eup %3191 }
0x1446   :  { %v3194_v26 = vpop.eup %3193 }
0x1447   :  { %v2156_v59 = vadd.f32 %v2155_v53, %v2154_v37  ;;  %2160 = vst.msk [vmem:[#allocation2 + $0x30] sm:$0xff] %vm399_vm1, %v2154_v37  ;;  %v3196_v28 = vpop.eup %3195 }
0x1448   :  { %v3198_v50 = vpop.eup %3197 }
0x1449   :  { %2857 = vmatmul.mubr.msk.f32.vlgmr.msra.gmra.mxu0 %vm399_vm1, %v2156_v59 }
0x144a   :  { %2949 = vmatpush3.msra.mxu0 %v2428_v58  ;;  %2964 = vmatprep.mubr.msk.f32.mxu0 %vm399_vm1, %v3188_v33 }
0x144b   :  { %2950 = vmatprep.subr.mxu0 %v2427_v24 }
0x144c   :  { %2951 = vmatpush3.msra.mxu0 %v2427_v24 }
0x144d   :  { %2952 = vmatprep.subr.mxu0 %v2426_v48 }
0x144e   :  { %2953 = vmatpush3.msra.mxu0 %v2426_v48  ;;  %v4241_v21 = vld [vmem:[#allocation2 + $0x30] sm:$0xff] }
0x144f   :  { %2954 = vmatprep.subr.mxu0 %v2425_v18  ;;  %2945 = vmatprep.mubr.msk.f32.mxu1 %vm399_vm1, %v4241_v21 }
0x1450   :  { %2955 = vmatpush3.msra.mxu0 %v2425_v18 }
0x1451   :  { %2956 = vmatprep.subr.mxu0 %v2424_v7 }
0x1452   :  { %2957 = vmatpush3.msra.mxu0 %v2424_v7 }
0x1453   :  { %2958 = vmatprep.subr.mxu0 %v2423_v31 }
0x1454   :  { %2959 = vmatpush3.msra.mxu0 %v2423_v31 }
0x1455   :  { %2960 = vmatprep.subr.mxu0 %v2422_v11 }
0x1456   :  { %2961 = vmatpush3.msra.mxu0 %v2422_v11 }
0x1457   :  { %2962 = vmatprep.subr.mxu0 %v2421_v0 }
0x1458   :  { %2963 = vmatpush3.msra.mxu0 %v2421_v0 }
0x1459   :  { %2965 = vmatmul.mubr.msk.f32.vlgmr.msra.gmra.mxu0 %vm399_vm1, %v3190_v8 }
0x145a   :  { %2967 = vmatprep.mubr.msk.f32.mxu0 %vm399_vm1, %v3192_v22 }
0x145d   :  { %2968 = vmatmul.mubr.msk.f32.gmra.mxu0 %vm399_vm1, %v3194_v26 }
0x145e   :  { %2970 = vmatprep.mubr.msk.f32.mxu0 %vm399_vm1, %v3196_v28 }
0x1461   :  { %2971 = vmatmul.mubr.msk.f32.gmra.mxu0 %vm399_vm1, %v3198_v50 }
0x1509   :  { %v2230_v52 = vpop.f32.mrf.mxu0 }
0x150a   :  { %v2235_v58 = vadd.f32 %v2230_v52, %v1410_v45 }
0x150b   :  { %v2232_v15 = vpop.f32.mrf.mxu0 }
0x150c   :  { %v2858_v62 = vmul.f32 -1.442695, %v2235_v58  ;;  %v2236_v17 = vadd.f32 %v2232_v15, %v1412_v41 }
0x150e   :  { %3199 = vpow2.f32 %v2858_v62  ;;  %2251 = vrot.lane.b32.xlu1 %v2236_v17, %s3285_s18  ;;  %v2859_v61 = vmul.f32 -1.442695, %v2236_v17 }
0x151b   :  { %v3200_v39 = vpop.eup %3199 }
0x151c   :  { %v2240_v35 = vadd.f32 1.0, %v3200_v39 }
0x151e   :  { %3201 = vrcp.f32 %v2240_v35 }
0x151f   :  { %3203 = vpow2.f32 %v2859_v61 }
0x152b   :  { %v3202_v38 = vpop.eup %3201 }
0x152c   :  { %2243 = vrot.lane.b32.xlu0 %v3202_v38, %s3285_s18  ;;  %v3204_v32 = vpop.eup %3203 }
0x152d   :  { %v2248_v54 = vadd.f32 1.0, %v3204_v32 }
0x1580   :  { %v2252_v63 = vpop.permute.xlu1 %2251 }
0x1581   :  { %3205 = vtanh.f32 %v2252_v63 }
0x1582   :  { %3207 = vrcp.f32 %v2248_v54 }
0x158e   :  { %v3206_v4 = vpop.eup %3205 }
0x158f   :  { %v2255_v42 = vmul.f32 %v3206_v4, %v3202_v38  ;;  %v3208_v3 = vpop.eup %3207 }
0x159e   :  { %v2244_v19 = vpop.permute.xlu0 %2243 }
0x159f   :  { %v2254_v23 = vmul.f32 %v2244_v19, %v2159_v40 }
0x15a1   :  { %v2256_v27 = vadd.f32 %v2255_v42, %v2254_v23 }
0x15a3   :  { %3209 = vtanh.f32 %v2256_v27 }
0x15b0   :  { %v3210_v44 = vpop.eup %3209 }
0x15b1   :  { %v2258_v12 = vmul.f32 %v3210_v44, %v3208_v3 }
0x15b3   :  { %v2259_v2 = vmul.f32 %v2258_v12, %v3986_v29  ;;  %v2966_v29 = vpop.f32.mrf.mxu0 }
0x15b4   :  { %v2560_v7 = vsel %vm2558_vm2, %v2966_v29, -inf }
0x15b5   :  { %2260 = vst.msk [vmem:[#allocation2 + $0x38] sm:$0xff] %vm399_vm1, %v2259_v2  ;;  %v2519_v53 = vpop.f32.mrf.mxu0 }
0x15b7   :  { %v2969_v51 = vpop.f32.mrf.mxu0 }
0x15b8   :  { %v2562_v47 = vsel %vm2558_vm2, %v2969_v51, -inf }
0x15b9   :  { %v2529_v59 = vpop.f32.mrf.mxu0 }
0x15ba   :  { %v2561_v31 = vsel %vm2558_vm2, %v2529_v59, -inf }
0x15bb   :  { %v2972_v56 = vpop.f32.mrf.mxu0 }
0x15bc   :  { %v4275_v55 = vld [vmem:[#allocation2 + $0x38] sm:$0xff]  ;;  %v2565_v48 = vsel %vm2558_vm2, %v2972_v56, -inf }
0x15bd   :  { %2946 = vmatmul.mubr.msk.f32.gmra.mxu1 %vm399_vm1, %v4275_v55  ;;  %v2539_v24 = vpop.f32.mrf.mxu0  ;;  %v2566_v0 = vmax.f32 %v2560_v7, %v2565_v48  ;;  %v2691_v7 = vld [vmem:[%s4361_s9 + $0x30] sm:$0xff] }
0x15be   :  { %v2563_v33 = vsel %vm2558_vm2, %v2539_v24, -inf  ;;  %2992 = vmatprep.mubr.msk.f32.mxu1 %vm3286_vm3, %v3283_v1 }
0x167d   :  { %v2947_v14 = vpop.f32.mrf.mxu1 }
0x167e   :  { %v2410_v25 = vadd.f32 %v2947_v14, %v4219_v34 }
0x167f   :  { %v2404_v6 = vpop.f32.mrf.mxu1 }
0x1680   :  { %v2405_v13 = vadd.f32 %v4219_v34, %v2404_v6  ;;  %v2559_v34 = vsel %vm2558_vm2, %v2519_v53, -inf }
0x1681   :  { %v2564_v60 = vmax.f32 %v2559_v34, %v2563_v33 }
0x1682   :  { %3211 = vtanh.f32 %v2405_v13 }
0x1683   :  { %3213 = vtanh.f32 %v2410_v25  ;;  %v2571_v26 = vmax.f32 %v2564_v60, %v2566_v0  ;;  %v2689_v0 = vld [vmem:[%s4361_s9 + $0x20] sm:$0xff] }
0x168f   :  { %v3212_v36 = vpop.eup %3211 }
0x1690   :  { %v3214_v37 = vpop.eup %3213  ;;  %2973 = vmatprep.mubr.msk.f32.mxu0 %vm399_vm1, %v3212_v36 }
0x1691   :  { %2974 = vmatmul.mubr.msk.f32.gmra.mxu0 %vm399_vm1, %v3214_v37 }
0x1751   :  { %v2975_v43 = vpop.f32.mrf.mxu0 }
0x1752   :  { %v2569_v16 = vsel %vm2558_vm2, %v2975_v43, -inf }
0x1753   :  { %v2549_v18 = vpop.f32.mrf.mxu0  ;;  %v2570_v8 = vmax.f32 %v2562_v47, %v2569_v16  ;;  %v2692_v16 = vld [vmem:[%s4361_s9 + $0x38] sm:$0xff]  ;;  %v2690_v47 = vld [vmem:[%s4361_s9 + $0x28] sm:$0xff] }
0x1754   :  { %v2567_v11 = vsel %vm2558_vm2, %v2549_v18, -inf  ;;  %2977 = vmatpush3.msra.mxu1 %v2692_v16 }
0x1755   :  { %v2568_v22 = vmax.f32 %v2561_v31, %v2567_v11  ;;  %2978 = vmatprep.subr.mxu1 %v3283_v1 }
0x1756   :  { %2979 = vmatpush3.msra.mxu1 %v2691_v7 }
0x1757   :  { %v2572_v28 = vmax.f32 %v2568_v22, %v2570_v8  ;;  %2980 = vmatprep.subr.mxu1 %v3283_v1 }
0x1758   :  { %2981 = vmatpush3.msra.mxu1 %v2690_v47 }
0x1759   :  { %v2573_v50 = vmax.f32 %v2571_v26, %v2572_v28  ;;  %2982 = vmatprep.subr.mxu1 %v3283_v1  ;;  %v2688_v26 = vld [vmem:[%s4361_s9 + $0x18] sm:$0xff]  ;;  %v2687_v28 = vld [vmem:[%s4361_s9 + $0x10] sm:$0xff] }
0x175a   :  { %2983 = vmatpush3.msra.mxu1 %v2689_v0 }
0x175b   :  { %v2574_v45 = vsub.f32 %v2519_v53, %v2573_v50  ;;  %v2575_v52 = vsub.f32 %v2966_v29, %v2573_v50  ;;  %v2576_v41 = vsub.f32 %v2529_v59, %v2573_v50  ;;  %v2577_v58 = vsub.f32 %v2969_v51, %v2573_v50  ;;  %2984 = vmatprep.subr.mxu1 %v3283_v1 }
0x175c   :  { %v2578_v15 = vsub.f32 %v2539_v24, %v2573_v50  ;;  %v2579_v35 = vsub.f32 %v2972_v56, %v2573_v50  ;;  %v2580_v61 = vsub.f32 %v2549_v18, %v2573_v50  ;;  %v2581_v30 = vsub.f32 %v2975_v43, %v2573_v50  ;;  %2985 = vmatpush3.msra.mxu1 %v2688_v26  ;;  %v2686_v50 = vld [vmem:[%s4361_s9 + $0x8] sm:$0xff] }
0x175d   :  { %v2582_v62 = vmul.f32 1.442695, %v2574_v45  ;;  %v2584_v17 = vmul.f32 1.442695, %v2575_v52  ;;  %v2586_v39 = vmul.f32 1.442695, %v2576_v41  ;;  %2986 = vmatprep.subr.mxu1 %v3283_v1 }
0x175e   :  { %v2588_v38 = vmul.f32 1.442695, %v2577_v58  ;;  %v2590_v63 = vmul.f32 1.442695, %v2578_v15  ;;  %v2592_v32 = vmul.f32 1.442695, %v2579_v35  ;;  %2987 = vmatpush3.msra.mxu1 %v2687_v28 }
0x175f   :  { %3215 = vpow2.f32 %v2582_v62  ;;  %v2594_v20 = vmul.f32 1.442695, %v2580_v61  ;;  %v2596_v4 = vmul.f32 1.442695, %v2581_v30  ;;  %2988 = vmatprep.subr.mxu1 %v3283_v1  ;;  %v2685_v45 = vld [vmem:[%s4361_s9] sm:$0xff] }
0x1760   :  { %3217 = vpow2.f32 %v2584_v17  ;;  %2989 = vmatpush3.msra.mxu1 %v2686_v50 }
0x1761   :  { %3219 = vpow2.f32 %v2586_v39  ;;  %2990 = vmatprep.subr.mxu1 %v3283_v1 }
0x1762   :  { %3221 = vpow2.f32 %v2588_v38  ;;  %2991 = vmatpush3.msra.mxu1 %v2685_v45 }
0x1763   :  { %3223 = vpow2.f32 %v2590_v63 }
0x1764   :  { %3225 = vpow2.f32 %v2592_v32 }
0x1765   :  { %3227 = vpow2.f32 %v2594_v20 }
0x1766   :  { %3229 = vpow2.f32 %v2596_v4 }
0x176c   :  { %v3216_v40 = vpop.eup %3215 }
0x176d   :  { %v3218_v54 = vpop.eup %3217  ;;  %v2598_v19 = vsel %vm2558_vm2, %v3216_v40, 0.0 }
0x176e   :  { %v3220_v23 = vpop.eup %3219  ;;  %v2599_v42 = vsel %vm2558_vm2, %v3218_v54, 0.0 }
0x176f   :  { %v3222_v27 = vpop.eup %3221  ;;  %v2600_v3 = vadd.f32 %v2599_v42, %v2598_v19  ;;  %v2601_v44 = vsel %vm2558_vm2, %v3220_v23, 0.0 }
0x1770   :  { %v3224_v12 = vpop.eup %3223  ;;  %v2603_v14 = vsel %vm2558_vm2, %v3222_v27, 0.0 }
0x1771   :  { %v2602_v2 = vadd.f32 %v2601_v44, %v2600_v3  ;;  %v3226_v25 = vpop.eup %3225  ;;  %v2605_v13 = vsel %vm2558_vm2, %v3224_v12, 0.0 }
0x1772   :  { %v3228_v36 = vpop.eup %3227  ;;  %v2607_v29 = vsel %vm2558_vm2, %v3226_v25, 0.0 }
0x1773   :  { %v2604_v6 = vadd.f32 %v2603_v14, %v2602_v2  ;;  %v3230_v53 = vpop.eup %3229  ;;  %v2609_v59 = vsel %vm2558_vm2, %v3228_v36, 0.0 }
0x1774   :  { %v2611_v24 = vsel %vm2558_vm2, %v3230_v53, 0.0 }
0x1775   :  { %v2606_v37 = vadd.f32 %v2605_v13, %v2604_v6 }
0x1777   :  { %v2608_v51 = vadd.f32 %v2607_v29, %v2606_v37 }
0x1779   :  { %v2610_v56 = vadd.f32 %v2609_v59, %v2608_v51 }
0x177b   :  { %v2612_v33 = vadd.f32 %v2611_v24, %v2610_v56 }
0x177d   :  { %3231 = vrcp.f32 %v2612_v33 }
0x178a   :  { %v3232_v43 = vpop.eup %3231 }
0x178b   :  { %v2615_v34 = vmul.f32 %v3232_v43, %v3218_v54  ;;  %v2614_v48 = vmul.f32 %v3232_v43, %v3216_v40  ;;  %v2617_v60 = vmul.f32 %v3232_v43, %v3222_v27  ;;  %v2616_v18 = vmul.f32 %v3232_v43, %v3220_v23 }
0x178c   :  { %v2619_v31 = vmul.f32 %v3232_v43, %v3226_v25  ;;  %v2618_v11 = vmul.f32 %v3232_v43, %v3224_v12  ;;  %v2621_v8 = vmul.f32 %v3232_v43, %v3230_v53  ;;  %v2620_v22 = vmul.f32 %v3232_v43, %v3228_v36 }
0x178d   :  { %2629 = vperm.xlu0 %3006, %v2615_v34   ;;  %2624 = vperm.xlu1 %3005, %v2614_v48  }
0x1791   :  { %2639 = vperm.xlu0 %3006, %v2617_v60   ;;  %2634 = vperm.xlu1 %3005, %v2616_v18  }
0x1795   :  { %2649 = vperm.xlu0 %3006, %v2619_v31   ;;  %2644 = vperm.xlu1 %3005, %v2618_v11  }
0x1799   :  { %2659 = vperm.xlu0 %3006, %v2621_v8   ;;  %2654 = vperm.xlu1 %3005, %v2620_v22  }
0x1808   :  { %v2630_v52 = vpop.permute.xlu0 %2629  ;;  %v2625_v41 = vpop.permute.xlu1 %2624 }
0x1809   :  { %v2663_v58 = vmul.f32 %v2630_v52, %v4176_v57  ;;  %v2662_v15 = vmul.f32 %v2625_v41, %v4172_v10 }
0x180b   :  { %v2671_v62 = vsel %vm399_vm1, %v2663_v58, 0.0  ;;  %v2670_v17 = vsel %vm399_vm1, %v2662_v15, 0.0 }
0x180c   :  { %v2640_v39 = vpop.permute.xlu0 %2639  ;;  %v2635_v35 = vpop.permute.xlu1 %2634  ;;  %v2672_v63 = vadd.f32 %v2671_v62, %v2670_v17 }
0x180d   :  { %v2665_v38 = vmul.f32 %v2640_v39, %v4185_v5  ;;  %v2664_v61 = vmul.f32 %v2635_v35, %v4180_v46 }
0x180f   :  { %v2673_v1 = vsel %vm399_vm1, %v2664_v61, 0.0  ;;  %v2675_v57 = vsel %vm399_vm1, %v2665_v38, 0.0 }
0x1810   :  { %v2674_v30 = vadd.f32 %v2673_v1, %v2672_v63  ;;  %v2650_v32 = vpop.permute.xlu0 %2649  ;;  %v2645_v20 = vpop.permute.xlu1 %2644 }
0x1811   :  { %v2667_v10 = vmul.f32 %v2650_v32, %v4193_v49  ;;  %v2666_v4 = vmul.f32 %v2645_v20, %v4189_v9  ;;  %v2877_v9 = vld [vmem:[#allocation3] ss:$0 sm:$0xff] }
0x1812   :  { %v2676_v40 = vadd.f32 %v2675_v57, %v2674_v30 }
0x1813   :  { %v2677_v54 = vsel %vm399_vm1, %v2666_v4, 0.0  ;;  %v2679_v46 = vsel %vm399_vm1, %v2667_v10, 0.0 }
0x1814   :  { %v2678_v19 = vadd.f32 %v2677_v54, %v2676_v40  ;;  %v2660_v23 = vpop.permute.xlu0 %2659  ;;  %v2655_v5 = vpop.permute.xlu1 %2654 }
0x1815   :  { %v2669_v42 = vmul.f32 %v2660_v23, %v4275_v55  ;;  %v2668_v27 = vmul.f32 %v2655_v5, %v4241_v21 }
0x1816   :  { %v2680_v3 = vadd.f32 %v2679_v46, %v2678_v19 }
0x1817   :  { %v2681_v44 = vsel %vm399_vm1, %v2668_v27, 0.0  ;;  %v2683_v49 = vsel %vm399_vm1, %v2669_v42, 0.0 }
0x1818   :  { %v2682_v12 = vadd.f32 %v2681_v44, %v2680_v3 }
0x181a   :  { %v2684_v2 = vadd.f32 %v2683_v49, %v2682_v12 }
0x181c   :  { %2993 = vmatmul.mubr.msk.f32.vlgmr.msra.gmra.mxu1 %vm399_vm1, %v2684_v2 }
0x18dc   :  { %v2769_v14 = vpop.f32.mrf.mxu1 }
0x18dd   :  { %v2770_v25 = vadd.f32 %v2877_v9, %v2769_v14 }
0x18de   :  { %v2994_v6 = vpop.f32.mrf.mxu1 }
0x18df   :  { %2773 = vst.msk [vmem:[%s4363_s11] sm:$0xff] %vm2558_vm2, %v2770_v25 }
0x18e0   :  { %2778 = vsyncpa [#allocation5], 1 }
0x18e1   :  { %2779 = vsyncpa [#allocation7], 1 }

</bundles_post_ra>
